<compile_context>
chip_gen: v6e
topology: v6e:2x2x1
jax: 0.10.0
libtpu: 0.0.40
codegen_flags: <defaults>
</compile_context>

<pallas_src>
import functools
import math

import jax
import jax.numpy as jnp
from jax.experimental import pallas as pl
from jax.experimental.pallas import tpu as pltpu

LANE = 128     # lane (last-dim) tiling
SUBLANE = 8    # sublane (second-to-last-dim) tiling


def _round_up(x, m):
    return (x + m - 1) // m * m


def _vmem_budget_bytes():
    """Generation-aware VMEM cap (v5e/v6e: 128 MiB, v7x: 64 MiB per TC)."""
    try:
        cap = int(pltpu.get_tpu_info().vmem_capacity_bytes)
    except Exception:
        cap = 64 * 1024 * 1024
    # Leave ~3/8 headroom for Mosaic internal scratch / double buffers.
    return (cap * 5) // 8


# ---------------------------------------------------------------------------
# Fused EGNN_static layer kernel (grid over edge tiles)
# ---------------------------------------------------------------------------
def _egnn_layer_kernel(h_ref, row_ref, colsh_ref, row_le_ref, eattr_ref,
                       batch_ref,
                       ew1a_ref, ew1b_ref, ew1e_ref, ew2_ref,
                       nw1h_ref, nw1a_ref, nw2_ref, bias_ref,
                       *outs_and_scratch,
                       residual: bool, pool: bool, hidden: int,
                       radial_col: int, pack_radial: bool):
    if pool:
        hout_ref, gfeat_ref, agg_ref, hab_ref = outs_and_scratch
        efeat_ref = None
    else:
        efeat_ref, hout_ref, agg_ref, hab_ref = outs_and_scratch
        gfeat_ref = None

    t = pl.program_id(0)
    n_pad = h_ref.shape[0]          # padded node count (resident in VMEM)
    tile_e = row_ref.shape[0]       # edges per grid step
    hp = agg_ref.shape[1]

    b = bias_ref[...]               # packed biases (8, HP) f32
    eb1, eb2, nb1, nb2 = b[0:1, :], b[1:2, :], b[2:3, :], b[3:4, :]

    # ---- per-layer prologue: zero agg; precompute hA = h@W1a, hB = h@W1b ----
    @pl.when(t == 0)
    def _prologue():
        agg_ref[...] = jnp.zeros_like(agg_ref)
        h_bf = h_ref[...].astype(jnp.bfloat16)
        hab_ref[0:n_pad, :] = jnp.dot(
            h_bf, ew1a_ref[...],
            preferred_element_type=jnp.float32).astype(jnp.bfloat16)
        hab_ref[n_pad:2 * n_pad, :] = jnp.dot(
            h_bf, ew1b_ref[...],
            preferred_element_type=jnp.float32).astype(jnp.bfloat16)

    # ---- fused gather + W1: one (TE, 2N) x (2N, HP) MXU pass ----------------
    # colsh = col + n_pad was prepared in the wrapper (padding rows use -1, which
    # never matches), so a single combined one-hot selects both hA and hB rows.
    iota2 = jax.lax.broadcasted_iota(jnp.int32, (tile_e, 2 * n_pad), 1)
    oh = jnp.logical_or(iota2 == row_ref[...],
                        iota2 == colsh_ref[...]).astype(jnp.bfloat16)
    ea = eattr_ref[...]                               # (TE, e_dim) bf16
    pre1 = (jnp.dot(oh, hab_ref[...], preferred_element_type=jnp.float32)
            + jnp.dot(ea, ew1e_ref[...], preferred_element_type=jnp.float32)
            + eb1)
    m1 = pre1 * jax.nn.sigmoid(pre1)                  # SiLU in f32
    pre2 = jnp.dot(m1.astype(jnp.bfloat16), ew2_ref[...],
                   preferred_element_type=jnp.float32) + eb2
    efeat = pre2 * jax.nn.sigmoid(pre2)               # (TE, HP) f32
    efeat_bf = efeat.astype(jnp.bfloat16)

    # ---- scatter_add(edge_feat, row): one-hot matmul into f32 VMEM scratch --
    oh_scat = (row_le_ref[...] ==
               jax.lax.broadcasted_iota(jnp.int32, (n_pad, tile_e), 0)
               ).astype(jnp.bfloat16)                 # (N, TE)
    agg_ref[...] += jnp.dot(oh_scat, efeat_bf,
                            preferred_element_type=jnp.float32)

    # ---- emit bf16 edge features for the next layer (dead on the last) ------
    if efeat_ref is not None:
        if pack_radial:
            # radial for the next layer rides in the spare padded lane `hidden`
            # (that lane of efeat is exactly zero by weight/bias padding).
            rad = ea[:, radial_col:radial_col + 1]            # (TE, 1)
            lane = jax.lax.broadcasted_iota(jnp.int32, (1, hp), 1)
            efeat_ref[...] = jnp.where(lane == hidden, rad, efeat_bf)
        else:
            efeat_ref[...] = efeat_bf

    # ---- node MLP (+ residual, + fused graph pooling) on the last tile ------
    @pl.when(t == pl.num_programs(0) - 1)
    def _finalize():
        h_f = h_ref[...]
        pre = (jnp.dot(h_f.astype(jnp.bfloat16), nw1h_ref[...],
                       preferred_element_type=jnp.float32)
               + jnp.dot(agg_ref[...].astype(jnp.bfloat16), nw1a_ref[...],
                         preferred_element_type=jnp.float32)
               + nb1)
        m2 = pre * jax.nn.sigmoid(pre)
        y = jnp.dot(m2.astype(jnp.bfloat16), nw2_ref[...],
                    preferred_element_type=jnp.float32) + nb2
        if residual:
            y = y + h_f
        hout_ref[...] = y.astype(hout_ref.dtype)
        if pool:
            n_graphs = gfeat_ref.shape[0]
            oh_b = (batch_ref[...] ==
                    jax.lax.broadcasted_iota(jnp.int32, (n_graphs, n_pad), 0)
                    ).astype(jnp.float32)
            gfeat_ref[...] = jnp.dot(
                oh_b, y, preferred_element_type=jnp.float32
            ).astype(gfeat_ref.dtype)


def _egnn_layer_call(h_pad, row_el, colsh_el, row_le, eattr, batch_le, lp, *,
                     residual, pool, hidden, radial_col, pack_radial,
                     num_graphs_pad, edge_tile):
    n_pad, f_in = h_pad.shape
    e_pad, e_dim = eattr.shape
    hp = lp['ew2'].shape[0]
    op = lp['nw2'].shape[1]
    n_tiles = e_pad // edge_tile

    kernel = functools.partial(
        _egnn_layer_kernel, residual=residual, pool=pool, hidden=hidden,
        radial_col=radial_col, pack_radial=pack_radial)

    def resident(shape):
        # Grid-invariant operand: constant index map -> fetched once per layer.
        return pl.BlockSpec(shape, lambda e: (0,) * len(shape))

    in_specs = [
        resident((n_pad, f_in)),                              # h (resident)
        pl.BlockSpec((edge_tile, 1), lambda e: (e, 0)),       # row   (E,1)
        pl.BlockSpec((edge_tile, 1), lambda e: (e, 0)),       # col+n (E,1)
        pl.BlockSpec((1, edge_tile), lambda e: (0, e)),       # row   (1,E)
        pl.BlockSpec((edge_tile, e_dim), lambda e: (e, 0)),   # eattr (bf16)
        resident((1, n_pad)),                                 # batch ids
        resident(lp['ew1a'].shape), resident(lp['ew1b'].shape),
        resident(lp['ew1e'].shape), resident(lp['ew2'].shape),
        resident(lp['nw1h'].shape), resident(lp['nw1a'].shape),
        resident(lp['nw2'].shape), resident(lp['bias'].shape),
    ]

    if pool:
        out_shape = (jax.ShapeDtypeStruct((n_pad, op), jnp.float32),
                     jax.ShapeDtypeStruct((num_graphs_pad, op), jnp.float32))
        out_specs = (resident((n_pad, op)), resident((num_graphs_pad, op)))
    else:
        out_shape = (jax.ShapeDtypeStruct((e_pad, hp), jnp.bfloat16),
                     jax.ShapeDtypeStruct((n_pad, op), jnp.float32))
        out_specs = (pl.BlockSpec((edge_tile, hp), lambda e: (e, 0)),
                     resident((n_pad, op)))

    flops = int(
        2 * 2 * n_pad * f_in * hp                 # prologue hA/hB
        + 2 * e_pad * 2 * n_pad * hp              # fused gather + W1
        + 2 * e_pad * e_dim * hp                  # (edge_attr|radial) @ W1e
        + 2 * e_pad * hp * hp                     # edge linear 2
        + 2 * e_pad * n_pad * hp                  # scatter-add one-hot matmul
        + 2 * n_pad * (f_in + hp) * hp            # node linear 1
        + 2 * n_pad * hp * op                     # node linear 2
        + (2 * num_graphs_pad * n_pad * op if pool else 0))
    transcendentals = int(2 * e_pad * hp + n_pad * hp)
    bytes_accessed = int(
        4 * n_pad * (f_in + op)                   # h in, h out
        + 2 * e_pad * e_dim + 12 * e_pad          # eattr + index streams
        + (0 if pool else 2 * e_pad * hp)         # efeat out (bf16, dead if pool)
        + (4 * num_graphs_pad * op if pool else 0)
        + 2 * (2 * f_in * hp + e_dim * hp + 2 * hp * hp + hp * op) + 32 * hp)

    resident_bytes = (4 * n_pad * (f_in + hp + op)           # h, agg, h_out
                      + 4 * n_pad * hp                       # hAB (bf16, 2N rows)
                      + 4 * num_graphs_pad * op
                      + 2 * (2 * f_in * hp + e_dim * hp + 2 * hp * hp + hp * op)
                      + 4 * 8 * hp)
    tile_bytes = (2 * edge_tile * (e_dim + hp)               # eattr in + efeat out
                  + 12 * edge_tile                           # index streams
                  + 4 * edge_tile * 2 * n_pad                # gather one-hot temp
                  + 2 * edge_tile * n_pad                    # scatter one-hot temp
                  + 16 * edge_tile * hp)                     # f32 MLP temps
    vmem_limit = int(min(_vmem_budget_bytes(),
                         max(8 << 20, resident_bytes + 3 * tile_bytes)))

    return pl.pallas_call(
        kernel,
        grid=(n_tiles,),
        in_specs=in_specs,
        out_shape=out_shape,
        out_specs=out_specs,
        scratch_shapes=[pltpu.VMEM((n_pad, hp), jnp.float32),
                        pltpu.VMEM((2 * n_pad, hp), jnp.bfloat16)],
        compiler_params=pltpu.CompilerParams(
            dimension_semantics=("arbitrary",),   # agg accumulates across tiles
            vmem_limit_bytes=vmem_limit),
        cost_estimate=pl.CostEstimate(flops=flops,
                                      transcendentals=transcendentals,
                                      bytes_accessed=bytes_accessed),
    )(h_pad, row_el, colsh_el, row_le, eattr, batch_le,
      lp['ew1a'], lp['ew1b'], lp['ew1e'], lp['ew2'],
      lp['nw1h'], lp['nw1a'], lp['nw2'], lp['bias'])


# ---------------------------------------------------------------------------
# Forward pass (plain-JAX glue: padding / index prep / final slicing only)
# ---------------------------------------------------------------------------
def fragment_library_encoder_forward(params, x, edge_index, pos, edge_attr,
                                     batch_index, *, num_graphs, output_dim,
                                     no_3D=False):
    n_nodes, in_nf = x.shape
    n_edges = edge_index.shape[1]
    hidden = output_dim
    hp = _round_up(hidden, LANE)
    if not no_3D:
        # radial rides in a zero-padded lane of the inter-layer edge stream.
        assert hidden < hp, "radial packing needs a spare padded lane"
        # TODO(synk): fall back to a separate radial operand if hidden % 128 == 0.

    n_pad = _round_up(max(n_nodes, 1), LANE)   # contraction dim of gather matmul
    g_pad = _round_up(max(num_graphs, 1), SUBLANE)
    fp_in = _round_up(in_nf, LANE)
    # Larger edge tiles amortize per-grid-step overhead; per-tile VMEM stays
    # small (<~1.5 MiB at 1024), safe on all generations including v7x.
    edge_tile = min(1024, _round_up(max(n_edges, 1), LANE))
    e_pad = _round_up(max(n_edges, 1), edge_tile)

    h_pad = jnp.zeros((n_pad, fp_in), jnp.float32).at[:n_nodes, :in_nf].set(
        x.astype(jnp.float32))

    row = edge_index[0].astype(jnp.int32)
    col = edge_index[1].astype(jnp.int32)
    if no_3D:
        radial = jnp.zeros((n_edges, 1), jnp.float32)
    else:
        diff = pos[row] - pos[col]                 # tiny (E,3) gather in XLA
        radial = jnp.sum(diff * diff, axis=1, keepdims=True).astype(jnp.float32)

    # Layer-1 edge stream: narrow (E, 16) bf16, radial folded in column `e_in`.
    e_in = edge_attr.shape[1]
    e0_dim = params['layers'][0]['ew1e'].shape[0]
    eattr0 = jnp.zeros((e_pad, e0_dim), jnp.float32)
    eattr0 = eattr0.at[:n_edges, :e_in].set(edge_attr.astype(jnp.float32))
    eattr0 = eattr0.at[:n_edges, e_in:e_in + 1].set(radial)
    eattr0 = eattr0.astype(jnp.bfloat16)

    pad_idx = jnp.full((e_pad - n_edges,), -1, jnp.int32)   # -1 => one-hot of 0s
    row_p = jnp.concatenate([row, pad_idx])
    colsh_p = jnp.concatenate([col + n_pad, pad_idx])       # pre-shifted col ids
    row_el = row_p.reshape(e_pad, 1)
    colsh_el = colsh_p.reshape(e_pad, 1)
    row_le = row_p.reshape(1, e_pad)

    batch_le = jnp.full((1, n_pad), -1, jnp.int32).at[0, :n_nodes].set(
        batch_index.astype(jnp.int32))

    n_layers = len(params['layers'])
    h_cur, eattr_cur = h_pad, eattr0
    radial_col = e_in
    graph_feat_pad = None
    for li, lp in enumerate(params['layers']):
        is_last = li == n_layers - 1
        outs = _egnn_layer_call(
            h_cur, row_el, colsh_el, row_le, eattr_cur, batch_le, lp,
            residual=(li > 0), pool=is_last, hidden=hidden,
            radial_col=radial_col, pack_radial=(not no_3D) and (not is_last),
            num_graphs_pad=g_pad, edge_tile=edge_tile)
        if is_last:
            h_cur, graph_feat_pad = outs
        else:
            eattr_cur, h_cur = outs
            radial_col = hidden

    h_out = h_cur[:n_nodes, :output_dim]
    graph_features = graph_feat_pad[:num_graphs, :output_dim]
    # append_noise=False (module default) -> no noise-embedding concat.
    return graph_features, h_out, batch_index


# ---------------------------------------------------------------------------
# Parameter init (PyTorch nn.Linear-style on true shapes) + pad/split/cast
# ---------------------------------------------------------------------------
def _linear_params(key, fan_in, fan_out):
    kw, kb = jax.random.split(key)
    bound = 1.0 / math.sqrt(fan_in)
    w = jax.random.uniform(kw, (fan_in, fan_out), jnp.float32, -bound, bound)
    b = jax.random.uniform(kb, (fan_out,), jnp.float32, -bound, bound)
    return w, b


def _pad2(a, rows, cols):
    return jnp.pad(a, ((0, rows - a.shape[0]), (0, cols - a.shape[1])))


def init_params(key, *, input_nf=45, edges_in_d=5, output_dim=64,
                N_layers=2, no_3D=False):
    hidden = output_dim
    hp = _round_up(hidden, LANE)
    op = _round_up(output_dim, LANE)
    coord_nf = 0 if no_3D else 1
    bf = jnp.bfloat16
    layers = []
    in_nf, e_in = input_nf, edges_in_d
    for li in range(N_layers):
        key, k1, k2, k3, k4 = jax.random.split(key, 5)
        fp_in = _round_up(in_nf, LANE)
        if li == 0:
            e_dim = _round_up(e_in + 1, 16)   # narrow attr stream (+ radial col)
            radial_row = e_in
        else:
            e_dim = hp                         # prev efeat, radial at lane `hidden`
            radial_row = hidden
        edge_in_dim = 2 * in_nf + coord_nf + e_in
        ew1, eb1 = _linear_params(k1, edge_in_dim, hidden)
        ew2, eb2 = _linear_params(k2, hidden, hidden)
        nw1, nb1 = _linear_params(k3, hidden + in_nf, hidden)
        nw2, nb2 = _linear_params(k4, hidden, output_dim)
        # split edge-W1 row blocks: [h_row | h_col | radial | edge_attr]
        w1a = ew1[:in_nf]
        w1b = ew1[in_nf:2 * in_nf]
        w1r = ew1[2 * in_nf:2 * in_nf + coord_nf]
        w1e = ew1[2 * in_nf + coord_nf:]
        w1e_packed = jnp.zeros((e_dim, hidden), jnp.float32).at[:e_in].set(w1e)
        if coord_nf:
            w1e_packed = w1e_packed.at[radial_row:radial_row + 1].set(w1r)
        # split node-W1 row blocks: [h | agg]
        nw1h, nw1a = nw1[:in_nf], nw1[in_nf:]
        bias = jnp.zeros((8, hp), jnp.float32)
        bias = bias.at[0, :hidden].set(eb1)
        bias = bias.at[1, :hidden].set(eb2)
        bias = bias.at[2, :hidden].set(nb1)
        bias = bias.at[3, :output_dim].set(nb2)
        layers.append(dict(
            ew1a=_pad2(w1a, fp_in, hp).astype(bf),
            ew1b=_pad2(w1b, fp_in, hp).astype(bf),
            ew1e=_pad2(w1e_packed, e_dim, hp).astype(bf),
            ew2=_pad2(ew2, hp, hp).astype(bf),
            nw1h=_pad2(nw1h, fp_in, hp).astype(bf),
            nw1a=_pad2(nw1a, hp, hp).astype(bf),
            nw2=_pad2(nw2, hp, op).astype(bf),
            bias=bias,
        ))
        in_nf, e_in = output_dim, hidden
    return {'layers': layers}


# ---------------------------------------------------------------------------
# Pure-JAX f32 reference (same packed/padded weights) for sanity check
# ---------------------------------------------------------------------------
def _reference_forward(params, x, edge_index, pos, edge_attr, batch_index,
                       *, num_graphs, output_dim, no_3D=False):
    f32 = lambda a: a.astype(jnp.float32)
    row, col = edge_index[0], edge_index[1]
    in_nf = x.shape[1]
    hidden = output_dim
    h = jnp.pad(x.astype(jnp.float32),
                ((0, 0), (0, _round_up(in_nf, LANE) - in_nf)))
    if no_3D:
        radial = jnp.zeros((edge_attr.shape[0], 1), jnp.float32)
    else:
        d = pos[row] - pos[col]
        radial = jnp.sum(d * d, axis=1, keepdims=True)
    e_in = edge_attr.shape[1]
    e0 = params['layers'][0]['ew1e'].shape[0]
    ea = jnp.zeros((edge_attr.shape[0], e0), jnp.float32)
    ea = ea.at[:, :e_in].set(edge_attr.astype(jnp.float32))
    ea = ea.at[:, e_in:e_in + 1].set(radial)
    for li, lp in enumerate(params['layers']):
        b = lp['bias']
        hr, hc = h[row], h[col]
        pre1 = (hr @ f32(lp['ew1a']) + hc @ f32(lp['ew1b'])
                + ea @ f32(lp['ew1e']) + b[0:1])
        ef = jax.nn.silu(jax.nn.silu(pre1) @ f32(lp['ew2']) + b[1:2])
        agg = jax.ops.segment_sum(ef, row, num_segments=h.shape[0])
        pre = h @ f32(lp['nw1h']) + agg @ f32(lp['nw1a']) + b[2:3]
        y = jax.nn.silu(pre) @ f32(lp['nw2']) + b[3:4]
        if li > 0:
            y = y + h
        h = y
        ea = ef if no_3D else ef.at[:, hidden:hidden + 1].set(radial)
    gf = jax.ops.segment_sum(h, batch_index, num_segments=num_graphs)
    return gf[:, :output_dim], h[:, :output_dim]


# ---------------------------------------------------------------------------
# Example run
# ---------------------------------------------------------------------------
if __name__ == "__main__":
    key = jax.random.PRNGKey(0)
    k_params, k_x, k_pos, k_ea, k_ei = jax.random.split(key, 5)

    INPUT_NF, EDGES_IN_D, OUTPUT_DIM, N_LAYERS = 45, 5, 64, 2
    N_NODES, N_EDGES, N_GRAPHS = 16, 32, 4

    params = init_params(k_params, input_nf=INPUT_NF, edges_in_d=EDGES_IN_D,
                         output_dim=OUTPUT_DIM, N_layers=N_LAYERS)

    x = jax.random.normal(k_x, (N_NODES, INPUT_NF), jnp.float32)
    pos = jax.random.normal(k_pos, (N_NODES, 3), jnp.float32)
    edge_attr = jax.random.normal(k_ea, (N_EDGES, EDGES_IN_D), jnp.float32)
    edge_index = jax.random.randint(k_ei, (2, N_EDGES), 0, N_NODES, jnp.int32)
    batch_index = jnp.repeat(jnp.arange(N_GRAPHS, dtype=jnp.int32),
                             N_NODES // N_GRAPHS)

    fwd = jax.jit(lambda p, xx, ei, pp, ea, bi:
                  fragment_library_encoder_forward(
                      p, xx, ei, pp, ea, bi,
                      num_graphs=N_GRAPHS, output_dim=OUTPUT_DIM))

    graph_features, h, b_idx = fwd(params, x, edge_index, pos, edge_attr,
                                   batch_index)
    jax.block_until_ready((graph_features, h, b_idx))

    assert graph_features.shape == (N_GRAPHS, OUTPUT_DIM)
    assert h.shape == (N_NODES, OUTPUT_DIM)
    assert b_idx.shape == (N_NODES,)
    assert bool(jnp.all(jnp.isfinite(graph_features)))
    assert bool(jnp.all(jnp.isfinite(h)))

    # loose sanity check vs f32 reference (kernel uses bf16 MXU inputs)
    gf_ref, h_ref = _reference_forward(params, x, edge_index, pos, edge_attr,
                                       batch_index, num_graphs=N_GRAPHS,
                                       output_dim=OUTPUT_DIM)
    err = max(float(jnp.max(jnp.abs(graph_features - gf_ref))),
              float(jnp.max(jnp.abs(h - h_ref))))
    assert err < 0.5, f"max abs error vs f32 reference too large: {err}"

    print("KERNEL_OK")
</pallas_src>

<mosaic_0001>
module attributes {stable_mosaic.version = 11 : i64} {
  func.func @_egnn_layer_kernel(%arg0: i32, %arg1: memref<128x128xf32, #tpu.memory_space<vmem>>, %arg2: memref<128x1xi32, #tpu.memory_space<vmem>>, %arg3: memref<128x1xi32, #tpu.memory_space<vmem>>, %arg4: memref<1x128xi32, #tpu.memory_space<vmem>>, %arg5: memref<128x16xbf16, #tpu.memory_space<vmem>>, %arg6: memref<1x128xi32, #tpu.memory_space<vmem>>, %arg7: memref<128x128xbf16, #tpu.memory_space<vmem>>, %arg8: memref<128x128xbf16, #tpu.memory_space<vmem>>, %arg9: memref<16x128xbf16, #tpu.memory_space<vmem>>, %arg10: memref<128x128xbf16, #tpu.memory_space<vmem>>, %arg11: memref<128x128xbf16, #tpu.memory_space<vmem>>, %arg12: memref<128x128xbf16, #tpu.memory_space<vmem>>, %arg13: memref<128x128xbf16, #tpu.memory_space<vmem>>, %arg14: memref<8x128xf32, #tpu.memory_space<vmem>>, %arg15: memref<128x128xbf16, #tpu.memory_space<vmem>>, %arg16: memref<128x128xf32, #tpu.memory_space<vmem>>, %arg17: memref<128x128xf32, #tpu.memory_space<vmem>>, %arg18: memref<256x128xbf16, #tpu.memory_space<vmem>>) attributes {dimension_semantics = [#tpu.dimension_semantics<arbitrary>], iteration_bounds = array<i64: 1>, scalar_prefetch = 0 : i64, scratch_operands = 2 : i64, tpu.core_type = #tpu.core_type<tc>, window_params = [{pipeline_mode = #tpu.pipeline_mode<synchronous>, transform_indices = @transform_0, window_bounds = array<i64: 128, 128>}, {transform_indices = @transform_1, window_bounds = array<i64: 128, 1>}, {transform_indices = @transform_2, window_bounds = array<i64: 128, 1>}, {transform_indices = @transform_3, window_bounds = array<i64: 1, 128>}, {transform_indices = @transform_4, window_bounds = array<i64: 128, 16>}, {pipeline_mode = #tpu.pipeline_mode<synchronous>, transform_indices = @transform_5, window_bounds = array<i64: 1, 128>}, {pipeline_mode = #tpu.pipeline_mode<synchronous>, transform_indices = @transform_6, window_bounds = array<i64: 128, 128>}, {pipeline_mode = #tpu.pipeline_mode<synchronous>, transform_indices = @transform_7, window_bounds = array<i64: 128, 128>}, {pipeline_mode = #tpu.pipeline_mode<synchronous>, transform_indices = @transform_8, window_bounds = array<i64: 16, 128>}, {pipeline_mode = #tpu.pipeline_mode<synchronous>, transform_indices = @transform_9, window_bounds = array<i64: 128, 128>}, {pipeline_mode = #tpu.pipeline_mode<synchronous>, transform_indices = @transform_10, window_bounds = array<i64: 128, 128>}, {pipeline_mode = #tpu.pipeline_mode<synchronous>, transform_indices = @transform_11, window_bounds = array<i64: 128, 128>}, {pipeline_mode = #tpu.pipeline_mode<synchronous>, transform_indices = @transform_12, window_bounds = array<i64: 128, 128>}, {pipeline_mode = #tpu.pipeline_mode<synchronous>, transform_indices = @transform_13, window_bounds = array<i64: 8, 128>}, {transform_indices = @transform_14, window_bounds = array<i64: 128, 128>}, {pipeline_mode = #tpu.pipeline_mode<synchronous>, transform_indices = @transform_15, window_bounds = array<i64: 128, 128>}]} {
    %c0 = arith.constant 0 : index
    %c0_0 = arith.constant 0 : index
    %0 = vector.load %arg14[%c0, %c0_0] : memref<8x128xf32, #tpu.memory_space<vmem>>, vector<8x128xf32>
    %1 = vector.extract_strided_slice %0 {offsets = [0, 0], sizes = [1, 128], strides = [1, 1]} : vector<8x128xf32> to vector<1x128xf32>
    %2 = vector.extract_strided_slice %0 {offsets = [1, 0], sizes = [1, 128], strides = [1, 1]} : vector<8x128xf32> to vector<1x128xf32>
    %3 = vector.extract_strided_slice %0 {offsets = [2, 0], sizes = [1, 128], strides = [1, 1]} : vector<8x128xf32> to vector<1x128xf32>
    %4 = vector.extract_strided_slice %0 {offsets = [3, 0], sizes = [1, 128], strides = [1, 1]} : vector<8x128xf32> to vector<1x128xf32>
    %c0_i32 = arith.constant 0 : i32
    %5 = arith.cmpi eq, %arg0, %c0_i32 : i32
    %6 = arith.extui %5 : i1 to i32
    %c0_i32_1 = arith.constant 0 : i32
    %7 = arith.cmpi ne, %6, %c0_i32_1 : i32
    scf.if %7 {
      %cst_29 = arith.constant 0.000000e+00 : f32
      %69 = vector.broadcast %cst_29 : f32 to vector<128x128xf32>
      %c0_30 = arith.constant 0 : index
      %c0_31 = arith.constant 0 : index
      %70 = vector.load %arg17[%c0_30, %c0_31] : memref<128x128xf32, #tpu.memory_space<vmem>>, vector<128x128xf32>
      tpu.vector_store %arg17[%c0_30, %c0_31], %69 {strides = array<i32>} : memref<128x128xf32, #tpu.memory_space<vmem>>, vector<128x128xf32>,
      %c0_32 = arith.constant 0 : index
      %c0_33 = arith.constant 0 : index
      %71 = vector.load %arg1[%c0_32, %c0_33] : memref<128x128xf32, #tpu.memory_space<vmem>>, vector<128x128xf32>
      %72 = arith.truncf %71 : vector<128x128xf32> to vector<128x128xbf16>
      %c0_34 = arith.constant 0 : index
      %c0_35 = arith.constant 0 : index
      %73 = vector.load %arg7[%c0_34, %c0_35] : memref<128x128xbf16, #tpu.memory_space<vmem>>, vector<128x128xbf16>
      %cst_36 = arith.constant dense<0.000000e+00> : vector<128x128xf32>
      %74 = tpu.matmul %72, %73, %cst_36 {dimension_numbers = #tpu.dot_dimension_numbers<[1], [0], [0], [1], [0, 0, 1, 1], [], []>} : vector<128x128xbf16>, vector<128x128xbf16>, vector<128x128xf32> -> vector<128x128xf32>
      %75 = arith.truncf %74 : vector<128x128xf32> to vector<128x128xbf16>
      %c0_37 = arith.constant 0 : index
      %c0_38 = arith.constant 0 : index
      %76 = vector.load %arg18[%c0_37, %c0_38] : memref<256x128xbf16, #tpu.memory_space<vmem>>, vector<128x128xbf16>
      tpu.vector_store %arg18[%c0_37, %c0_38], %75 {strides = array<i32>} : memref<256x128xbf16, #tpu.memory_space<vmem>>, vector<128x128xbf16>,
      %c0_39 = arith.constant 0 : index
      %c0_40 = arith.constant 0 : index
      %77 = vector.load %arg8[%c0_39, %c0_40] : memref<128x128xbf16, #tpu.memory_space<vmem>>, vector<128x128xbf16>
      %cst_41 = arith.constant dense<0.000000e+00> : vector<128x128xf32>
      %78 = tpu.matmul %72, %77, %cst_41 {dimension_numbers = #tpu.dot_dimension_numbers<[1], [0], [0], [1], [0, 0, 1, 1], [], []>} : vector<128x128xbf16>, vector<128x128xbf16>, vector<128x128xf32> -> vector<128x128xf32>
      %79 = arith.truncf %78 : vector<128x128xf32> to vector<128x128xbf16>
      %c128 = arith.constant 128 : index
      %c0_42 = arith.constant 0 : index
      %80 = vector.load %arg18[%c128, %c0_42] : memref<256x128xbf16, #tpu.memory_space<vmem>>, vector<128x128xbf16>
      tpu.vector_store %arg18[%c128, %c0_42], %79 {strides = array<i32>} : memref<256x128xbf16, #tpu.memory_space<vmem>>, vector<128x128xbf16>,
    } else {
    }
    %8 = tpu.iota {dimensions = array<i32: 1>} : vector<128x256xi32>
    %c0_2 = arith.constant 0 : index
    %c0_3 = arith.constant 0 : index
    %9 = vector.load %arg2[%c0_2, %c0_3] : memref<128x1xi32, #tpu.memory_space<vmem>>, vector<128x1xi32>
    %10 = vector.broadcast %9 : vector<128x1xi32> to vector<128x256xi32>
    %11 = arith.cmpi eq, %8, %10 : vector<128x256xi32>
    %c0_4 = arith.constant 0 : index
    %c0_5 = arith.constant 0 : index
    %12 = vector.load %arg3[%c0_4, %c0_5] : memref<128x1xi32, #tpu.memory_space<vmem>>, vector<128x1xi32>
    %13 = vector.broadcast %12 : vector<128x1xi32> to vector<128x256xi32>
    %14 = arith.cmpi eq, %8, %13 : vector<128x256xi32>
    %15 = arith.ori %11, %14 : vector<128x256xi1>
    %16 = arith.extui %15 : vector<128x256xi1> to vector<128x256xi32>
    %17 = arith.sitofp %16 : vector<128x256xi32> to vector<128x256xf32>
    %18 = arith.truncf %17 : vector<128x256xf32> to vector<128x256xbf16>
    %c0_6 = arith.constant 0 : index
    %c0_7 = arith.constant 0 : index
    %19 = vector.load %arg5[%c0_6, %c0_7] : memref<128x16xbf16, #tpu.memory_space<vmem>>, vector<128x16xbf16>
    %c0_8 = arith.constant 0 : index
    %c0_9 = arith.constant 0 : index
    %20 = vector.load %arg18[%c0_8, %c0_9] : memref<256x128xbf16, #tpu.memory_space<vmem>>, vector<256x128xbf16>
    %cst = arith.constant dense<0.000000e+00> : vector<128x128xf32>
    %21 = tpu.matmul %18, %20, %cst {dimension_numbers = #tpu.dot_dimension_numbers<[1], [0], [0], [1], [0, 0, 1, 1], [], []>} : vector<128x256xbf16>, vector<256x128xbf16>, vector<128x128xf32> -> vector<128x128xf32>
    %c0_10 = arith.constant 0 : index
    %c0_11 = arith.constant 0 : index
    %22 = vector.load %arg9[%c0_10, %c0_11] : memref<16x128xbf16, #tpu.memory_space<vmem>>, vector<16x128xbf16>
    %cst_12 = arith.constant dense<0.000000e+00> : vector<128x128xf32>
    %23 = tpu.matmul %19, %22, %cst_12 {dimension_numbers = #tpu.dot_dimension_numbers<[1], [0], [0], [1], [0, 0, 1, 1], [], []>} : vector<128x16xbf16>, vector<16x128xbf16>, vector<128x128xf32> -> vector<128x128xf32>
    %24 = arith.addf %21, %23 : vector<128x128xf32>
    %25 = vector.broadcast %1 : vector<1x128xf32> to vector<128x128xf32>
    %26 = arith.addf %24, %25 : vector<128x128xf32>
    %27 = arith.negf %26 : vector<128x128xf32>
    %28 = math.exp %27 : vector<128x128xf32>
    %cst_13 = arith.constant 1.000000e+00 : f32
    %29 = vector.broadcast %cst_13 : f32 to vector<128x128xf32>
    %30 = arith.addf %29, %28 : vector<128x128xf32>
    %31 = arith.divf %29, %30 : vector<128x128xf32>
    %32 = arith.mulf %26, %31 : vector<128x128xf32>
    %33 = arith.truncf %32 : vector<128x128xf32> to vector<128x128xbf16>
    %c0_14 = arith.constant 0 : index
    %c0_15 = arith.constant 0 : index
    %34 = vector.load %arg10[%c0_14, %c0_15] : memref<128x128xbf16, #tpu.memory_space<vmem>>, vector<128x128xbf16>
    %cst_16 = arith.constant dense<0.000000e+00> : vector<128x128xf32>
    %35 = tpu.matmul %33, %34, %cst_16 {dimension_numbers = #tpu.dot_dimension_numbers<[1], [0], [0], [1], [0, 0, 1, 1], [], []>} : vector<128x128xbf16>, vector<128x128xbf16>, vector<128x128xf32> -> vector<128x128xf32>
    %36 = vector.broadcast %2 : vector<1x128xf32> to vector<128x128xf32>
    %37 = arith.addf %35, %36 : vector<128x128xf32>
    %38 = arith.negf %37 : vector<128x128xf32>
    %39 = math.exp %38 : vector<128x128xf32>
    %cst_17 = arith.constant 1.000000e+00 : f32
    %40 = vector.broadcast %cst_17 : f32 to vector<128x128xf32>
    %41 = arith.addf %40, %39 : vector<128x128xf32>
    %42 = arith.divf %40, %41 : vector<128x128xf32>
    %43 = arith.mulf %37, %42 : vector<128x128xf32>
    %44 = arith.truncf %43 : vector<128x128xf32> to vector<128x128xbf16>
    %c0_18 = arith.constant 0 : index
    %c0_19 = arith.constant 0 : index
    %45 = vector.load %arg4[%c0_18, %c0_19] : memref<1x128xi32, #tpu.memory_space<vmem>>, vector<1x128xi32>
    %46 = tpu.iota {dimensions = array<i32: 0>} : vector<128x128xi32>
    %47 = vector.broadcast %45 : vector<1x128xi32> to vector<128x128xi32>
    %48 = arith.cmpi eq, %47, %46 : vector<128x128xi32>
    %49 = arith.extui %48 : vector<128x128xi1> to vector<128x128xi32>
    %50 = arith.sitofp %49 : vector<128x128xi32> to vector<128x128xf32>
    %51 = arith.truncf %50 : vector<128x128xf32> to vector<128x128xbf16>
    %c0_20 = arith.constant 0 : index
    %c0_21 = arith.constant 0 : index
    %52 = vector.load %arg17[%c0_20, %c0_21] : memref<128x128xf32, #tpu.memory_space<vmem>>, vector<128x128xf32>
    %cst_22 = arith.constant dense<0.000000e+00> : vector<128x128xf32>
    %53 = tpu.matmul %51, %44, %cst_22 {dimension_numbers = #tpu.dot_dimension_numbers<[1], [0], [0], [1], [0, 0, 1, 1], [], []>} : vector<128x128xbf16>, vector<128x128xbf16>, vector<128x128xf32> -> vector<128x128xf32>
    %54 = arith.addf %52, %53 : vector<128x128xf32>
    %c0_23 = arith.constant 0 : index
    %c0_24 = arith.constant 0 : index
    %55 = vector.load %arg17[%c0_23, %c0_24] : memref<128x128xf32, #tpu.memory_space<vmem>>, vector<128x128xf32>
    tpu.vector_store %arg17[%c0_23, %c0_24], %54 {strides = array<i32>} : memref<128x128xf32, #tpu.memory_space<vmem>>, vector<128x128xf32>,
    %56 = vector.extract_strided_slice %19 {offsets = [0, 5], sizes = [128, 1], strides = [1, 1]} : vector<128x16xbf16> to vector<128x1xbf16>
    %57 = tpu.iota {dimensions = array<i32: 1>} : vector<1x128xi32>
    %c64_i32 = arith.constant 64 : i32
    %58 = vector.broadcast %c64_i32 : i32 to vector<1x128xi32>
    %59 = arith.cmpi eq, %57, %58 : vector<1x128xi32>
    %60 = vector.shape_cast %59 : vector<1x128xi1> to vector<1x128xi1>
    %61 = vector.broadcast %60 : vector<1x128xi1> to vector<128x128xi1>
    %62 = vector.shape_cast %56 : vector<128x1xbf16> to vector<128x1xbf16>
    %63 = vector.broadcast %62 : vector<128x1xbf16> to vector<128x128xbf16>
    %64 = arith.select %61, %63, %44 : vector<128x128xi1>, vector<128x128xbf16>
    %c0_25 = arith.constant 0 : index
    %c0_26 = arith.constant 0 : index
    %65 = vector.load %arg15[%c0_25, %c0_26] : memref<128x128xbf16, #tpu.memory_space<vmem>>, vector<128x128xbf16>
    tpu.vector_store %arg15[%c0_25, %c0_26], %64 {strides = array<i32>} : memref<128x128xbf16, #tpu.memory_space<vmem>>, vector<128x128xbf16>,
    %c0_i32_27 = arith.constant 0 : i32
    %66 = arith.cmpi eq, %arg0, %c0_i32_27 : i32
    %67 = arith.extui %66 : i1 to i32
    %c0_i32_28 = arith.constant 0 : i32
    %68 = arith.cmpi ne, %67, %c0_i32_28 : i32
    scf.if %68 {
      %c0_29 = arith.constant 0 : index
      %c0_30 = arith.constant 0 : index
      %69 = vector.load %arg1[%c0_29, %c0_30] : memref<128x128xf32, #tpu.memory_space<vmem>>, vector<128x128xf32>
      %70 = arith.truncf %69 : vector<128x128xf32> to vector<128x128xbf16>
      %c0_31 = arith.constant 0 : index
      %c0_32 = arith.constant 0 : index
      %71 = vector.load %arg11[%c0_31, %c0_32] : memref<128x128xbf16, #tpu.memory_space<vmem>>, vector<128x128xbf16>
      %cst_33 = arith.constant dense<0.000000e+00> : vector<128x128xf32>
      %72 = tpu.matmul %70, %71, %cst_33 {dimension_numbers = #tpu.dot_dimension_numbers<[1], [0], [0], [1], [0, 0, 1, 1], [], []>} : vector<128x128xbf16>, vector<128x128xbf16>, vector<128x128xf32> -> vector<128x128xf32>
      %c0_34 = arith.constant 0 : index
      %c0_35 = arith.constant 0 : index
      %73 = vector.load %arg17[%c0_34, %c0_35] : memref<128x128xf32, #tpu.memory_space<vmem>>, vector<128x128xf32>
      %74 = arith.truncf %73 : vector<128x128xf32> to vector<128x128xbf16>
      %c0_36 = arith.constant 0 : index
      %c0_37 = arith.constant 0 : index
      %75 = vector.load %arg12[%c0_36, %c0_37] : memref<128x128xbf16, #tpu.memory_space<vmem>>, vector<128x128xbf16>
      %cst_38 = arith.constant dense<0.000000e+00> : vector<128x128xf32>
      %76 = tpu.matmul %74, %75, %cst_38 {dimension_numbers = #tpu.dot_dimension_numbers<[1], [0], [0], [1], [0, 0, 1, 1], [], []>} : vector<128x128xbf16>, vector<128x128xbf16>, vector<128x128xf32> -> vector<128x128xf32>
      %77 = arith.addf %72, %76 : vector<128x128xf32>
      %78 = vector.broadcast %3 : vector<1x128xf32> to vector<128x128xf32>
      %79 = arith.addf %77, %78 : vector<128x128xf32>
      %80 = arith.negf %79 : vector<128x128xf32>
      %81 = math.exp %80 : vector<128x128xf32>
      %cst_39 = arith.constant 1.000000e+00 : f32
      %82 = vector.broadcast %cst_39 : f32 to vector<128x128xf32>
      %83 = arith.addf %82, %81 : vector<128x128xf32>
      %84 = arith.divf %82, %83 : vector<128x128xf32>
      %85 = arith.mulf %79, %84 : vector<128x128xf32>
      %86 = arith.truncf %85 : vector<128x128xf32> to vector<128x128xbf16>
      %c0_40 = arith.constant 0 : index
      %c0_41 = arith.constant 0 : index
      %87 = vector.load %arg13[%c0_40, %c0_41] : memref<128x128xbf16, #tpu.memory_space<vmem>>, vector<128x128xbf16>
      %cst_42 = arith.constant dense<0.000000e+00> : vector<128x128xf32>
      %88 = tpu.matmul %86, %87, %cst_42 {dimension_numbers = #tpu.dot_dimension_numbers<[1], [0], [0], [1], [0, 0, 1, 1], [], []>} : vector<128x128xbf16>, vector<128x128xbf16>, vector<128x128xf32> -> vector<128x128xf32>
      %89 = vector.broadcast %4 : vector<1x128xf32> to vector<128x128xf32>
      %90 = arith.addf %88, %89 : vector<128x128xf32>
      %c0_43 = arith.constant 0 : index
      %c0_44 = arith.constant 0 : index
      %91 = vector.load %arg16[%c0_43, %c0_44] : memref<128x128xf32, #tpu.memory_space<vmem>>, vector<128x128xf32>
      tpu.vector_store %arg16[%c0_43, %c0_44], %90 {strides = array<i32>} : memref<128x128xf32, #tpu.memory_space<vmem>>, vector<128x128xf32>,
    } else {
    }
    return
  }
  func.func @transform_0(%arg0: i32) -> (i32, i32) {
    %c0_i32 = arith.constant 0 : i32
    %c0_i32_0 = arith.constant 0 : i32
    %c0_i32_1 = arith.constant 0 : i32
    return %c0_i32, %c0_i32_0 : i32, i32
  }
  func.func @transform_1(%arg0: i32) -> (i32, i32) {
    %c0_i32 = arith.constant 0 : i32
    %c0_i32_0 = arith.constant 0 : i32
    return %arg0, %c0_i32 : i32, i32
  }
  func.func @transform_2(%arg0: i32) -> (i32, i32) {
    %c0_i32 = arith.constant 0 : i32
    %c0_i32_0 = arith.constant 0 : i32
    return %arg0, %c0_i32 : i32, i32
  }
  func.func @transform_3(%arg0: i32) -> (i32, i32) {
    %c0_i32 = arith.constant 0 : i32
    %c0_i32_0 = arith.constant 0 : i32
    return %c0_i32, %arg0 : i32, i32
  }
  func.func @transform_4(%arg0: i32) -> (i32, i32) {
    %c0_i32 = arith.constant 0 : i32
    %c0_i32_0 = arith.constant 0 : i32
    return %arg0, %c0_i32 : i32, i32
  }
  func.func @transform_5(%arg0: i32) -> (i32, i32) {
    %c0_i32 = arith.constant 0 : i32
    %c0_i32_0 = arith.constant 0 : i32
    %c0_i32_1 = arith.constant 0 : i32
    return %c0_i32, %c0_i32_0 : i32, i32
  }
  func.func @transform_6(%arg0: i32) -> (i32, i32) {
    %c0_i32 = arith.constant 0 : i32
    %c0_i32_0 = arith.constant 0 : i32
    %c0_i32_1 = arith.constant 0 : i32
    return %c0_i32, %c0_i32_0 : i32, i32
  }
  func.func @transform_7(%arg0: i32) -> (i32, i32) {
    %c0_i32 = arith.constant 0 : i32
    %c0_i32_0 = arith.constant 0 : i32
    %c0_i32_1 = arith.constant 0 : i32
    return %c0_i32, %c0_i32_0 : i32, i32
  }
  func.func @transform_8(%arg0: i32) -> (i32, i32) {
    %c0_i32 = arith.constant 0 : i32
    %c0_i32_0 = arith.constant 0 : i32
    %c0_i32_1 = arith.constant 0 : i32
    return %c0_i32, %c0_i32_0 : i32, i32
  }
  func.func @transform_9(%arg0: i32) -> (i32, i32) {
    %c0_i32 = arith.constant 0 : i32
    %c0_i32_0 = arith.constant 0 : i32
    %c0_i32_1 = arith.constant 0 : i32
    return %c0_i32, %c0_i32_0 : i32, i32
  }
  func.func @transform_10(%arg0: i32) -> (i32, i32) {
    %c0_i32 = arith.constant 0 : i32
    %c0_i32_0 = arith.constant 0 : i32
    %c0_i32_1 = arith.constant 0 : i32
    return %c0_i32, %c0_i32_0 : i32, i32
  }
  func.func @transform_11(%arg0: i32) -> (i32, i32) {
    %c0_i32 = arith.constant 0 : i32
    %c0_i32_0 = arith.constant 0 : i32
    %c0_i32_1 = arith.constant 0 : i32
    return %c0_i32, %c0_i32_0 : i32, i32
  }
  func.func @transform_12(%arg0: i32) -> (i32, i32) {
    %c0_i32 = arith.constant 0 : i32
    %c0_i32_0 = arith.constant 0 : i32
    %c0_i32_1 = arith.constant 0 : i32
    return %c0_i32, %c0_i32_0 : i32, i32
  }
  func.func @transform_13(%arg0: i32) -> (i32, i32) {
    %c0_i32 = arith.constant 0 : i32
    %c0_i32_0 = arith.constant 0 : i32
    %c0_i32_1 = arith.constant 0 : i32
    return %c0_i32, %c0_i32_0 : i32, i32
  }
  func.func @transform_14(%arg0: i32) -> (i32, i32) {
    %c0_i32 = arith.constant 0 : i32
    %c0_i32_0 = arith.constant 0 : i32
    return %arg0, %c0_i32 : i32, i32
  }
  func.func @transform_15(%arg0: i32) -> (i32, i32) {
    %c0_i32 = arith.constant 0 : i32
    %c0_i32_0 = arith.constant 0 : i32
    %c0_i32_1 = arith.constant 0 : i32
    return %c0_i32, %c0_i32_0 : i32, i32
  }
}

module attributes {stable_mosaic.version = 11 : i64} {
  func.func @_egnn_layer_kernel(%arg0: i32, %arg1: memref<128x128xf32, #tpu.memory_space<vmem>>, %arg2: memref<128x1xi32, #tpu.memory_space<vmem>>, %arg3: memref<128x1xi32, #tpu.memory_space<vmem>>, %arg4: memref<1x128xi32, #tpu.memory_space<vmem>>, %arg5: memref<128x128xbf16, #tpu.memory_space<vmem>>, %arg6: memref<1x128xi32, #tpu.memory_space<vmem>>, %arg7: memref<128x128xbf16, #tpu.memory_space<vmem>>, %arg8: memref<128x128xbf16, #tpu.memory_space<vmem>>, %arg9: memref<128x128xbf16, #tpu.memory_space<vmem>>, %arg10: memref<128x128xbf16, #tpu.memory_space<vmem>>, %arg11: memref<128x128xbf16, #tpu.memory_space<vmem>>, %arg12: memref<128x128xbf16, #tpu.memory_space<vmem>>, %arg13: memref<128x128xbf16, #tpu.memory_space<vmem>>, %arg14: memref<8x128xf32, #tpu.memory_space<vmem>>, %arg15: memref<128x128xf32, #tpu.memory_space<vmem>>, %arg16: memref<8x128xf32, #tpu.memory_space<vmem>>, %arg17: memref<128x128xf32, #tpu.memory_space<vmem>>, %arg18: memref<256x128xbf16, #tpu.memory_space<vmem>>) attributes {dimension_semantics = [#tpu.dimension_semantics<arbitrary>], iteration_bounds = array<i64: 1>, scalar_prefetch = 0 : i64, scratch_operands = 2 : i64, tpu.core_type = #tpu.core_type<tc>, window_params = [{pipeline_mode = #tpu.pipeline_mode<synchronous>, transform_indices = @transform_0, window_bounds = array<i64: 128, 128>}, {transform_indices = @transform_1, window_bounds = array<i64: 128, 1>}, {transform_indices = @transform_2, window_bounds = array<i64: 128, 1>}, {transform_indices = @transform_3, window_bounds = array<i64: 1, 128>}, {transform_indices = @transform_4, window_bounds = array<i64: 128, 128>}, {pipeline_mode = #tpu.pipeline_mode<synchronous>, transform_indices = @transform_5, window_bounds = array<i64: 1, 128>}, {pipeline_mode = #tpu.pipeline_mode<synchronous>, transform_indices = @transform_6, window_bounds = array<i64: 128, 128>}, {pipeline_mode = #tpu.pipeline_mode<synchronous>, transform_indices = @transform_7, window_bounds = array<i64: 128, 128>}, {pipeline_mode = #tpu.pipeline_mode<synchronous>, transform_indices = @transform_8, window_bounds = array<i64: 128, 128>}, {pipeline_mode = #tpu.pipeline_mode<synchronous>, transform_indices = @transform_9, window_bounds = array<i64: 128, 128>}, {pipeline_mode = #tpu.pipeline_mode<synchronous>, transform_indices = @transform_10, window_bounds = array<i64: 128, 128>}, {pipeline_mode = #tpu.pipeline_mode<synchronous>, transform_indices = @transform_11, window_bounds = array<i64: 128, 128>}, {pipeline_mode = #tpu.pipeline_mode<synchronous>, transform_indices = @transform_12, window_bounds = array<i64: 128, 128>}, {pipeline_mode = #tpu.pipeline_mode<synchronous>, transform_indices = @transform_13, window_bounds = array<i64: 8, 128>}, {pipeline_mode = #tpu.pipeline_mode<synchronous>, transform_indices = @transform_14, window_bounds = array<i64: 128, 128>}, {pipeline_mode = #tpu.pipeline_mode<synchronous>, transform_indices = @transform_15, window_bounds = array<i64: 8, 128>}]} {
    %c0 = arith.constant 0 : index
    %c0_0 = arith.constant 0 : index
    %0 = vector.load %arg14[%c0, %c0_0] : memref<8x128xf32, #tpu.memory_space<vmem>>, vector<8x128xf32>
    %1 = vector.extract_strided_slice %0 {offsets = [0, 0], sizes = [1, 128], strides = [1, 1]} : vector<8x128xf32> to vector<1x128xf32>
    %2 = vector.extract_strided_slice %0 {offsets = [1, 0], sizes = [1, 128], strides = [1, 1]} : vector<8x128xf32> to vector<1x128xf32>
    %3 = vector.extract_strided_slice %0 {offsets = [2, 0], sizes = [1, 128], strides = [1, 1]} : vector<8x128xf32> to vector<1x128xf32>
    %4 = vector.extract_strided_slice %0 {offsets = [3, 0], sizes = [1, 128], strides = [1, 1]} : vector<8x128xf32> to vector<1x128xf32>
    %c0_i32 = arith.constant 0 : i32
    %5 = arith.cmpi eq, %arg0, %c0_i32 : i32
    %6 = arith.extui %5 : i1 to i32
    %c0_i32_1 = arith.constant 0 : i32
    %7 = arith.cmpi ne, %6, %c0_i32_1 : i32
    scf.if %7 {
      %cst_27 = arith.constant 0.000000e+00 : f32
      %59 = vector.broadcast %cst_27 : f32 to vector<128x128xf32>
      %c0_28 = arith.constant 0 : index
      %c0_29 = arith.constant 0 : index
      %60 = vector.load %arg17[%c0_28, %c0_29] : memref<128x128xf32, #tpu.memory_space<vmem>>, vector<128x128xf32>
      tpu.vector_store %arg17[%c0_28, %c0_29], %59 {strides = array<i32>} : memref<128x128xf32, #tpu.memory_space<vmem>>, vector<128x128xf32>,
      %c0_30 = arith.constant 0 : index
      %c0_31 = arith.constant 0 : index
      %61 = vector.load %arg1[%c0_30, %c0_31] : memref<128x128xf32, #tpu.memory_space<vmem>>, vector<128x128xf32>
      %62 = arith.truncf %61 : vector<128x128xf32> to vector<128x128xbf16>
      %c0_32 = arith.constant 0 : index
      %c0_33 = arith.constant 0 : index
      %63 = vector.load %arg7[%c0_32, %c0_33] : memref<128x128xbf16, #tpu.memory_space<vmem>>, vector<128x128xbf16>
      %cst_34 = arith.constant dense<0.000000e+00> : vector<128x128xf32>
      %64 = tpu.matmul %62, %63, %cst_34 {dimension_numbers = #tpu.dot_dimension_numbers<[1], [0], [0], [1], [0, 0, 1, 1], [], []>} : vector<128x128xbf16>, vector<128x128xbf16>, vector<128x128xf32> -> vector<128x128xf32>
      %65 = arith.truncf %64 : vector<128x128xf32> to vector<128x128xbf16>
      %c0_35 = arith.constant 0 : index
      %c0_36 = arith.constant 0 : index
      %66 = vector.load %arg18[%c0_35, %c0_36] : memref<256x128xbf16, #tpu.memory_space<vmem>>, vector<128x128xbf16>
      tpu.vector_store %arg18[%c0_35, %c0_36], %65 {strides = array<i32>} : memref<256x128xbf16, #tpu.memory_space<vmem>>, vector<128x128xbf16>,
      %c0_37 = arith.constant 0 : index
      %c0_38 = arith.constant 0 : index
      %67 = vector.load %arg8[%c0_37, %c0_38] : memref<128x128xbf16, #tpu.memory_space<vmem>>, vector<128x128xbf16>
      %cst_39 = arith.constant dense<0.000000e+00> : vector<128x128xf32>
      %68 = tpu.matmul %62, %67, %cst_39 {dimension_numbers = #tpu.dot_dimension_numbers<[1], [0], [0], [1], [0, 0, 1, 1], [], []>} : vector<128x128xbf16>, vector<128x128xbf16>, vector<128x128xf32> -> vector<128x128xf32>
      %69 = arith.truncf %68 : vector<128x128xf32> to vector<128x128xbf16>
      %c128 = arith.constant 128 : index
      %c0_40 = arith.constant 0 : index
      %70 = vector.load %arg18[%c128, %c0_40] : memref<256x128xbf16, #tpu.memory_space<vmem>>, vector<128x128xbf16>
      tpu.vector_store %arg18[%c128, %c0_40], %69 {strides = array<i32>} : memref<256x128xbf16, #tpu.memory_space<vmem>>, vector<128x128xbf16>,
    } else {
    }
    %8 = tpu.iota {dimensions = array<i32: 1>} : vector<128x256xi32>
    %c0_2 = arith.constant 0 : index
    %c0_3 = arith.constant 0 : index
    %9 = vector.load %arg2[%c0_2, %c0_3] : memref<128x1xi32, #tpu.memory_space<vmem>>, vector<128x1xi32>
    %10 = vector.broadcast %9 : vector<128x1xi32> to vector<128x256xi32>
    %11 = arith.cmpi eq, %8, %10 : vector<128x256xi32>
    %c0_4 = arith.constant 0 : index
    %c0_5 = arith.constant 0 : index
    %12 = vector.load %arg3[%c0_4, %c0_5] : memref<128x1xi32, #tpu.memory_space<vmem>>, vector<128x1xi32>
    %13 = vector.broadcast %12 : vector<128x1xi32> to vector<128x256xi32>
    %14 = arith.cmpi eq, %8, %13 : vector<128x256xi32>
    %15 = arith.ori %11, %14 : vector<128x256xi1>
    %16 = arith.extui %15 : vector<128x256xi1> to vector<128x256xi32>
    %17 = arith.sitofp %16 : vector<128x256xi32> to vector<128x256xf32>
    %18 = arith.truncf %17 : vector<128x256xf32> to vector<128x256xbf16>
    %c0_6 = arith.constant 0 : index
    %c0_7 = arith.constant 0 : index
    %19 = vector.load %arg5[%c0_6, %c0_7] : memref<128x128xbf16, #tpu.memory_space<vmem>>, vector<128x128xbf16>
    %c0_8 = arith.constant 0 : index
    %c0_9 = arith.constant 0 : index
    %20 = vector.load %arg18[%c0_8, %c0_9] : memref<256x128xbf16, #tpu.memory_space<vmem>>, vector<256x128xbf16>
    %cst = arith.constant dense<0.000000e+00> : vector<128x128xf32>
    %21 = tpu.matmul %18, %20, %cst {dimension_numbers = #tpu.dot_dimension_numbers<[1], [0], [0], [1], [0, 0, 1, 1], [], []>} : vector<128x256xbf16>, vector<256x128xbf16>, vector<128x128xf32> -> vector<128x128xf32>
    %c0_10 = arith.constant 0 : index
    %c0_11 = arith.constant 0 : index
    %22 = vector.load %arg9[%c0_10, %c0_11] : memref<128x128xbf16, #tpu.memory_space<vmem>>, vector<128x128xbf16>
    %cst_12 = arith.constant dense<0.000000e+00> : vector<128x128xf32>
    %23 = tpu.matmul %19, %22, %cst_12 {dimension_numbers = #tpu.dot_dimension_numbers<[1], [0], [0], [1], [0, 0, 1, 1], [], []>} : vector<128x128xbf16>, vector<128x128xbf16>, vector<128x128xf32> -> vector<128x128xf32>
    %24 = arith.addf %21, %23 : vector<128x128xf32>
    %25 = vector.broadcast %1 : vector<1x128xf32> to vector<128x128xf32>
    %26 = arith.addf %24, %25 : vector<128x128xf32>
    %27 = arith.negf %26 : vector<128x128xf32>
    %28 = math.exp %27 : vector<128x128xf32>
    %cst_13 = arith.constant 1.000000e+00 : f32
    %29 = vector.broadcast %cst_13 : f32 to vector<128x128xf32>
    %30 = arith.addf %29, %28 : vector<128x128xf32>
    %31 = arith.divf %29, %30 : vector<128x128xf32>
    %32 = arith.mulf %26, %31 : vector<128x128xf32>
    %33 = arith.truncf %32 : vector<128x128xf32> to vector<128x128xbf16>
    %c0_14 = arith.constant 0 : index
    %c0_15 = arith.constant 0 : index
    %34 = vector.load %arg10[%c0_14, %c0_15] : memref<128x128xbf16, #tpu.memory_space<vmem>>, vector<128x128xbf16>
    %cst_16 = arith.constant dense<0.000000e+00> : vector<128x128xf32>
    %35 = tpu.matmul %33, %34, %cst_16 {dimension_numbers = #tpu.dot_dimension_numbers<[1], [0], [0], [1], [0, 0, 1, 1], [], []>} : vector<128x128xbf16>, vector<128x128xbf16>, vector<128x128xf32> -> vector<128x128xf32>
    %36 = vector.broadcast %2 : vector<1x128xf32> to vector<128x128xf32>
    %37 = arith.addf %35, %36 : vector<128x128xf32>
    %38 = arith.negf %37 : vector<128x128xf32>
    %39 = math.exp %38 : vector<128x128xf32>
    %cst_17 = arith.constant 1.000000e+00 : f32
    %40 = vector.broadcast %cst_17 : f32 to vector<128x128xf32>
    %41 = arith.addf %40, %39 : vector<128x128xf32>
    %42 = arith.divf %40, %41 : vector<128x128xf32>
    %43 = arith.mulf %37, %42 : vector<128x128xf32>
    %44 = arith.truncf %43 : vector<128x128xf32> to vector<128x128xbf16>
    %c0_18 = arith.constant 0 : index
    %c0_19 = arith.constant 0 : index
    %45 = vector.load %arg4[%c0_18, %c0_19] : memref<1x128xi32, #tpu.memory_space<vmem>>, vector<1x128xi32>
    %46 = tpu.iota {dimensions = array<i32: 0>} : vector<128x128xi32>
    %47 = vector.broadcast %45 : vector<1x128xi32> to vector<128x128xi32>
    %48 = arith.cmpi eq, %47, %46 : vector<128x128xi32>
    %49 = arith.extui %48 : vector<128x128xi1> to vector<128x128xi32>
    %50 = arith.sitofp %49 : vector<128x128xi32> to vector<128x128xf32>
    %51 = arith.truncf %50 : vector<128x128xf32> to vector<128x128xbf16>
    %c0_20 = arith.constant 0 : index
    %c0_21 = arith.constant 0 : index
    %52 = vector.load %arg17[%c0_20, %c0_21] : memref<128x128xf32, #tpu.memory_space<vmem>>, vector<128x128xf32>
    %cst_22 = arith.constant dense<0.000000e+00> : vector<128x128xf32>
    %53 = tpu.matmul %51, %44, %cst_22 {dimension_numbers = #tpu.dot_dimension_numbers<[1], [0], [0], [1], [0, 0, 1, 1], [], []>} : vector<128x128xbf16>, vector<128x128xbf16>, vector<128x128xf32> -> vector<128x128xf32>
    %54 = arith.addf %52, %53 : vector<128x128xf32>
    %c0_23 = arith.constant 0 : index
    %c0_24 = arith.constant 0 : index
    %55 = vector.load %arg17[%c0_23, %c0_24] : memref<128x128xf32, #tpu.memory_space<vmem>>, vector<128x128xf32>
    tpu.vector_store %arg17[%c0_23, %c0_24], %54 {strides = array<i32>} : memref<128x128xf32, #tpu.memory_space<vmem>>, vector<128x128xf32>,
    %c0_i32_25 = arith.constant 0 : i32
    %56 = arith.cmpi eq, %arg0, %c0_i32_25 : i32
    %57 = arith.extui %56 : i1 to i32
    %c0_i32_26 = arith.constant 0 : i32
    %58 = arith.cmpi ne, %57, %c0_i32_26 : i32
    scf.if %58 {
      %c0_27 = arith.constant 0 : index
      %c0_28 = arith.constant 0 : index
      %59 = vector.load %arg1[%c0_27, %c0_28] : memref<128x128xf32, #tpu.memory_space<vmem>>, vector<128x128xf32>
      %60 = arith.truncf %59 : vector<128x128xf32> to vector<128x128xbf16>
      %c0_29 = arith.constant 0 : index
      %c0_30 = arith.constant 0 : index
      %61 = vector.load %arg11[%c0_29, %c0_30] : memref<128x128xbf16, #tpu.memory_space<vmem>>, vector<128x128xbf16>
      %cst_31 = arith.constant dense<0.000000e+00> : vector<128x128xf32>
      %62 = tpu.matmul %60, %61, %cst_31 {dimension_numbers = #tpu.dot_dimension_numbers<[1], [0], [0], [1], [0, 0, 1, 1], [], []>} : vector<128x128xbf16>, vector<128x128xbf16>, vector<128x128xf32> -> vector<128x128xf32>
      %c0_32 = arith.constant 0 : index
      %c0_33 = arith.constant 0 : index
      %63 = vector.load %arg17[%c0_32, %c0_33] : memref<128x128xf32, #tpu.memory_space<vmem>>, vector<128x128xf32>
      %64 = arith.truncf %63 : vector<128x128xf32> to vector<128x128xbf16>
      %c0_34 = arith.constant 0 : index
      %c0_35 = arith.constant 0 : index
      %65 = vector.load %arg12[%c0_34, %c0_35] : memref<128x128xbf16, #tpu.memory_space<vmem>>, vector<128x128xbf16>
      %cst_36 = arith.constant dense<0.000000e+00> : vector<128x128xf32>
      %66 = tpu.matmul %64, %65, %cst_36 {dimension_numbers = #tpu.dot_dimension_numbers<[1], [0], [0], [1], [0, 0, 1, 1], [], []>} : vector<128x128xbf16>, vector<128x128xbf16>, vector<128x128xf32> -> vector<128x128xf32>
      %67 = arith.addf %62, %66 : vector<128x128xf32>
      %68 = vector.broadcast %3 : vector<1x128xf32> to vector<128x128xf32>
      %69 = arith.addf %67, %68 : vector<128x128xf32>
      %70 = arith.negf %69 : vector<128x128xf32>
      %71 = math.exp %70 : vector<128x128xf32>
      %cst_37 = arith.constant 1.000000e+00 : f32
      %72 = vector.broadcast %cst_37 : f32 to vector<128x128xf32>
      %73 = arith.addf %72, %71 : vector<128x128xf32>
      %74 = arith.divf %72, %73 : vector<128x128xf32>
      %75 = arith.mulf %69, %74 : vector<128x128xf32>
      %76 = arith.truncf %75 : vector<128x128xf32> to vector<128x128xbf16>
      %c0_38 = arith.constant 0 : index
      %c0_39 = arith.constant 0 : index
      %77 = vector.load %arg13[%c0_38, %c0_39] : memref<128x128xbf16, #tpu.memory_space<vmem>>, vector<128x128xbf16>
      %cst_40 = arith.constant dense<0.000000e+00> : vector<128x128xf32>
      %78 = tpu.matmul %76, %77, %cst_40 {dimension_numbers = #tpu.dot_dimension_numbers<[1], [0], [0], [1], [0, 0, 1, 1], [], []>} : vector<128x128xbf16>, vector<128x128xbf16>, vector<128x128xf32> -> vector<128x128xf32>
      %79 = vector.broadcast %4 : vector<1x128xf32> to vector<128x128xf32>
      %80 = arith.addf %78, %79 : vector<128x128xf32>
      %81 = arith.addf %80, %59 : vector<128x128xf32>
      %c0_41 = arith.constant 0 : index
      %c0_42 = arith.constant 0 : index
      %82 = vector.load %arg15[%c0_41, %c0_42] : memref<128x128xf32, #tpu.memory_space<vmem>>, vector<128x128xf32>
      tpu.vector_store %arg15[%c0_41, %c0_42], %81 {strides = array<i32>} : memref<128x128xf32, #tpu.memory_space<vmem>>, vector<128x128xf32>,
      %c0_43 = arith.constant 0 : index
      %c0_44 = arith.constant 0 : index
      %83 = vector.load %arg6[%c0_43, %c0_44] : memref<1x128xi32, #tpu.memory_space<vmem>>, vector<1x128xi32>
      %84 = tpu.iota {dimensions = array<i32: 0>} : vector<8x128xi32>
      %85 = vector.broadcast %83 : vector<1x128xi32> to vector<8x128xi32>
      %86 = arith.cmpi eq, %85, %84 : vector<8x128xi32>
      %87 = arith.extui %86 : vector<8x128xi1> to vector<8x128xi32>
      %88 = arith.sitofp %87 : vector<8x128xi32> to vector<8x128xf32>
      %cst_45 = arith.constant dense<0.000000e+00> : vector<8x128xf32>
      %89 = tpu.matmul %88, %81, %cst_45 {dimension_numbers = #tpu.dot_dimension_numbers<[1], [0], [0], [1], [0, 0, 1, 1], [], []>} : vector<8x128xf32>, vector<128x128xf32>, vector<8x128xf32> -> vector<8x128xf32>
      %c0_46 = arith.constant 0 : index
      %c0_47 = arith.constant 0 : index
      %90 = vector.load %arg16[%c0_46, %c0_47] : memref<8x128xf32, #tpu.memory_space<vmem>>, vector<8x128xf32>
      tpu.vector_store %arg16[%c0_46, %c0_47], %89 {strides = array<i32>} : memref<8x128xf32, #tpu.memory_space<vmem>>, vector<8x128xf32>,
    } else {
    }
    return
  }
  func.func @transform_0(%arg0: i32) -> (i32, i32) {
    %c0_i32 = arith.constant 0 : i32
    %c0_i32_0 = arith.constant 0 : i32
    %c0_i32_1 = arith.constant 0 : i32
    return %c0_i32, %c0_i32_0 : i32, i32
  }
  func.func @transform_1(%arg0: i32) -> (i32, i32) {
    %c0_i32 = arith.constant 0 : i32
    %c0_i32_0 = arith.constant 0 : i32
    return %arg0, %c0_i32 : i32, i32
  }
  func.func @transform_2(%arg0: i32) -> (i32, i32) {
    %c0_i32 = arith.constant 0 : i32
    %c0_i32_0 = arith.constant 0 : i32
    return %arg0, %c0_i32 : i32, i32
  }
  func.func @transform_3(%arg0: i32) -> (i32, i32) {
    %c0_i32 = arith.constant 0 : i32
    %c0_i32_0 = arith.constant 0 : i32
    return %c0_i32, %arg0 : i32, i32
  }
  func.func @transform_4(%arg0: i32) -> (i32, i32) {
    %c0_i32 = arith.constant 0 : i32
    %c0_i32_0 = arith.constant 0 : i32
    return %arg0, %c0_i32 : i32, i32
  }
  func.func @transform_5(%arg0: i32) -> (i32, i32) {
    %c0_i32 = arith.constant 0 : i32
    %c0_i32_0 = arith.constant 0 : i32
    %c0_i32_1 = arith.constant 0 : i32
    return %c0_i32, %c0_i32_0 : i32, i32
  }
  func.func @transform_6(%arg0: i32) -> (i32, i32) {
    %c0_i32 = arith.constant 0 : i32
    %c0_i32_0 = arith.constant 0 : i32
    %c0_i32_1 = arith.constant 0 : i32
    return %c0_i32, %c0_i32_0 : i32, i32
  }
  func.func @transform_7(%arg0: i32) -> (i32, i32) {
    %c0_i32 = arith.constant 0 : i32
    %c0_i32_0 = arith.constant 0 : i32
    %c0_i32_1 = arith.constant 0 : i32
    return %c0_i32, %c0_i32_0 : i32, i32
  }
  func.func @transform_8(%arg0: i32) -> (i32, i32) {
    %c0_i32 = arith.constant 0 : i32
    %c0_i32_0 = arith.constant 0 : i32
    %c0_i32_1 = arith.constant 0 : i32
    return %c0_i32, %c0_i32_0 : i32, i32
  }
  func.func @transform_9(%arg0: i32) -> (i32, i32) {
    %c0_i32 = arith.constant 0 : i32
    %c0_i32_0 = arith.constant 0 : i32
    %c0_i32_1 = arith.constant 0 : i32
    return %c0_i32, %c0_i32_0 : i32, i32
  }
  func.func @transform_10(%arg0: i32) -> (i32, i32) {
    %c0_i32 = arith.constant 0 : i32
    %c0_i32_0 = arith.constant 0 : i32
    %c0_i32_1 = arith.constant 0 : i32
    return %c0_i32, %c0_i32_0 : i32, i32
  }
  func.func @transform_11(%arg0: i32) -> (i32, i32) {
    %c0_i32 = arith.constant 0 : i32
    %c0_i32_0 = arith.constant 0 : i32
    %c0_i32_1 = arith.constant 0 : i32
    return %c0_i32, %c0_i32_0 : i32, i32
  }
  func.func @transform_12(%arg0: i32) -> (i32, i32) {
    %c0_i32 = arith.constant 0 : i32
    %c0_i32_0 = arith.constant 0 : i32
    %c0_i32_1 = arith.constant 0 : i32
    return %c0_i32, %c0_i32_0 : i32, i32
  }
  func.func @transform_13(%arg0: i32) -> (i32, i32) {
    %c0_i32 = arith.constant 0 : i32
    %c0_i32_0 = arith.constant 0 : i32
    %c0_i32_1 = arith.constant 0 : i32
    return %c0_i32, %c0_i32_0 : i32, i32
  }
  func.func @transform_14(%arg0: i32) -> (i32, i32) {
    %c0_i32 = arith.constant 0 : i32
    %c0_i32_0 = arith.constant 0 : i32
    %c0_i32_1 = arith.constant 0 : i32
    return %c0_i32, %c0_i32_0 : i32, i32
  }
  func.func @transform_15(%arg0: i32) -> (i32, i32) {
    %c0_i32 = arith.constant 0 : i32
    %c0_i32_0 = arith.constant 0 : i32
    %c0_i32_1 = arith.constant 0 : i32
    return %c0_i32, %c0_i32_0 : i32, i32
  }
}

</mosaic_0001>

<bundles_post_ra>
// kernel: _lambda_.3
= control target key start
LH: loop header
LB: loop body
LE: loop exit
PB: predicated region body
PF: predicated region fallthrough
CT: control target
= control target key end

     0   :  { %v3946_v1 = vmov 0   ;;  %s5019_s6 = inlined_call_operand.vmem [shape: bf16[128,128], index: 6, kind: input, shape index: {}]   ;;  %s5020_s7 = inlined_call_operand.vmem [shape: bf16[128,128], index: 7, kind: input, shape index: {}]   ;;  %s5021_s0 = inlined_call_operand.vmem [shape: f32[128,128], index: 0, kind: input, shape index: {}]   ;;  %s5022_s2 = inlined_call_operand.vmem [shape: s32[128,1], index: 2, kind: input, shape index: {}]   ;;  %s5023_s1 = inlined_call_operand.vmem [shape: s32[128,1], index: 1, kind: input, shape index: {}]   ;;  %s5024_s8 = inlined_call_operand.vmem [shape: bf16[128,128], index: 8, kind: input, shape index: {}]   ;;  %s5025_s4 = inlined_call_operand.vmem [shape: bf16[128,128], index: 4, kind: input, shape index: {}]   ;;  %s5026_s9 = inlined_call_operand.vmem [shape: bf16[128,128], index: 9, kind: input, shape index: {}]   ;;  %s5027_s13 = inlined_call_operand.vmem [shape: f32[8,128], index: 13, kind: input, shape index: {}]   ;;  %s5028_s3 = inlined_call_operand.vmem [shape: s32[1,128], index: 3, kind: input, shape index: {}]   ;;  %s5029_s11 = inlined_call_operand.vmem [shape: bf16[128,128], index: 11, kind: input, shape index: {}]   ;;  %s5030_s10 = inlined_call_operand.vmem [shape: bf16[128,128], index: 10, kind: input, shape index: {}]   ;;  %s5031_s12 = inlined_call_operand.vmem [shape: bf16[128,128], index: 12, kind: input, shape index: {}]   ;;  %s5032_s14 = inlined_call_operand.vmem [shape: f32[128,128], index: 14, kind: output, shape index: {0}]   ;;  %s5033_s5 = inlined_call_operand.vmem [shape: s32[1,128], index: 5, kind: input, shape index: {}]   ;;  %s5034_s15 = inlined_call_operand.vmem [shape: f32[8,128], index: 15, kind: output, shape index: {1}]  }
   0x1   :  { %v3673_v0 = vld [vmem:[%s5019_s6 + $0x38] sm:$0xff]   ;;  %3672 = vset.pattern.permute.xlu1 %v3946_v1  ;;  %3671 = vset.pattern.permute.xlu0 %v3946_v1  ;;  %v3675_v3 = vld [vmem:[%s5019_s6 + $0x30] sm:$0xff]   ;;  %v3677_v5 = vld [vmem:[%s5019_s6 + $0x28] sm:$0xff]  }
   0x2   :  { %v3674_v2 = vld [vmem:[%s5020_s7 + $0x38] sm:$0xff]   ;;  %3375 = vmatprep.subr.bf16.mxu0 %v3673_v0  ;;  %v3676_v4 = vld [vmem:[%s5020_s7 + $0x30] sm:$0xff]   ;;  %v3678_v6 = vld [vmem:[%s5020_s7 + $0x28] sm:$0xff]  }
   0x3   :  { %3407 = vmatprep.subr.bf16.mxu1 %v3674_v2  ;;  %3376 = vmatpush3.bf16.msra.mxu0 %v3673_v0  ;;  %v3679_v7 = vld [vmem:[%s5019_s6 + $0x20] sm:$0xff]   ;;  %v3681_v9 = vld [vmem:[%s5019_s6 + $0x18] sm:$0xff]   ;;  %v3683_v11 = vld [vmem:[%s5019_s6 + $0x10] sm:$0xff]  }
   0x4   :  { %3408 = vmatpush3.bf16.msra.mxu1 %v3674_v2  ;;  %3377 = vmatprep.subr.bf16.mxu0 %v3675_v3  ;;  %v3680_v8 = vld [vmem:[%s5020_s7 + $0x20] sm:$0xff]   ;;  %v3682_v10 = vld [vmem:[%s5020_s7 + $0x18] sm:$0xff]   ;;  %v72_v13 = vld [vmem:[%s5021_s0 + $0x8] sm:$0xff] }
   0x5   :  { %3409 = vmatprep.subr.bf16.mxu1 %v3676_v4  ;;  %v71_v12 = vld [vmem:[%s5021_s0] sm:$0xff]  ;;  %v3684_v14 = vld [vmem:[%s5020_s7 + $0x10] sm:$0xff]   ;;  %v3685_v16 = vld [vmem:[%s5019_s6 + $0x8] sm:$0xff]  }
   0x6   :  { %v87_v15 = vpack.c.bf16 %v72_v13, %v71_v12  ;;  %v3686_v17 = vld [vmem:[%s5020_s7 + $0x8] sm:$0xff]   ;;  %v676_v18 = vld [vmem:[%s5022_s2] sm:$0xff]  ;;  %v73_v24 = vld [vmem:[%s5021_s0 + $0x10] sm:$0xff] }
   0x7   :  { %3378 = vmatpush3.bf16.msra.mxu0 %v3675_v3  ;;  %v580_v19 = vld [vmem:[%s5023_s1] sm:$0xff]  ;;  %693 = vperm.xlu1 %3672, %v676_v18   ;;  %v677_v20 = vld [vmem:[%s5022_s2 + $0x8] sm:$0xff]  ;;  %v74_v25 = vld [vmem:[%s5021_s0 + $0x18] sm:$0xff] }
   0x8   :  { %3410 = vmatpush3.bf16.msra.mxu1 %v3676_v4  ;;  %3379 = vmatprep.subr.bf16.mxu0 %v3677_v5  ;;  %v581_v21 = vld [vmem:[%s5023_s1 + $0x8] sm:$0xff]  ;;  %v3687_v22 = vld [vmem:[%s5019_s6] sm:$0xff]   ;;  %v583_v26 = vld [vmem:[%s5023_s1 + $0x18] sm:$0xff]  ;;  %v88_v30 = vpack.c.bf16 %v74_v25, %v73_v24  ;;  %v3947_v25 = vmov 1.0|1.0  }
   0x9   :  { %3411 = vmatprep.subr.bf16.mxu1 %v3678_v6  ;;  %3391 = vmatprep.mubr.bf16.mxu0 %v87_v15  ;;  %v3688_v23 = vld [vmem:[%s5020_s7] sm:$0xff]   ;;  %v582_v27 = vld [vmem:[%s5023_s1 + $0x10] sm:$0xff]  ;;  %v76_v29 = vld [vmem:[%s5021_s0 + $0x28] sm:$0xff] }
   0xa   :  { %3423 = vmatprep.mubr.bf16.mxu1 %v87_v15  ;;  %597 = vperm.xlu0 %3671, %v580_v19   ;;  %v75_v28 = vld [vmem:[%s5021_s0 + $0x20] sm:$0xff]  ;;  %v679_v32 = vld [vmem:[%s5022_s2 + $0x18] sm:$0xff]  ;;  %v678_v33 = vld [vmem:[%s5022_s2 + $0x10] sm:$0xff] }
   0xb   :  { %3380 = vmatpush3.bf16.msra.mxu0 %v3677_v5  ;;  %696 = vperm.xlu1 %3672, %v677_v20   ;;  %v89_v31 = vpack.c.bf16 %v76_v29, %v75_v28  ;;  %v77_v34 = vld [vmem:[%s5021_s0 + $0x30] sm:$0xff]  ;;  %v78_v35 = vld [vmem:[%s5021_s0 + $0x38] sm:$0xff]  ;;  %v585_v36 = vld [vmem:[%s5023_s1 + $0x28] sm:$0xff] }
   0xc   :  { %3412 = vmatpush3.bf16.msra.mxu1 %v3678_v6  ;;  %3381 = vmatprep.subr.bf16.mxu0 %v3679_v7  ;;  %v79_v37 = vld [vmem:[%s5021_s0 + $0x40] sm:$0xff]  ;;  %v80_v38 = vld [vmem:[%s5021_s0 + $0x48] sm:$0xff]  ;;  %v90_v40 = vpack.c.bf16 %v78_v35, %v77_v34  ;;  %v81_v44 = vld [vmem:[%s5021_s0 + $0x50] sm:$0xff] }
   0xd   :  { %3413 = vmatprep.subr.bf16.mxu1 %v3680_v8  ;;  %v584_v39 = vld [vmem:[%s5023_s1 + $0x20] sm:$0xff]  ;;  %v91_v41 = vpack.c.bf16 %v80_v38, %v79_v37  ;;  %v681_v42 = vld [vmem:[%s5022_s2 + $0x28] sm:$0xff]  ;;  %v82_v45 = vld [vmem:[%s5021_s0 + $0x58] sm:$0xff] }
   0xe   :  { %600 = vperm.xlu0 %3671, %v581_v21   ;;  %v680_v43 = vld [vmem:[%s5022_s2 + $0x20] sm:$0xff]  ;;  %v587_v46 = vld [vmem:[%s5023_s1 + $0x38] sm:$0xff]  ;;  %v84_v48 = vld [vmem:[%s5021_s0 + $0x68] sm:$0xff]  ;;  %v92_v50 = vpack.c.bf16 %v82_v45, %v81_v44 }
   0xf   :  { %3382 = vmatpush3.bf16.msra.mxu0 %v3679_v7  ;;  %606 = vperm.xlu1 %3672, %v583_v26   ;;  %v83_v47 = vld [vmem:[%s5021_s0 + $0x60] sm:$0xff]  ;;  %v586_v49 = vld [vmem:[%s5023_s1 + $0x30] sm:$0xff]  ;;  %v683_v52 = vld [vmem:[%s5022_s2 + $0x38] sm:$0xff] }
  0x10   :  { %3414 = vmatpush3.bf16.msra.mxu1 %v3680_v8  ;;  %3383 = vmatprep.subr.bf16.mxu0 %v3681_v9  ;;  %v93_v51 = vpack.c.bf16 %v84_v48, %v83_v47  ;;  %v682_v53 = vld [vmem:[%s5022_s2 + $0x30] sm:$0xff]  ;;  %v86_v55 = vld [vmem:[%s5021_s0 + $0x78] sm:$0xff]  ;;  %v589_v56 = vld [vmem:[%s5023_s1 + $0x48] sm:$0xff] }
  0x11   :  { %3415 = vmatprep.subr.bf16.mxu1 %v3682_v10  ;;  %v85_v54 = vld [vmem:[%s5021_s0 + $0x70] sm:$0xff]  ;;  %v588_v57 = vld [vmem:[%s5023_s1 + $0x40] sm:$0xff]  ;;  %v685_v59 = vld [vmem:[%s5022_s2 + $0x48] sm:$0xff] }
  0x12   :  { %603 = vperm.xlu0 %3671, %v582_v27   ;;  %v94_v58 = vpack.c.bf16 %v86_v55, %v85_v54  ;;  %v684_v60 = vld [vmem:[%s5022_s2 + $0x40] sm:$0xff]  ;;  %v591_v61 = vld [vmem:[%s5023_s1 + $0x58] sm:$0xff]  ;;  %v590_v62 = vld [vmem:[%s5023_s1 + $0x50] sm:$0xff] }
  0x13   :  { %3384 = vmatpush3.bf16.msra.mxu0 %v3681_v9  ;;  %702 = vperm.xlu1 %3672, %v679_v32   ;;  %v687_v63 = vld [vmem:[%s5022_s2 + $0x58] sm:$0xff]  ;;  %v686_v0 = vld [vmem:[%s5022_s2 + $0x50] sm:$0xff]  ;;  %v593_v1 = vld [vmem:[%s5023_s1 + $0x68] sm:$0xff]  ;;  %v577_v9 = vlaneseq }
  0x14   :  { %3416 = vmatpush3.bf16.msra.mxu1 %v3682_v10  ;;  %3385 = vmatprep.subr.bf16.mxu0 %v3683_v11  ;;  %v592_v2 = vld [vmem:[%s5023_s1 + $0x60] sm:$0xff]  ;;  %v689_v3 = vld [vmem:[%s5022_s2 + $0x68] sm:$0xff]  ;;  %v595_v5 = vld [vmem:[%s5023_s1 + $0x78] sm:$0xff] }
  0x15   :  { %3417 = vmatprep.subr.bf16.mxu1 %v3684_v14  ;;  %v688_v4 = vld [vmem:[%s5022_s2 + $0x60] sm:$0xff]  ;;  %v594_v6 = vld [vmem:[%s5023_s1 + $0x70] sm:$0xff]  ;;  %v691_v7 = vld [vmem:[%s5022_s2 + $0x78] sm:$0xff] }
  0x16   :  { %699 = vperm.xlu0 %3671, %v678_v33   ;;  %v690_v8 = vld [vmem:[%s5022_s2 + $0x70] sm:$0xff]  ;;  %v3691_v10 = vld [vmem:[%s5024_s8 + $0x38] sm:$0xff]   ;;  %v3700_v20 = vld [vmem:[%s5024_s8 + $0x20] sm:$0xff]  }
  0x17   :  { %3386 = vmatpush3.bf16.msra.mxu0 %v3683_v11  ;;  %612 = vperm.xlu1 %3672, %v585_v36   ;;  %v4227_v11 = vand.u32 127, %v577_v9  ;;  %v3694_v12 = vld [vmem:[%s5024_s8 + $0x30] sm:$0xff]   ;;  %v3709_v24 = vld [vmem:[%s5024_s8 + $0x8] sm:$0xff]   ;;  %v3712_v26 = vld [vmem:[%s5024_s8] sm:$0xff]  }
  0x18   :  { %3418 = vmatpush3.bf16.msra.mxu1 %v3684_v14  ;;  %3387 = vmatprep.subr.bf16.mxu0 %v3685_v16  ;;  %v3713_v27 = vld [vmem:[%s5025_s4] sm:$0xff]   ;;  %v3714_v28 = vld [vmem:[%s5025_s4 + $0x8] sm:$0xff]   ;;  %v3715_v29 = vld [vmem:[%s5025_s4 + $0x10] sm:$0xff]  }
  0x19   :  { %3419 = vmatprep.subr.bf16.mxu1 %v3686_v17  ;;  %v4255_v21 = vadd.s32 128, %v4227_v11  ;;  %v3718_v32 = vld [vmem:[%s5025_s4 + $0x28] sm:$0xff]   ;;  %v3719_v33 = vld [vmem:[%s5025_s4 + $0x30] sm:$0xff]   ;;  %v3720_v34 = vld [vmem:[%s5025_s4 + $0x38] sm:$0xff]  }
  0x1a   :  { %609 = vperm.xlu0 %3671, %v584_v39  }
  0x1b   :  { %3388 = vmatpush3.bf16.msra.mxu0 %v3685_v16  ;;  %708 = vperm.xlu1 %3672, %v681_v42   ;;  %v3697_v16 = vld [vmem:[%s5024_s8 + $0x28] sm:$0xff]  }
  0x1c   :  { %3420 = vmatpush3.bf16.msra.mxu1 %v3686_v17  ;;  %3389 = vmatprep.subr.bf16.mxu0 %v3687_v22 }
  0x1d   :  { %3421 = vmatprep.subr.bf16.mxu1 %v3688_v23 }
  0x1e   :  { %705 = vperm.xlu0 %3671, %v680_v43  }
  0x1f   :  { %3390 = vmatpush3.bf16.msra.mxu0 %v3687_v22  ;;  %618 = vperm.xlu1 %3672, %v587_v46   ;;  %v3703_v22 = vld [vmem:[%s5024_s8 + $0x18] sm:$0xff]  }
  0x20   :  { %3422 = vmatpush3.bf16.msra.mxu1 %v3688_v23  ;;  %3439 = vmatprep.subr.bf16.mxu0 %v3691_v10  ;;  %v3706_v23 = vld [vmem:[%s5024_s8 + $0x10] sm:$0xff]  }
  0x22   :  { %3392 = vmatmul.mubr.bf16.vlgmr.msra.gmra.mxu0 %v88_v30  ;;  %615 = vperm.xlu0 %3671, %v586_v49  }
  0x23   :  { %3424 = vmatmul.mubr.bf16.vlgmr.msra.gmra.mxu1 %v88_v30  ;;  %3395 = vmatprep.mubr.bf16.mxu0 %v89_v31  ;;  %v3716_v30 = vld [vmem:[%s5025_s4 + $0x18] sm:$0xff]  }
  0x24   :  { %3427 = vmatprep.mubr.bf16.mxu1 %v89_v31  ;;  %714 = vperm.xlu1 %3672, %v683_v52   ;;  %v3717_v31 = vld [vmem:[%s5025_s4 + $0x20] sm:$0xff]  }
  0x25   :  { %3440 = vmatpush3.bf16.msra.mxu0 %v3691_v10 }
  0x26   :  { %711 = vperm.xlu0 %3671, %v682_v53   ;;  %3441 = vmatprep.subr.bf16.mxu0 %v3694_v12 }
  0x28   :  { %624 = vperm.xlu1 %3672, %v589_v56  }
  0x29   :  { %3442 = vmatpush3.bf16.msra.mxu0 %v3694_v12 }
  0x2a   :  { %3396 = vmatmul.mubr.bf16.gmra.mxu0 %v90_v40  ;;  %621 = vperm.xlu0 %3671, %v588_v57  }
  0x2b   :  { %3428 = vmatmul.mubr.bf16.gmra.mxu1 %v90_v40  ;;  %3399 = vmatprep.mubr.bf16.mxu0 %v91_v41 }
  0x2c   :  { %3431 = vmatprep.mubr.bf16.mxu1 %v91_v41  ;;  %720 = vperm.xlu1 %3672, %v685_v59  }
  0x2d   :  { %3443 = vmatprep.subr.bf16.mxu0 %v3697_v16 }
  0x2e   :  { %717 = vperm.xlu0 %3671, %v684_v60   ;;  %3444 = vmatpush3.bf16.msra.mxu0 %v3697_v16 }
  0x2f   :  { %3445 = vmatprep.subr.bf16.mxu0 %v3700_v20 }
  0x30   :  { %630 = vperm.xlu1 %3672, %v591_v61  }
  0x32   :  { %3400 = vmatmul.mubr.bf16.gmra.mxu0 %v92_v50  ;;  %627 = vperm.xlu0 %3671, %v590_v62  }
  0x33   :  { %3432 = vmatmul.mubr.bf16.gmra.mxu1 %v92_v50  ;;  %3403 = vmatprep.mubr.bf16.mxu0 %v93_v51 }
  0x34   :  { %3435 = vmatprep.mubr.bf16.mxu1 %v93_v51  ;;  %726 = vperm.xlu1 %3672, %v687_v63  }
  0x35   :  { %3446 = vmatpush3.bf16.msra.mxu0 %v3700_v20 }
  0x36   :  { %723 = vperm.xlu0 %3671, %v686_v0   ;;  %3447 = vmatprep.subr.bf16.mxu0 %v3703_v22 }
  0x38   :  { %636 = vperm.xlu1 %3672, %v593_v1  }
  0x39   :  { %3448 = vmatpush3.bf16.msra.mxu0 %v3703_v22 }
  0x3a   :  { %3404 = vmatmul.mubr.bf16.gmra.mxu0 %v94_v58  ;;  %633 = vperm.xlu0 %3671, %v592_v2  }
  0x3b   :  { %3436 = vmatmul.mubr.bf16.gmra.mxu1 %v94_v58  ;;  %3449 = vmatprep.subr.bf16.mxu0 %v3706_v23 }
  0x3c   :  { %732 = vperm.xlu1 %3672, %v689_v3   ;;  %3455 = vmatprep.mubr.bf16.mxu0 %v3713_v27 }
  0x3d   :  { %3450 = vmatpush3.bf16.msra.mxu0 %v3706_v23 }
  0x3e   :  { %729 = vperm.xlu0 %3671, %v688_v4   ;;  %3451 = vmatprep.subr.bf16.mxu0 %v3709_v24 }
  0x40   :  { %642 = vperm.xlu1 %3672, %v595_v5  }
  0x41   :  { %3452 = vmatpush3.bf16.msra.mxu0 %v3709_v24 }
  0x42   :  { %639 = vperm.xlu0 %3671, %v594_v6   ;;  %3453 = vmatprep.subr.bf16.mxu0 %v3712_v26 }
  0x44   :  { %738 = vperm.xlu1 %3672, %v691_v7  }
  0x45   :  { %3454 = vmatpush3.bf16.msra.mxu0 %v3712_v26 }
  0x46   :  { %735 = vperm.xlu0 %3671, %v690_v8  }
  0x48   :  { %3456 = vmatmul.mubr.bf16.vlgmr.msra.gmra.mxu0 %v3714_v28 }
  0x49   :  { %3459 = vmatprep.mubr.bf16.mxu0 %v3715_v29 }
  0x50   :  { %3460 = vmatmul.mubr.bf16.gmra.mxu0 %v3716_v30 }
  0x51   :  { %3463 = vmatprep.mubr.bf16.mxu0 %v3717_v31 }
  0x58   :  { %3464 = vmatmul.mubr.bf16.gmra.mxu0 %v3718_v32 }
  0x59   :  { %3467 = vmatprep.mubr.bf16.mxu0 %v3719_v33 }
  0x60   :  { %3468 = vmatmul.mubr.bf16.gmra.mxu0 %v3720_v34 }
  0x82   :  { %v694_v13 = vpop.permute.xlu1 %693 }
  0x83   :  { %vm740_vm0 = vcmp.eq.s32.totalorder %v4227_v11, %v694_v13  ;;  %vm741_vm7 = vcmp.eq.s32.totalorder %v4255_v21, %v694_v13 }
  0x85   :  { %v598_v14 = vpop.permute.xlu0 %597 }
  0x86   :  { %vm644_vm1 = vcmp.eq.s32.totalorder %v4227_v11, %v598_v14  ;;  %v697_v17 = vpop.permute.xlu1 %696  ;;  %vm645_vm8 = vcmp.eq.s32.totalorder %v4255_v21, %v598_v14 }
  0x87   :  { %vm4234_vm2 = vmor %vm644_vm1, %vm740_vm0  ;;  %vm742_vm3 = vcmp.eq.s32.totalorder %v4227_v11, %v697_v17  ;;  %vm743_vm9 = vcmp.eq.s32.totalorder %v4255_v21, %v697_v17 }
  0x88   :  { %vm773_vm11 = vmor %vm645_vm8, %vm741_vm7 }
  0x89   :  { %v601_v18 = vpop.permute.xlu0 %600 }
  0x8a   :  { %vm646_vm4 = vcmp.eq.s32.totalorder %v4227_v11, %v601_v18  ;;  %vm647_vm10 = vcmp.eq.s32.totalorder %v4255_v21, %v601_v18  ;;  %v4298_v24 = vpop.permute.xlu1 %606 }
  0x8b   :  { %vm4243_vm5 = vmor %vm646_vm4, %vm742_vm3  ;;  %vm651_vm14 = vcmp.eq.s32.totalorder %v4255_v21, %v4298_v24  ;;  %vm650_vm7 = vcmp.eq.s32.totalorder %v4227_v11, %v4298_v24 }
  0x8c   :  { %vm2893_vm6 = vmpackc.low %vm4243_vm5, %vm4234_vm2 }
  0x8d   :  { %vm775_vm12 = vmor %vm647_vm10, %vm743_vm9  ;;  %v4300_v26 = vpop.permute.xlu0 %603 }
  0x8e   :  { %vm2891_vm13 = vmpackc.low %vm775_vm12, %vm773_vm11  ;;  %v703_v28 = vpop.permute.xlu1 %702  ;;  %vm649_vm0 = vcmp.eq.s32.totalorder %v4255_v21, %v4300_v26  ;;  %vm648_vm9 = vcmp.eq.s32.totalorder %v4227_v11, %v4300_v26 }
  0x8f   :  { %2892 = vmatprep.mubr.msk.bf16.mxu1 %vm2891_vm13, %v3947_v25  ;;  %vm747_vm15 = vcmp.eq.s32.totalorder %v4255_v21, %v703_v28  ;;  %vm746_vm8 = vcmp.eq.s32.totalorder %v4227_v11, %v703_v28 }
  0x90   :  { %vm779_vm3 = vmor %vm651_vm14, %vm747_vm15 }
  0x91   :  { %v700_v30 = vpop.permute.xlu0 %699  ;;  %vm778_vm14 = vmor %vm650_vm7, %vm746_vm8 }
  0x92   :  { %v4302_v33 = vpop.permute.xlu1 %612  ;;  %vm745_vm1 = vcmp.eq.s32.totalorder %v4255_v21, %v700_v30  ;;  %vm744_vm10 = vcmp.eq.s32.totalorder %v4227_v11, %v700_v30 }
  0x93   :  { %vm777_vm4 = vmor %vm649_vm0, %vm745_vm1  ;;  %vm655_vm12 = vcmp.eq.s32.totalorder %v4255_v21, %v4302_v33 }
  0x94   :  { %vm2895_vm11 = vmpackc.low %vm779_vm3, %vm777_vm4 }
  0x95   :  { %vm776_vm1 = vmor %vm648_vm9, %vm744_vm10 }
  0x96   :  { %vm2897_vm4 = vmpackc.low %vm778_vm14, %vm776_vm1 }
  0xe2   :  { %v3393_v35 = vpop.f32.mrf.mxu0 }
  0xe3   :  { %v3425_v36 = vpop.f32.mrf.mxu1 }
  0xe4   :  { %v193_v37 = vpop.f32.mrf.mxu0 }
  0xe5   :  { %v434_v38 = vpop.f32.mrf.mxu1 }
  0xe6   :  { %v3394_v39 = vpop.f32.mrf.mxu0 }
  0xe7   :  { %v3079_v40 = vpack.c.bf16 %v3394_v39, %v3393_v35  ;;  %v3426_v41 = vpop.f32.mrf.mxu1  ;;  %v4304_v35 = vpop.permute.xlu0 %609 }
  0xe8   :  { %v3119_v42 = vpack.c.bf16 %v3426_v41, %v3425_v36  ;;  %v196_v43 = vpop.f32.mrf.mxu0  ;;  %vm653_vm15 = vcmp.eq.s32.totalorder %v4255_v21, %v4304_v35  ;;  %vm652_vm7 = vcmp.eq.s32.totalorder %v4227_v11, %v4304_v35 }
  0xe9   :  { %3151 = vst [vmem:[#allocation3 + $0x8] sm:$0xff] %v3079_v40   ;;  %v3074_v44 = vpack.c.bf16 %v196_v43, %v193_v37  ;;  %v437_v45 = vpop.f32.mrf.mxu1 }
  0xea   :  { %3159 = vst [vmem:[#allocation3 + $0x48] sm:$0xff] %v3119_v42   ;;  %v3114_v46 = vpack.c.bf16 %v437_v45, %v434_v38  ;;  %v3397_v47 = vpop.f32.mrf.mxu0  ;;  %v709_v38 = vpop.permute.xlu1 %708 }
  0xeb   :  { %3075 = vst [vmem:[#allocation3] sm:$0xff] %v3074_v44   ;;  %v3429_v48 = vpop.f32.mrf.mxu1  ;;  %v4306_v39 = vpop.permute.xlu0 %705  ;;  %vm751_vm13 = vcmp.eq.s32.totalorder %v4255_v21, %v709_v38  ;;  %vm750_vm3 = vcmp.eq.s32.totalorder %v4227_v11, %v709_v38 }
  0xec   :  { %3158 = vst [vmem:[#allocation3 + $0x40] sm:$0xff] %v3114_v46   ;;  %v209_v49 = vpop.f32.mrf.mxu0  ;;  %vm749_vm0 = vcmp.eq.s32.totalorder %v4255_v21, %v4306_v39  ;;  %vm783_vm2 = vmor %vm655_vm12, %vm751_vm13  ;;  %vm748_vm8 = vcmp.eq.s32.totalorder %v4227_v11, %v4306_v39 }
  0xed   :  { %v450_v50 = vpop.f32.mrf.mxu1  ;;  %vm781_vm5 = vmor %vm653_vm15, %vm749_vm0 }
  0xee   :  { %v3398_v51 = vpop.f32.mrf.mxu0  ;;  %v4308_v43 = vpop.permute.xlu1 %618  ;;  %vm2899_vm9 = vmpackc.low %vm783_vm2, %vm781_vm5 }
  0xef   :  { %v3089_v52 = vpack.c.bf16 %v3398_v51, %v3397_v47  ;;  %v3430_v53 = vpop.f32.mrf.mxu1  ;;  %v4310_v45 = vpop.permute.xlu0 %615  ;;  %vm659_vm10 = vcmp.eq.s32.totalorder %v4255_v21, %v4308_v43  ;;  %vm780_vm15 = vmor %vm652_vm7, %vm748_vm8  ;;  %vm658_vm2 = vcmp.eq.s32.totalorder %v4227_v11, %v4308_v43 }
  0xf0   :  { %v3129_v54 = vpack.c.bf16 %v3430_v53, %v3429_v48  ;;  %v212_v55 = vpop.f32.mrf.mxu0  ;;  %vm657_vm13 = vcmp.eq.s32.totalorder %v4255_v21, %v4310_v45 }
  0xf1   :  { %3153 = vst [vmem:[#allocation3 + $0x18] sm:$0xff] %v3089_v52   ;;  %v3084_v56 = vpack.c.bf16 %v212_v55, %v209_v49  ;;  %v453_v57 = vpop.f32.mrf.mxu1  ;;  %v3707_v47 = vld [vmem:[#allocation3 + $0x48] sm:$0xff]  }
  0xf2   :  { %3161 = vst [vmem:[#allocation3 + $0x58] sm:$0xff] %v3129_v54   ;;  %v3124_v58 = vpack.c.bf16 %v453_v57, %v450_v50  ;;  %v3401_v59 = vpop.f32.mrf.mxu0  ;;  %v4312_v48 = vpop.permute.xlu1 %714  ;;  %v3708_v50 = vld [vmem:[#allocation3 + $0x8] sm:$0xff]   ;;  %v3711_v52 = vld [vmem:[#allocation3] sm:$0xff]  }
  0xf3   :  { %3152 = vst [vmem:[#allocation3 + $0x10] sm:$0xff] %v3084_v56   ;;  %v3433_v60 = vpop.f32.mrf.mxu1  ;;  %v4314_v49 = vpop.permute.xlu0 %711  ;;  %v3710_v51 = vld [vmem:[#allocation3 + $0x40] sm:$0xff]   ;;  %vm754_vm5 = vcmp.eq.s32.totalorder %v4227_v11, %v4312_v48 }
  0xf4   :  { %3160 = vst [vmem:[#allocation3 + $0x50] sm:$0xff] %v3124_v58   ;;  %v225_v61 = vpop.f32.mrf.mxu0  ;;  %vm753_vm14 = vcmp.eq.s32.totalorder %v4255_v21, %v4314_v49 }
  0xf5   :  { %v466_v62 = vpop.f32.mrf.mxu1  ;;  %vm785_vm1 = vmor %vm657_vm13, %vm753_vm14 }
  0xf6   :  { %v3402_v63 = vpop.f32.mrf.mxu0  ;;  %v4322_v53 = vpop.permute.xlu1 %624 }
  0xf7   :  { %v3099_v0 = vpack.c.bf16 %v3402_v63, %v3401_v59  ;;  %v3434_v1 = vpop.f32.mrf.mxu1  ;;  %v4324_v54 = vpop.permute.xlu0 %621  ;;  %vm663_vm8 = vcmp.eq.s32.totalorder %v4255_v21, %v4322_v53 }
  0xf8   :  { %v3139_v2 = vpack.c.bf16 %v3434_v1, %v3433_v60  ;;  %v228_v3 = vpop.f32.mrf.mxu0  ;;  %v3702_v42 = vld [vmem:[#allocation3 + $0x18] sm:$0xff]  }
  0xf9   :  { %3155 = vst [vmem:[#allocation3 + $0x28] sm:$0xff] %v3099_v0   ;;  %v3094_v4 = vpack.c.bf16 %v228_v3, %v225_v61  ;;  %v469_v5 = vpop.f32.mrf.mxu1  ;;  %v3701_v41 = vld [vmem:[#allocation3 + $0x58] sm:$0xff]   ;;  %v3722_v3 = vld [vmem:[%s5026_s9 + $0x30] sm:$0xff]  }
  0xfa   :  { %3163 = vst [vmem:[#allocation3 + $0x68] sm:$0xff] %v3139_v2   ;;  %v3134_v6 = vpack.c.bf16 %v469_v5, %v466_v62  ;;  %v3405_v7 = vpop.f32.mrf.mxu0  ;;  %v3705_v46 = vld [vmem:[#allocation3 + $0x10] sm:$0xff]   ;;  %v721_v19 = vpop.permute.xlu1 %720  ;;  %v3725_v5 = vld [vmem:[%s5026_s9 + $0x18] sm:$0xff]  }
  0xfb   :  { %3154 = vst [vmem:[#allocation3 + $0x20] sm:$0xff] %v3094_v4   ;;  %v3437_v8 = vpop.f32.mrf.mxu1  ;;  %v3704_v44 = vld [vmem:[#allocation3 + $0x50] sm:$0xff]   ;;  %v718_v15 = vpop.permute.xlu0 %717  ;;  %v3724_v4 = vld [vmem:[%s5026_s9 + $0x20] sm:$0xff]  }
  0xfc   :  { %3162 = vst [vmem:[#allocation3 + $0x60] sm:$0xff] %v3134_v6   ;;  %v241_v10 = vpop.f32.mrf.mxu0  ;;  %v3726_v6 = vld [vmem:[%s5026_s9 + $0x10] sm:$0xff]  }
  0xfd   :  { %v482_v12 = vpop.f32.mrf.mxu1 }
  0xfe   :  { %v3406_v13 = vpop.f32.mrf.mxu0  ;;  %v4353_v55 = vpop.permute.xlu1 %630 }
  0xff   :  { %v3109_v14 = vpack.c.bf16 %v3406_v13, %v3405_v7  ;;  %v3438_v16 = vpop.f32.mrf.mxu1  ;;  %v628_v56 = vpop.permute.xlu0 %627  ;;  %v3727_v7 = vld [vmem:[%s5026_s9 + $0x8] sm:$0xff]  }
 0x100   :  { %v3149_v17 = vpack.c.bf16 %v3438_v16, %v3437_v8  ;;  %v244_v18 = vpop.f32.mrf.mxu0  ;;  %v3696_v36 = vld [vmem:[#allocation3 + $0x28] sm:$0xff]   ;;  %v3728_v8 = vld [vmem:[%s5026_s9] sm:$0xff]  }
 0x101   :  { %3157 = vst [vmem:[#allocation3 + $0x38] sm:$0xff] %v3109_v14   ;;  %v3104_v20 = vpack.c.bf16 %v244_v18, %v241_v10  ;;  %v485_v22 = vpop.f32.mrf.mxu1  ;;  %v3695_v34 = vld [vmem:[#allocation3 + $0x68] sm:$0xff]  }
 0x102   :  { %3165 = vst [vmem:[#allocation3 + $0x78] sm:$0xff] %v3149_v17   ;;  %v3144_v23 = vpack.c.bf16 %v485_v22, %v482_v12  ;;  %v3699_v40 = vld [vmem:[#allocation3 + $0x20] sm:$0xff]   ;;  %v727_v57 = vpop.permute.xlu1 %726  ;;  %v4447_v12 = vshrl.u32 %v577_v9, 7 }
 0x103   :  { %3156 = vst [vmem:[#allocation3 + $0x30] sm:$0xff] %v3104_v20   ;;  %v3698_v37 = vld [vmem:[#allocation3 + $0x60] sm:$0xff]   ;;  %v724_v58 = vpop.permute.xlu0 %723 }
 0x104   :  { %3164 = vst [vmem:[#allocation3 + $0x70] sm:$0xff] %v3144_v23   ;;  %v1336_v14 = vsub.s32 0, %v4447_v12  ;;  %v4453_v17 = vld [vmem:[%s5027_s13] sm:$0xff] }
 0x106   :  { %v637_v59 = vpop.permute.xlu1 %636  ;;  %v4456_v23 = vrot.slane %v4453_v17, %v1336_v14 }
 0x107   :  { %v634_v60 = vpop.permute.xlu0 %633 }
 0x108   :  { %v3690_v27 = vld [vmem:[#allocation3 + $0x38] sm:$0xff]   ;;  %v3457_v10 = vpop.f32.mrf.mxu0 }
 0x109   :  { %v3689_v29 = vld [vmem:[#allocation3 + $0x78] sm:$0xff]  }
 0x10a   :  { %3214 = vmatprep.subr.bf16.mxu1 %v3689_v29  ;;  %v3693_v32 = vld [vmem:[#allocation3 + $0x30] sm:$0xff]   ;;  %v733_v61 = vpop.permute.xlu1 %732  ;;  %v1078_v13 = vpop.f32.mrf.mxu0 }
 0x10b   :  { %v3692_v31 = vld [vmem:[#allocation3 + $0x70] sm:$0xff]   ;;  %3215 = vmatpush3.bf16.msra.mxu1 %v3690_v27  ;;  %v730_v62 = vpop.permute.xlu0 %729 }
 0x10c   :  { %3216 = vmatprep.subr.bf16.mxu1 %v3692_v31  ;;  %v3458_v20 = vpop.f32.mrf.mxu0 }
 0x10e   :  { %v643_v63 = vpop.permute.xlu1 %642  ;;  %v1081_v9 = vpop.f32.mrf.mxu0 }
 0x10f   :  { %3217 = vmatpush3.bf16.msra.mxu1 %v3693_v32  ;;  %v640_v0 = vpop.permute.xlu0 %639 }
 0x110   :  { %3218 = vmatprep.subr.bf16.mxu1 %v3695_v34  ;;  %v3461_v34 = vpop.f32.mrf.mxu0 }
 0x112   :  { %v739_v1 = vpop.permute.xlu1 %738 }
 0x113   :  { %3219 = vmatpush3.bf16.msra.mxu1 %v3696_v36  ;;  %v736_v2 = vpop.permute.xlu0 %735 }
 0x114   :  { %3220 = vmatprep.subr.bf16.mxu1 %v3698_v37 }
 0x117   :  { %3221 = vmatpush3.bf16.msra.mxu1 %v3699_v40 }
 0x118   :  { %3222 = vmatprep.subr.bf16.mxu1 %v3701_v41  ;;  %v1094_v41 = vpop.f32.mrf.mxu0 }
 0x11b   :  { %3223 = vmatpush3.bf16.msra.mxu1 %v3702_v42 }
 0x11c   :  { %3224 = vmatprep.subr.bf16.mxu1 %v3704_v44 }
 0x11f   :  { %3225 = vmatpush3.bf16.msra.mxu1 %v3705_v46 }
 0x120   :  { %3226 = vmatprep.subr.bf16.mxu1 %v3707_v47 }
 0x123   :  { %3227 = vmatpush3.bf16.msra.mxu1 %v3708_v50 }
 0x124   :  { %3228 = vmatprep.subr.bf16.mxu1 %v3710_v51 }
 0x127   :  { %3229 = vmatpush3.bf16.msra.mxu1 %v3711_v52 }
 0x12a   :  { %2894 = vmatmul.mubr.msk.bf16.vlgmr.msra.gmra.mxu1 %vm2893_vm6, %v3947_v25  ;;  %vm654_vm6 = vcmp.eq.s32.totalorder %v4227_v11, %v4302_v33 }
 0x12b   :  { %2896 = vmatprep.mubr.msk.bf16.mxu1 %vm2895_vm11, %v3947_v25  ;;  %vm755_vm11 = vcmp.eq.s32.totalorder %v4255_v21, %v4312_v48  ;;  %vm782_vm12 = vmor %vm654_vm6, %vm750_vm3  ;;  %vm656_vm6 = vcmp.eq.s32.totalorder %v4227_v11, %v4310_v45  ;;  %vm752_vm3 = vcmp.eq.s32.totalorder %v4227_v11, %v4314_v49  ;;  %v3462_v48 = vpop.f32.mrf.mxu0 }
 0x12c   :  { %vm787_vm0 = vmor %vm659_vm10, %vm755_vm11  ;;  %vm661_vm11 = vcmp.eq.s32.totalorder %v4255_v21, %v4324_v54 }
 0x12d   :  { %vm2903_vm7 = vmpackc.low %vm787_vm0, %vm785_vm1  ;;  %vm662_vm0 = vcmp.eq.s32.totalorder %v4227_v11, %v4322_v53  ;;  %vm758_vm1 = vcmp.eq.s32.totalorder %v4227_v11, %v721_v19 }
 0x12e   :  { %vm786_vm10 = vmor %vm658_vm2, %vm754_vm5  ;;  %vm756_vm2 = vcmp.eq.s32.totalorder %v4227_v11, %v718_v15 }
 0x12f   :  { %vm784_vm13 = vmor %vm656_vm6, %vm752_vm3  ;;  %vm667_vm6 = vcmp.eq.s32.totalorder %v4255_v21, %v4353_v55  ;;  %vm763_vm3 = vcmp.eq.s32.totalorder %v4255_v21, %v727_v57 }
 0x132   :  { %2898 = vmatmul.mubr.msk.bf16.gmra.mxu1 %vm2897_vm4, %v3947_v25  ;;  %vm2901_vm4 = vmpackc.low %vm782_vm12, %vm780_vm15  ;;  %vm757_vm12 = vcmp.eq.s32.totalorder %v4255_v21, %v718_v15 }
 0x133   :  { %2900 = vmatprep.mubr.msk.bf16.mxu1 %vm2899_vm9, %v3947_v25  ;;  %vm759_vm9 = vcmp.eq.s32.totalorder %v4255_v21, %v721_v19  ;;  %vm789_vm15 = vmor %vm661_vm11, %vm757_vm12  ;;  %v1097_v19 = vpop.f32.mrf.mxu0 }
 0x134   :  { %vm791_vm14 = vmor %vm663_vm8, %vm759_vm9  ;;  %vm665_vm9 = vcmp.eq.s32.totalorder %v4255_v21, %v628_v56 }
 0x135   :  { %vm2907_vm5 = vmpackc.low %vm791_vm14, %vm789_vm15  ;;  %vm666_vm14 = vcmp.eq.s32.totalorder %v4227_v11, %v4353_v55  ;;  %vm762_vm15 = vcmp.eq.s32.totalorder %v4227_v11, %v727_v57 }
 0x136   :  { %vm790_vm8 = vmor %vm662_vm0, %vm758_vm1  ;;  %vm760_vm0 = vcmp.eq.s32.totalorder %v4227_v11, %v724_v58 }
 0x137   :  { %vm795_vm12 = vmor %vm667_vm6, %vm763_vm3  ;;  %vm669_vm3 = vcmp.eq.s32.totalorder %v4255_v21, %v634_v60 }
 0x138   :  { %vm794_vm6 = vmor %vm666_vm14, %vm762_vm15  ;;  %vm764_vm14 = vcmp.eq.s32.totalorder %v4227_v11, %v730_v62 }
 0x13a   :  { %2902 = vmatmul.mubr.msk.bf16.gmra.mxu1 %vm2901_vm4, %v3947_v25  ;;  %vm2905_vm4 = vmpackc.low %vm786_vm10, %vm784_vm13  ;;  %vm761_vm10 = vcmp.eq.s32.totalorder %v4255_v21, %v724_v58 }
 0x13b   :  { %2904 = vmatprep.mubr.msk.bf16.mxu1 %vm2903_vm7, %v3947_v25  ;;  %vm660_vm7 = vcmp.eq.s32.totalorder %v4227_v11, %v4324_v54  ;;  %vm793_vm13 = vmor %vm665_vm9, %vm761_vm10 }
 0x13c   :  { %vm788_vm11 = vmor %vm660_vm7, %vm756_vm2  ;;  %vm671_vm2 = vcmp.eq.s32.totalorder %v4255_v21, %v637_v59  ;;  %vm767_vm7 = vcmp.eq.s32.totalorder %v4255_v21, %v733_v61 }
 0x13d   :  { %vm2911_vm1 = vmpackc.low %vm795_vm12, %vm793_vm13  ;;  %vm766_vm12 = vcmp.eq.s32.totalorder %v4227_v11, %v733_v61 }
 0x13e   :  { %vm799_vm10 = vmor %vm671_vm2, %vm767_vm7  ;;  %vm673_vm7 = vcmp.eq.s32.totalorder %v4255_v21, %v640_v0 }
 0x142   :  { %2906 = vmatmul.mubr.msk.bf16.gmra.mxu1 %vm2905_vm4, %v3947_v25  ;;  %vm2909_vm4 = vmpackc.low %vm790_vm8, %vm788_vm11  ;;  %vm765_vm8 = vcmp.eq.s32.totalorder %v4255_v21, %v730_v62  ;;  %v3465_v62 = vpop.f32.mrf.mxu0 }
 0x143   :  { %2908 = vmatprep.mubr.msk.bf16.mxu1 %vm2907_vm5, %v3947_v25  ;;  %vm664_vm5 = vcmp.eq.s32.totalorder %v4227_v11, %v628_v56  ;;  %vm797_vm11 = vmor %vm669_vm3, %vm765_vm8  ;;  %vm769_vm3 = vcmp.eq.s32.totalorder %v4255_v21, %v736_v2 }
 0x144   :  { %vm792_vm9 = vmor %vm664_vm5, %vm760_vm0  ;;  %vm675_vm0 = vcmp.eq.s32.totalorder %v4255_v21, %v643_v63  ;;  %vm771_vm5 = vcmp.eq.s32.totalorder %v4255_v21, %v739_v1  ;;  %v3721_v21 = vld [vmem:[%s5026_s9 + $0x38] sm:$0xff]  }
 0x145   :  { %vm2913_vm13 = vmpackc.low %vm794_vm6, %vm792_vm9  ;;  %3471 = vmatprep.subr.bf16.mxu0 %v3721_v21 }
 0x146   :  { %vm2915_vm15 = vmpackc.low %vm799_vm10, %vm797_vm11  ;;  %vm674_vm10 = vcmp.eq.s32.totalorder %v4227_v11, %v643_v63  ;;  %vm770_vm11 = vcmp.eq.s32.totalorder %v4227_v11, %v739_v1  ;;  %3472 = vmatpush3.bf16.msra.mxu0 %v3721_v21 }
 0x147   :  { %vm803_vm6 = vmor %vm675_vm0, %vm771_vm5  ;;  %3473 = vmatprep.subr.bf16.mxu0 %v3722_v3 }
 0x148   :  { %vm801_vm9 = vmor %vm673_vm7, %vm769_vm3 }
 0x14a   :  { %2910 = vmatmul.mubr.msk.bf16.gmra.mxu1 %vm2909_vm4, %v3947_v25  ;;  %vm670_vm4 = vcmp.eq.s32.totalorder %v4227_v11, %v637_v59  ;;  %3474 = vmatpush3.bf16.msra.mxu0 %v3722_v3 }
 0x14b   :  { %2912 = vmatprep.mubr.msk.bf16.mxu1 %vm2911_vm1, %v3947_v25  ;;  %vm668_vm1 = vcmp.eq.s32.totalorder %v4227_v11, %v634_v60  ;;  %vm798_vm2 = vmor %vm670_vm4, %vm766_vm12  ;;  %vm672_vm4 = vcmp.eq.s32.totalorder %v4227_v11, %v640_v0  ;;  %vm768_vm12 = vcmp.eq.s32.totalorder %v4227_v11, %v736_v2  ;;  %v3723_v11 = vld [vmem:[%s5026_s9 + $0x28] sm:$0xff]  }
 0x14c   :  { %vm796_vm8 = vmor %vm668_vm1, %vm764_vm14  ;;  %3475 = vmatprep.subr.bf16.mxu0 %v3723_v11 }
 0x14d   :  { %vm802_vm1 = vmor %vm674_vm10, %vm770_vm11 }
 0x14e   :  { %vm800_vm14 = vmor %vm672_vm4, %vm768_vm12  ;;  %3476 = vmatpush3.bf16.msra.mxu0 %v3723_v11 }
 0x14f   :  { %vm2921_vm0 = vmpackc.low %vm802_vm1, %vm800_vm14  ;;  %3477 = vmatprep.subr.bf16.mxu0 %v3724_v4 }
 0x152   :  { %2914 = vmatmul.mubr.msk.bf16.gmra.mxu1 %vm2913_vm13, %v3947_v25  ;;  %vm2917_vm13 = vmpackc.low %vm798_vm2, %vm796_vm8  ;;  %3478 = vmatpush3.bf16.msra.mxu0 %v3724_v4 }
 0x153   :  { %2916 = vmatprep.mubr.msk.bf16.mxu1 %vm2915_vm15, %v3947_v25  ;;  %vm2919_vm15 = vmpackc.low %vm803_vm6, %vm801_vm9  ;;  %3479 = vmatprep.subr.bf16.mxu0 %v3725_v5 }
 0x156   :  { %3480 = vmatpush3.bf16.msra.mxu0 %v3725_v5  ;;  %v1110_v5 = vpop.f32.mrf.mxu0 }
 0x157   :  { %3481 = vmatprep.subr.bf16.mxu0 %v3726_v6 }
 0x15a   :  { %2918 = vmatmul.mubr.msk.bf16.gmra.mxu1 %vm2917_vm13, %v3947_v25  ;;  %3482 = vmatpush3.bf16.msra.mxu0 %v3726_v6 }
 0x15b   :  { %2920 = vmatprep.mubr.msk.bf16.mxu1 %vm2919_vm15, %v3947_v25  ;;  %3483 = vmatprep.subr.bf16.mxu0 %v3727_v7 }
 0x15e   :  { %3484 = vmatpush3.bf16.msra.mxu0 %v3727_v7 }
 0x15f   :  { %3485 = vmatprep.subr.bf16.mxu0 %v3728_v8 }
 0x162   :  { %2922 = vmatmul.mubr.msk.bf16.gmra.mxu1 %vm2921_vm0, %v3947_v25  ;;  %3486 = vmatpush3.bf16.msra.mxu0 %v3728_v8 }
 0x1ea   :  { %v3230_v16 = vpop.f32.mrf.mxu1 }
 0x1ec   :  { %v3231_v18 = vpop.f32.mrf.mxu1 }
 0x1ed   :  { %v3232_v22 = vadd.f32 %v3231_v18, %v3230_v16 }
 0x1ee   :  { %v3233_v24 = vpop.f32.mrf.mxu1 }
 0x1ef   :  { %v1272_v26 = vadd.f32 %v3232_v22, %v1078_v13 }
 0x1f0   :  { %v3234_v27 = vpop.f32.mrf.mxu1 }
 0x1f1   :  { %v4459_v28 = vadd.f32 %v4456_v23, %v1272_v26  ;;  %v3235_v29 = vadd.f32 %v3234_v27, %v3233_v24 }
 0x1f2   :  { %v3236_v30 = vpop.f32.mrf.mxu1 }
 0x1f3   :  { %v2923_v31 = vmul.f32 -1.442695, %v4459_v28  ;;  %v1275_v32 = vadd.f32 %v3235_v29, %v1081_v9 }
 0x1f4   :  { %v3237_v33 = vpop.f32.mrf.mxu1 }
 0x1f5   :  { %3753 = vpow2.f32 %v2923_v31  ;;  %v4463_v35 = vadd.f32 %v4456_v23, %v1275_v32  ;;  %v3238_v36 = vadd.f32 %v3237_v33, %v3236_v30 }
 0x1f6   :  { %v3239_v37 = vpop.f32.mrf.mxu1 }
 0x1f7   :  { %v2924_v38 = vmul.f32 -1.442695, %v4463_v35  ;;  %v1280_v39 = vadd.f32 %v3457_v10, %v3238_v36 }
 0x1f8   :  { %v3240_v40 = vpop.f32.mrf.mxu1 }
 0x1f9   :  { %3755 = vpow2.f32 %v2924_v38  ;;  %v4467_v42 = vadd.f32 %v4456_v23, %v1280_v39  ;;  %v3241_v43 = vadd.f32 %v3240_v40, %v3239_v37 }
 0x1fa   :  { %v3242_v44 = vpop.f32.mrf.mxu1 }
 0x1fb   :  { %v2925_v45 = vmul.f32 -1.442695, %v4467_v42  ;;  %v1283_v46 = vadd.f32 %v3458_v20, %v3241_v43  ;;  %v3466_v20 = vpop.f32.mrf.mxu0 }
 0x1fc   :  { %v3243_v47 = vpop.f32.mrf.mxu1 }
 0x1fd   :  { %3757 = vpow2.f32 %v2925_v45  ;;  %v4471_v49 = vadd.f32 %v4456_v23, %v1283_v46  ;;  %v3244_v50 = vadd.f32 %v3243_v47, %v3242_v44  ;;  %v1113_v32 = vpop.f32.mrf.mxu0 }
 0x1fe   :  { %v3245_v51 = vpop.f32.mrf.mxu1 }
 0x1ff   :  { %v2926_v52 = vmul.f32 -1.442695, %v4471_v49  ;;  %v1288_v53 = vadd.f32 %v3244_v50, %v1094_v41  ;;  %v4494_v44 = vpop.f32.mrf.mxu0 }
 0x200   :  { %v3246_v54 = vpop.f32.mrf.mxu1 }
 0x201   :  { %3759 = vpow2.f32 %v2926_v52  ;;  %v4475_v15 = vadd.f32 %v4456_v23, %v1288_v53  ;;  %v3247_v55 = vadd.f32 %v3246_v54, %v3245_v51 }
 0x202   :  { %v3754_v56 = vpop.eup %3753  ;;  %v3248_v57 = vpop.f32.mrf.mxu1 }
 0x203   :  { %v1402_v58 = vadd.f32 1.0, %v3754_v56  ;;  %v2927_v59 = vmul.f32 -1.442695, %v4475_v15  ;;  %v1291_v60 = vadd.f32 %v3247_v55, %v1097_v19  ;;  %v1126_v56 = vpop.f32.mrf.mxu0 }
 0x204   :  { %v3249_v61 = vpop.f32.mrf.mxu1 }
 0x205   :  { %v4479_v63 = vadd.f32 %v4456_v23, %v1291_v60  ;;  %v3250_v0 = vadd.f32 %v3249_v61, %v3248_v57  ;;  %3761 = vpow2.f32 %v2927_v59 }
 0x206   :  { %v3756_v1 = vpop.eup %3755  ;;  %v3251_v2 = vpop.f32.mrf.mxu1  ;;  %3763 = vrcp.f32 %v1402_v58 }
 0x207   :  { %v1403_v21 = vadd.f32 1.0, %v3756_v1  ;;  %v2928_v3 = vmul.f32 -1.442695, %v4479_v63  ;;  %v1296_v11 = vadd.f32 %v3461_v34, %v3250_v0 }
 0x208   :  { %v3252_v4 = vpop.f32.mrf.mxu1 }
 0x209   :  { %3765 = vrcp.f32 %v1403_v21  ;;  %v4483_v6 = vadd.f32 %v4456_v23, %v1296_v11  ;;  %v3253_v7 = vadd.f32 %v3252_v4, %v3251_v2  ;;  %v3470_v2 = vpop.f32.mrf.mxu0 }
 0x20a   :  { %v3758_v8 = vpop.eup %3757  ;;  %3767 = vpow2.f32 %v2928_v3  ;;  %v3254_v10 = vpop.f32.mrf.mxu1 }
 0x20b   :  { %v1404_v13 = vadd.f32 1.0, %v3758_v8  ;;  %v2929_v14 = vmul.f32 -1.442695, %v4483_v6  ;;  %v1299_v16 = vadd.f32 %v3462_v48, %v3253_v7 }
 0x20c   :  { %v3255_v18 = vpop.f32.mrf.mxu1 }
 0x20d   :  { %v4487_v22 = vadd.f32 %v4456_v23, %v1299_v16  ;;  %v3256_v24 = vadd.f32 %v3255_v18, %v3254_v10  ;;  %3769 = vpow2.f32 %v2929_v14  ;;  %v1129_v18 = vpop.f32.mrf.mxu0 }
 0x20e   :  { %v3760_v26 = vpop.eup %3759  ;;  %v3257_v27 = vpop.f32.mrf.mxu1  ;;  %3771 = vrcp.f32 %v1404_v13 }
 0x20f   :  { %v1405_v9 = vadd.f32 1.0, %v3760_v26  ;;  %v2930_v29 = vmul.f32 -1.442695, %v4487_v22  ;;  %v1304_v30 = vadd.f32 %v3256_v24, %v1110_v5 }
 0x210   :  { %v3258_v31 = vpop.f32.mrf.mxu1 }
 0x211   :  { %3773 = vrcp.f32 %v1405_v9  ;;  %v4491_v33 = vadd.f32 %v4456_v23, %v1304_v30  ;;  %v3259_v34 = vadd.f32 %v3258_v31, %v3257_v27 }
 0x212   :  { %3775 = vpow2.f32 %v2930_v29  ;;  %v3260_v36 = vpop.f32.mrf.mxu1  ;;  %v3762_v37 = vpop.eup %3761 }
 0x213   :  { %v2931_v38 = vmul.f32 -1.442695, %v4491_v33  ;;  %v1307_v39 = vadd.f32 %v3259_v34, %v1113_v32  ;;  %v3764_v40 = vpop.eup %3763  ;;  %v1406_v41 = vadd.f32 1.0, %v3762_v37 }
 0x214   :  { %v3261_v43 = vpop.f32.mrf.mxu1  ;;  %v1450_v51 = vmul.f32 %v3764_v40, %v4459_v28 }
 0x215   :  { %3777 = vpow2.f32 %v2931_v38  ;;  %v4497_v45 = vadd.f32 %v4456_v23, %v1307_v39  ;;  %v3262_v46 = vadd.f32 %v3261_v43, %v3260_v36 }
 0x216   :  { %v3766_v47 = vpop.eup %3765  ;;  %v3263_v48 = vpop.f32.mrf.mxu1  ;;  %3779 = vrcp.f32 %v1406_v41 }
 0x217   :  { %v3768_v50 = vpop.eup %3767  ;;  %v1451_v52 = vmul.f32 %v3766_v47, %v4463_v35  ;;  %v2932_v53 = vmul.f32 -1.442695, %v4497_v45  ;;  %v1312_v54 = vadd.f32 %v3465_v62, %v3262_v46 }
 0x218   :  { %v1407_v19 = vadd.f32 1.0, %v3768_v50  ;;  %v3264_v55 = vpop.f32.mrf.mxu1 }
 0x219   :  { %3781 = vpow2.f32 %v2932_v53  ;;  %v4503_v57 = vadd.f32 %v4456_v23, %v1312_v54  ;;  %v3265_v58 = vadd.f32 %v3264_v55, %v3263_v48  ;;  %v1466_v59 = vpack.c.bf16 %v1451_v52, %v1450_v51 }
 0x21a   :  { %3783 = vrcp.f32 %v1407_v19  ;;  %v3266_v60 = vpop.f32.mrf.mxu1  ;;  %v3770_v61 = vpop.eup %3769 }
 0x21b   :  { %v2933_v28 = vmul.f32 -1.442695, %v4503_v57  ;;  %v1315_v0 = vadd.f32 %v3466_v20, %v3265_v58  ;;  %3487 = vmatprep.mubr.bf16.mxu0 %v1466_v59  ;;  %v3772_v35 = vpop.eup %3771  ;;  %v1408_v1 = vadd.f32 1.0, %v3770_v61 }
 0x21c   :  { %v3267_v62 = vpop.f32.mrf.mxu1  ;;  %v1452_v7 = vmul.f32 %v3772_v35, %v4467_v42 }
 0x21d   :  { %3785 = vpow2.f32 %v2933_v28  ;;  %v4507_v21 = vadd.f32 %v4456_v23, %v1315_v0  ;;  %v3268_v3 = vadd.f32 %v3267_v62, %v3266_v60 }
 0x21e   :  { %v3774_v11 = vpop.eup %3773  ;;  %v3269_v4 = vpop.f32.mrf.mxu1  ;;  %3787 = vrcp.f32 %v1408_v1 }
 0x21f   :  { %v3776_v5 = vpop.eup %3775  ;;  %v1453_v8 = vmul.f32 %v3774_v11, %v4471_v49  ;;  %v2934_v10 = vmul.f32 -1.442695, %v4507_v21  ;;  %v1320_v13 = vadd.f32 %v3268_v3, %v1126_v56 }
 0x220   :  { %v1409_v14 = vadd.f32 1.0, %v3776_v5  ;;  %v3270_v16 = vpop.f32.mrf.mxu1 }
 0x221   :  { %v1467_v20 = vpack.c.bf16 %v1453_v8, %v1452_v7  ;;  %3789 = vpow2.f32 %v2934_v10  ;;  %v4513_v24 = vadd.f32 %v4456_v23, %v1320_v13  ;;  %v3271_v26 = vadd.f32 %v3270_v16, %v3269_v4 }
 0x222   :  { %v3778_v27 = vpop.eup %3777  ;;  %3791 = vrcp.f32 %v1409_v14  ;;  %v3272_v9 = vpop.f32.mrf.mxu1 }
 0x223   :  { %v1410_v29 = vadd.f32 1.0, %v3778_v27  ;;  %v2935_v42 = vmul.f32 -1.442695, %v4513_v24  ;;  %v1323_v49 = vadd.f32 %v3271_v26, %v1129_v18  ;;  %3488 = vmatmul.mubr.bf16.vlgmr.msra.gmra.mxu0 %v1467_v20  ;;  %v3780_v31 = vpop.eup %3779 }
 0x224   :  { %v3273_v30 = vpop.f32.mrf.mxu1  ;;  %v1454_v43 = vmul.f32 %v3780_v31, %v4475_v15 }
 0x225   :  { %v4517_v32 = vadd.f32 %v4456_v23, %v1323_v49  ;;  %v3274_v34 = vadd.f32 %v3273_v30, %v3272_v9  ;;  %3793 = vpow2.f32 %v2935_v42  ;;  %v4537_v42 = vld [vmem:[%s5028_s3] ss:$0 sm:$0xff] }
 0x226   :  { %v3782_v36 = vpop.eup %3781  ;;  %v3275_v37 = vpop.f32.mrf.mxu1  ;;  %3795 = vrcp.f32 %v1410_v29  ;;  %vm1781_vm5 = vcmp.eq.s32.totalorder %v4537_v42, %v4447_v12 }
 0x227   :  { %v3784_v38 = vpop.eup %3783  ;;  %v1411_v39 = vadd.f32 1.0, %v3782_v36  ;;  %v2936_v40 = vmul.f32 -1.442695, %v4517_v32  ;;  %v1328_v41 = vadd.f32 %v4494_v44, %v3274_v34  ;;  %v3729_v34 = vld [vmem:[%s5029_s11 + $0x38] sm:$0xff]   ;;  %v3730_v36 = vld [vmem:[%s5029_s11 + $0x30] sm:$0xff]  }
 0x228   :  { %v1455_v46 = vmul.f32 %v3784_v38, %v4479_v63  ;;  %v3276_v47 = vpop.f32.mrf.mxu1  ;;  %3535 = vmatprep.subr.bf16.mxu1 %v3729_v34  ;;  %v3731_v38 = vld [vmem:[%s5029_s11 + $0x28] sm:$0xff]  }
 0x229   :  { %3797 = vrcp.f32 %v1411_v39  ;;  %v1352_v48 = vadd.f32 %v4456_v23, %v1328_v41  ;;  %v3277_v50 = vadd.f32 %v3276_v47, %v3275_v37  ;;  %3536 = vmatpush3.bf16.msra.mxu1 %v3729_v34  ;;  %v3738_v47 = vld [vmem:[%s5029_s11 + $0x10] sm:$0xff]  }
 0x22a   :  { %v3786_v51 = vpop.eup %3785  ;;  %3799 = vpow2.f32 %v2936_v40  ;;  %v1468_v52 = vpack.c.bf16 %v1455_v46, %v1454_v43  ;;  %3537 = vmatprep.subr.bf16.mxu1 %v3730_v36  ;;  %v3732_v40 = vld [vmem:[%s5029_s11 + $0x20] sm:$0xff]   ;;  %v3735_v43 = vld [vmem:[%s5029_s11 + $0x18] sm:$0xff]  }
 0x22b   :  { %v1412_v53 = vadd.f32 1.0, %v3786_v51  ;;  %v2937_v54 = vmul.f32 -1.442695, %v1352_v48  ;;  %v1331_v19 = vadd.f32 %v3470_v2, %v3277_v50  ;;  %v3788_v55 = vpop.eup %3787  ;;  %v1492_v50 = vsub.s32 1, %v4447_v12  ;;  %v3741_v51 = vld [vmem:[%s5029_s11 + $0x8] sm:$0xff]  }
 0x22c   :  { %3491 = vmatprep.mubr.bf16.mxu0 %v1468_v52  ;;  %v1456_v59 = vmul.f32 %v3788_v55, %v4483_v6 }
 0x22d   :  { %v1353_v56 = vadd.f32 %v4456_v23, %v1331_v19  ;;  %3801 = vpow2.f32 %v2937_v54  ;;  %3538 = vmatpush3.bf16.msra.mxu1 %v3730_v36 }
 0x22e   :  { %v3790_v44 = vpop.eup %3789  ;;  %3803 = vrcp.f32 %v1412_v53  ;;  %3539 = vmatprep.subr.bf16.mxu1 %v3731_v38  ;;  %v1493_v53 = vrot.slane %v4453_v17, %v1492_v50 }
 0x22f   :  { %v3792_v15 = vpop.eup %3791  ;;  %v1413_v63 = vadd.f32 1.0, %v3790_v44  ;;  %v2938_v58 = vmul.f32 -1.442695, %v1353_v56 }
 0x230   :  { %v1457_v60 = vmul.f32 %v3792_v15, %v4487_v22 }
 0x231   :  { %3805 = vrcp.f32 %v1413_v63  ;;  %3540 = vmatpush3.bf16.msra.mxu1 %v3731_v38 }
 0x232   :  { %3807 = vpow2.f32 %v2938_v58  ;;  %v1469_v61 = vpack.c.bf16 %v1457_v60, %v1456_v59  ;;  %v3794_v28 = vpop.eup %3793  ;;  %3541 = vmatprep.subr.bf16.mxu1 %v3732_v40 }
 0x233   :  { %v3796_v0 = vpop.eup %3795  ;;  %v1414_v35 = vadd.f32 1.0, %v3794_v28 }
 0x234   :  { %3492 = vmatmul.mubr.bf16.gmra.mxu0 %v1469_v61  ;;  %v1458_v23 = vmul.f32 %v3796_v0, %v4491_v33 }
 0x235   :  { %3809 = vrcp.f32 %v1414_v35  ;;  %3542 = vmatpush3.bf16.msra.mxu1 %v3732_v40 }
 0x236   :  { %v3798_v1 = vpop.eup %3797  ;;  %3543 = vmatprep.subr.bf16.mxu1 %v3735_v43 }
 0x237   :  { %v3800_v62 = vpop.eup %3799  ;;  %v1459_v2 = vmul.f32 %v3798_v1, %v4497_v45 }
 0x238   :  { %v1415_v3 = vadd.f32 1.0, %v3800_v62 }
 0x239   :  { %v1470_v11 = vpack.c.bf16 %v1459_v2, %v1458_v23  ;;  %3544 = vmatpush3.bf16.msra.mxu1 %v3735_v43 }
 0x23a   :  { %3811 = vrcp.f32 %v1415_v3  ;;  %v3802_v6 = vpop.eup %3801  ;;  %3545 = vmatprep.subr.bf16.mxu1 %v3738_v47 }
 0x23b   :  { %3495 = vmatprep.mubr.bf16.mxu0 %v1470_v11  ;;  %v3804_v22 = vpop.eup %3803  ;;  %v1416_v4 = vadd.f32 1.0, %v3802_v6 }
 0x23c   :  { %v1460_v8 = vmul.f32 %v3804_v22, %v4503_v57 }
 0x23d   :  { %3813 = vrcp.f32 %v1416_v4  ;;  %3546 = vmatpush3.bf16.msra.mxu1 %v3738_v47 }
 0x23e   :  { %v3806_v5 = vpop.eup %3805  ;;  %3547 = vmatprep.subr.bf16.mxu1 %v3741_v51 }
 0x23f   :  { %v3808_v7 = vpop.eup %3807  ;;  %v1461_v10 = vmul.f32 %v3806_v5, %v4507_v21  ;;  %v1762_v21 = vadd.s32 8, %v4447_v12 }
 0x240   :  { %v1417_v13 = vadd.f32 1.0, %v3808_v7 }
 0x241   :  { %v1471_v14 = vpack.c.bf16 %v1461_v10, %v1460_v8  ;;  %vm1782_vm2 = vcmp.eq.s32.totalorder %v4537_v42, %v1762_v21  ;;  %3548 = vmatpush3.bf16.msra.mxu1 %v3741_v51 }
 0x242   :  { %3815 = vrcp.f32 %v1417_v13  ;;  %v3810_v33 = vpop.eup %3809  ;;  %vm2980_vm7 = vmpackc.low %vm1782_vm2, %vm1781_vm5 }
 0x243   :  { %3496 = vmatmul.mubr.bf16.gmra.mxu0 %v1471_v14  ;;  %v1462_v16 = vmul.f32 %v3810_v33, %v4513_v24 }
 0x247   :  { %v3812_v45 = vpop.eup %3811 }
 0x248   :  { %v1463_v18 = vmul.f32 %v3812_v45, %v4517_v32 }
 0x24a   :  { %v1472_v20 = vpack.c.bf16 %v1463_v18, %v1462_v16  ;;  %v3814_v26 = vpop.eup %3813 }
 0x24b   :  { %v1464_v9 = vmul.f32 %v3814_v26, %v1352_v48 }
 0x24c   :  { %3499 = vmatprep.mubr.bf16.mxu0 %v1472_v20 }
 0x24f   :  { %v3816_v27 = vpop.eup %3815 }
 0x250   :  { %v1465_v29 = vmul.f32 %v3816_v27, %v1353_v56 }
 0x252   :  { %v1473_v57 = vpack.c.bf16 %v1465_v29, %v1464_v9 }
 0x254   :  { %3500 = vmatmul.mubr.bf16.gmra.mxu0 %v1473_v57 }
 0x255   :  { %3519 = vmatprep.mubr.msk.bf16.mxu0 %vm2980_vm7, %v3947_v25 }
 0x2e3   :  { %v4543_v24 = vpop.f32.mrf.mxu0 }
 0x2e4   :  { %v4603_v4 = vadd.f32 %v4543_v24, %v1493_v53 }
 0x2e5   :  { %v4545_v49 = vpop.f32.mrf.mxu0 }
 0x2e6   :  { %v2949_v14 = vmul.f32 -1.442695, %v4603_v4  ;;  %v4623_v57 = vadd.f32 %v4545_v49, %v1493_v53 }
 0x2e7   :  { %v4547_v30 = vpop.f32.mrf.mxu0 }
 0x2e8   :  { %v4609_v8 = vadd.f32 %v4547_v30, %v1493_v53 }
 0x2e9   :  { %v4549_v31 = vpop.f32.mrf.mxu0 }
 0x2ea   :  { %v4616_v33 = vadd.f32 %v4549_v31, %v1493_v53  ;;  %v2950_v16 = vmul.f32 -1.442695, %v4609_v8 }
 0x2ec   :  { %v2948_v26 = vmul.f32 -1.442695, %v4616_v33 }
 0x2f4   :  { %v3493_v32 = vpop.f32.mrf.mxu0 }
 0x2f5   :  { %v4598_v11 = vadd.f32 %v3493_v32, %v1493_v53 }
 0x2f6   :  { %v1592_v37 = vpop.f32.mrf.mxu0 }
 0x2f7   :  { %v2953_v10 = vmul.f32 -1.442695, %v4598_v11  ;;  %v4612_v13 = vadd.f32 %v1592_v37, %v1493_v53  ;;  %v2947_v37 = vmul.f32 -1.442695, %v4623_v57 }
 0x2f8   :  { %v3494_v39 = vpop.f32.mrf.mxu0 }
 0x2f9   :  { %v4593_v23 = vadd.f32 %v3494_v39, %v1493_v53  ;;  %v2951_v18 = vmul.f32 -1.442695, %v4612_v13 }
 0x2fa   :  { %v1595_v41 = vpop.f32.mrf.mxu0 }
 0x2fb   :  { %v2954_v5 = vmul.f32 -1.442695, %v4593_v23  ;;  %v4606_v7 = vadd.f32 %v1595_v41, %v1493_v53 }
 0x2fd   :  { %v2952_v45 = vmul.f32 -1.442695, %v4606_v7 }
 0x303   :  { %v3497_v46 = vpop.f32.mrf.mxu0 }
 0x304   :  { %v4576_v55 = vadd.f32 %v3497_v46, %v1493_v53 }
 0x305   :  { %v1608_v48 = vpop.f32.mrf.mxu0 }
 0x306   :  { %v2957_v17 = vmul.f32 -1.442695, %v4576_v55  ;;  %v4587_v28 = vadd.f32 %v1608_v48, %v1493_v53 }
 0x307   :  { %v3498_v52 = vpop.f32.mrf.mxu0 }
 0x308   :  { %v4574_v54 = vadd.f32 %v3498_v52, %v1493_v53  ;;  %v2955_v6 = vmul.f32 -1.442695, %v4587_v28 }
 0x309   :  { %v1611_v19 = vpop.f32.mrf.mxu0 }
 0x30a   :  { %v2958_v15 = vmul.f32 -1.442695, %v4574_v54  ;;  %v4581_v63 = vadd.f32 %v1611_v19, %v1493_v53 }
 0x30c   :  { %v2956_v1 = vmul.f32 -1.442695, %v4581_v63 }
 0x314   :  { %v3501_v56 = vpop.f32.mrf.mxu0 }
 0x315   :  { %v4578_v44 = vadd.f32 %v3501_v56, %v1493_v53 }
 0x316   :  { %v1624_v58 = vpop.f32.mrf.mxu0 }
 0x317   :  { %v2961_v59 = vmul.f32 -1.442695, %v4578_v44  ;;  %v4584_v60 = vadd.f32 %v1624_v58, %v1493_v53 }
 0x318   :  { %v3502_v61 = vpop.f32.mrf.mxu0 }
 0x319   :  { %3817 = vpow2.f32 %v2961_v59  ;;  %v2959_v0 = vmul.f32 -1.442695, %v4584_v60  ;;  %v4590_v35 = vadd.f32 %v3502_v61, %v1493_v53 }
 0x31a   :  { %3819 = vpow2.f32 %v2958_v15  ;;  %v1627_v62 = vpop.f32.mrf.mxu0 }
 0x31b   :  { %3821 = vpow2.f32 %v2959_v0  ;;  %v2962_v2 = vmul.f32 -1.442695, %v4590_v35  ;;  %v4596_v3 = vadd.f32 %v1627_v62, %v1493_v53 }
 0x31c   :  { %3823 = vpow2.f32 %v2957_v17 }
 0x31d   :  { %3825 = vpow2.f32 %v2962_v2  ;;  %v2960_v22 = vmul.f32 -1.442695, %v4596_v3 }
 0x31e   :  { %3827 = vpow2.f32 %v2956_v1 }
 0x31f   :  { %3829 = vpow2.f32 %v2960_v22 }
 0x320   :  { %3831 = vpow2.f32 %v2955_v6 }
 0x321   :  { %3833 = vpow2.f32 %v2954_v5 }
 0x322   :  { %3835 = vpow2.f32 %v2953_v10 }
 0x323   :  { %3837 = vpow2.f32 %v2949_v14 }
 0x324   :  { %3839 = vpow2.f32 %v2952_v45 }
 0x325   :  { %3841 = vpow2.f32 %v2950_v16 }
 0x326   :  { %v3818_v20 = vpop.eup %3817  ;;  %3843 = vpow2.f32 %v2951_v18 }
 0x327   :  { %v3820_v27 = vpop.eup %3819  ;;  %v1701_v9 = vadd.f32 1.0, %v3818_v20  ;;  %3845 = vpow2.f32 %v2948_v26 }
 0x328   :  { %v3822_v29 = vpop.eup %3821  ;;  %v1698_v31 = vadd.f32 1.0, %v3820_v27 }
 0x329   :  { %v3824_v21 = vpop.eup %3823  ;;  %v1699_v24 = vadd.f32 1.0, %v3822_v29  ;;  %3847 = vrcp.f32 %v1701_v9 }
 0x32a   :  { %v3826_v30 = vpop.eup %3825  ;;  %v1697_v38 = vadd.f32 1.0, %v3824_v21 }
 0x32b   :  { %v3828_v32 = vpop.eup %3827  ;;  %v1702_v34 = vadd.f32 1.0, %v3826_v30  ;;  %3849 = vrcp.f32 %v1699_v24 }
 0x32c   :  { %v3830_v36 = vpop.eup %3829  ;;  %v1696_v49 = vadd.f32 1.0, %v3828_v32 }
 0x32d   :  { %3851 = vrcp.f32 %v1702_v34  ;;  %v1700_v39 = vadd.f32 1.0, %v3830_v36  ;;  %v3832_v40 = vpop.eup %3831 }
 0x32e   :  { %3853 = vrcp.f32 %v1698_v31  ;;  %v3834_v41 = vpop.eup %3833  ;;  %v1695_v43 = vadd.f32 1.0, %v3832_v40 }
 0x32f   :  { %3855 = vrcp.f32 %v1700_v39  ;;  %v3836_v46 = vpop.eup %3835  ;;  %v1694_v48 = vadd.f32 1.0, %v3834_v41  ;;  %v1764_v41 = vadd.s32 24, %v4447_v12 }
 0x330   :  { %3857 = vpow2.f32 %v2947_v37  ;;  %v3838_v47 = vpop.eup %3837  ;;  %v1693_v52 = vadd.f32 1.0, %v3836_v46 }
 0x331   :  { %3859 = vrcp.f32 %v1697_v38  ;;  %v3840_v50 = vpop.eup %3839  ;;  %v1689_v6 = vadd.f32 1.0, %v3838_v47  ;;  %vm1784_vm8 = vcmp.eq.s32.totalorder %v4537_v42, %v1764_v41  ;;  %v3734_v47 = vld [vmem:[%s5030_s10 + $0x30] sm:$0xff]  }
 0x332   :  { %3861 = vrcp.f32 %v1696_v49  ;;  %v3842_v51 = vpop.eup %3841  ;;  %v1692_v56 = vadd.f32 1.0, %v3840_v50  ;;  %v1770_v50 = vadd.s32 72, %v4447_v12 }
 0x333   :  { %3863 = vrcp.f32 %v1695_v43  ;;  %v3844_v53 = vpop.eup %3843  ;;  %v1690_v0 = vadd.f32 1.0, %v3842_v51  ;;  %v1766_v43 = vadd.s32 40, %v4447_v12  ;;  %v3736_v51 = vld [vmem:[%s5030_s10 + $0x28] sm:$0xff]  }
 0x334   :  { %v3846_v19 = vpop.eup %3845  ;;  %3865 = vrcp.f32 %v1694_v48  ;;  %v1691_v59 = vadd.f32 1.0, %v3844_v53  ;;  %v1769_v48 = vadd.s32 64, %v4447_v12  ;;  %vm1790_vm12 = vcmp.eq.s32.totalorder %v4537_v42, %v1770_v50  ;;  %v3746_v50 = vld [vmem:[%s5031_s12 + $0x30] sm:$0xff]  }
 0x335   :  { %3867 = vrcp.f32 %v1693_v52  ;;  %v1688_v16 = vadd.f32 1.0, %v3846_v19  ;;  %vm1786_vm9 = vcmp.eq.s32.totalorder %v4537_v42, %v1766_v43  ;;  %v1771_v52 = vadd.s32 80, %v4447_v12  ;;  %v3737_v19 = vld [vmem:[%s5030_s10 + $0x20] sm:$0xff]  }
 0x336   :  { %v3848_v15 = vpop.eup %3847  ;;  %3869 = vrcp.f32 %v1692_v56  ;;  %vm1789_vm4 = vcmp.eq.s32.totalorder %v4537_v42, %v1769_v48  ;;  %v1772_v53 = vadd.s32 88, %v4447_v12  ;;  %v1773_v56 = vadd.s32 96, %v4447_v12  ;;  %v3745_v48 = vld [vmem:[%s5031_s12 + $0x38] sm:$0xff]  }
 0x337   :  { %v1749_v1 = vmul.f32 %v3848_v15, %v4578_v44  ;;  %3871 = vrcp.f32 %v1691_v59  ;;  %vm2988_vm14 = vmpackc.low %vm1790_vm12, %vm1789_vm4  ;;  %v1774_v15 = vadd.s32 104, %v4447_v12  ;;  %vm1791_vm0 = vcmp.eq.s32.totalorder %v4537_v42, %v1771_v52  ;;  %v3748_v52 = vld [vmem:[%s5031_s12 + $0x20] sm:$0xff]  }
 0x338   :  { %v3850_v58 = vpop.eup %3849  ;;  %3873 = vrcp.f32 %v1690_v0  ;;  %vm1792_vm5 = vcmp.eq.s32.totalorder %v4537_v42, %v1772_v53  ;;  %vm1793_vm2 = vcmp.eq.s32.totalorder %v4537_v42, %v1773_v56  ;;  %v1775_v59 = vadd.s32 112, %v4447_v12  ;;  %v3742_v0 = vld [vmem:[%s5030_s10 + $0x8] sm:$0xff]   ;;  %v3749_v53 = vld [vmem:[%s5031_s12 + $0x18] sm:$0xff]  }
 0x339   :  { %v1747_v5 = vmul.f32 %v3850_v58, %v4584_v60  ;;  %3875 = vrcp.f32 %v1689_v6  ;;  %v3739_v58 = vld [vmem:[%s5030_s10 + $0x18] sm:$0xff]   ;;  %vm1794_vm7 = vcmp.eq.s32.totalorder %v4537_v42, %v1774_v15  ;;  %v3751_v56 = vld [vmem:[%s5031_s12 + $0x8] sm:$0xff]   ;;  %v3752_v15 = vld [vmem:[%s5031_s12] sm:$0xff]  }
 0x33a   :  { %v3852_v17 = vpop.eup %3851  ;;  %3877 = vrcp.f32 %v1688_v16  ;;  %v4721_v6 = vld [vmem:[%s5021_s0 + $0x18] sm:$0xff]  ;;  %v4743_v16 = vld [vmem:[%s5021_s0 + $0x30] sm:$0xff] }
 0x33b   :  { %v3854_v61 = vpop.eup %3853  ;;  %v1750_v62 = vmul.f32 %v3852_v17, %v4590_v35  ;;  %v1776_v17 = vadd.s32 120, %v4447_v12 }
 0x33c   :  { %v3856_v2 = vpop.eup %3855  ;;  %v1746_v18 = vmul.f32 %v3854_v61, %v4574_v54  ;;  %v3740_v61 = vld [vmem:[%s5030_s10 + $0x10] sm:$0xff]  }
 0x33d   :  { %v3858_v22 = vpop.eup %3857  ;;  %v1748_v10 = vmul.f32 %v3856_v2, %v4596_v3  ;;  %v1758_v14 = vpack.c.bf16 %v1750_v62, %v1749_v1  ;;  %v3743_v1 = vld [vmem:[%s5030_s10] sm:$0xff]   ;;  %v4709_v62 = vld [vmem:[%s5021_s0 + $0x8] sm:$0xff]  ;;  %v4716_v2 = vld [vmem:[%s5021_s0 + $0x10] sm:$0xff] }
 0x33e   :  { %v3860_v45 = vpop.eup %3859  ;;  %v1687_v44 = vadd.f32 1.0, %v3858_v22  ;;  %v3744_v22 = vld [vmem:[%s5029_s11] sm:$0xff]  }
 0x33f   :  { %3503 = vmatprep.subr.bf16.mxu0 %v1758_v14  ;;  %v1757_v20 = vpack.c.bf16 %v1748_v10, %v1747_v5  ;;  %v3862_v26 = vpop.eup %3861  ;;  %v1745_v35 = vmul.f32 %v3860_v45, %v4576_v55  ;;  %v2002_v5 = vpack.c.bf16 %v4721_v6, %v4716_v2  ;;  %3549 = vmatprep.subr.bf16.mxu1 %v3744_v22  ;;  %v4731_v10 = vld [vmem:[%s5021_s0 + $0x20] sm:$0xff] }
 0x340   :  { %3504 = vmatpush3.bf16.msra.mxu0 %v1758_v14  ;;  %v3864_v27 = vpop.eup %3863  ;;  %v1744_v60 = vmul.f32 %v3862_v26, %v4581_v63  ;;  %3879 = vrcp.f32 %v1687_v44  ;;  %3550 = vmatpush3.bf16.msra.mxu1 %v3744_v22  ;;  %v4736_v14 = vld [vmem:[%s5021_s0 + $0x28] sm:$0xff]  ;;  %v4755_v26 = vld [vmem:[%s5021_s0 + $0x40] sm:$0xff]  ;;  %v2357_v22 = vsub.s32 2, %v4447_v12 }
 0x341   :  { %3505 = vmatprep.subr.bf16.mxu0 %v1757_v20  ;;  %v1756_v3 = vpack.c.bf16 %v1746_v18, %v1745_v35  ;;  %v3866_v9 = vpop.eup %3865  ;;  %v1743_v29 = vmul.f32 %v3864_v27, %v4587_v28  ;;  %v2003_v45 = vpack.c.bf16 %v4736_v14, %v4731_v10  ;;  %v4748_v18 = vld [vmem:[%s5021_s0 + $0x38] sm:$0xff]  ;;  %v4760_v44 = vld [vmem:[%s5021_s0 + $0x48] sm:$0xff]  ;;  %v4767_v27 = vld [vmem:[%s5021_s0 + $0x50] sm:$0xff]  ;;  %3599 = vmatprep.subr.bf16.mxu1 %v3745_v48 }
 0x342   :  { %v3868_v54 = vpop.eup %3867  ;;  %v1742_v21 = vmul.f32 %v3866_v9, %v4593_v23  ;;  %v2005_v35 = vpack.c.bf16 %v4760_v44, %v4755_v26  ;;  %v4779_v9 = vld [vmem:[%s5021_s0 + $0x60] sm:$0xff] }
 0x343   :  { %v1755_v24 = vpack.c.bf16 %v1744_v60, %v1743_v29  ;;  %v3870_v30 = vpop.eup %3869  ;;  %v1741_v55 = vmul.f32 %v3868_v54, %v4598_v11  ;;  %v4772_v60 = vld [vmem:[%s5021_s0 + $0x58] sm:$0xff]  ;;  %v4784_v29 = vld [vmem:[%s5021_s0 + $0x68] sm:$0xff] }
 0x344   :  { %3506 = vmatpush3.bf16.msra.mxu0 %v1757_v20  ;;  %v3872_v31 = vpop.eup %3871  ;;  %v1740_v32 = vmul.f32 %v3870_v30, %v4606_v7  ;;  %v2004_v20 = vpack.c.bf16 %v4748_v18, %v4743_v16  ;;  %v2007_v54 = vpack.c.bf16 %v4784_v29, %v4779_v9 }
 0x345   :  { %3507 = vmatprep.subr.bf16.mxu0 %v1756_v3  ;;  %v1754_v63 = vpack.c.bf16 %v1742_v21, %v1741_v55  ;;  %v3874_v34 = vpop.eup %3873  ;;  %v1739_v36 = vmul.f32 %v3872_v31, %v4612_v13  ;;  %v1763_v13 = vadd.s32 16, %v4447_v12  ;;  %v4791_v21 = vld [vmem:[%s5021_s0 + $0x70] sm:$0xff] }
 0x346   :  { %v3876_v28 = vpop.eup %3875  ;;  %v1738_v37 = vmul.f32 %v3874_v34, %v4609_v8  ;;  %v1765_v8 = vadd.s32 32, %v4447_v12 }
 0x347   :  { %v1753_v38 = vpack.c.bf16 %v1740_v32, %v1739_v36  ;;  %v3878_v23 = vpop.eup %3877  ;;  %v1737_v39 = vmul.f32 %v3876_v28, %v4603_v4  ;;  %vm1783_vm3 = vcmp.eq.s32.totalorder %v4537_v42, %v1763_v13  ;;  %v3733_v4 = vld [vmem:[%s5030_s10 + $0x38] sm:$0xff]  }
 0x348   :  { %3508 = vmatpush3.bf16.msra.mxu0 %v1756_v3  ;;  %v1736_v40 = vmul.f32 %v3878_v23, %v4616_v33  ;;  %vm1785_vm6 = vcmp.eq.s32.totalorder %v4537_v42, %v1765_v8  ;;  %vm2982_vm13 = vmpackc.low %vm1784_vm8, %vm1783_vm3  ;;  %v1767_v33 = vadd.s32 48, %v4447_v12  ;;  %v2006_v3 = vpack.c.bf16 %v4772_v60, %v4767_v27 }
 0x349   :  { %3509 = vmatprep.subr.bf16.mxu0 %v1755_v24  ;;  %v1752_v49 = vpack.c.bf16 %v1738_v37, %v1737_v39  ;;  %vm2984_vm10 = vmpackc.low %vm1786_vm9, %vm1785_vm6  ;;  %vm1795_vm6 = vcmp.eq.s32.totalorder %v4537_v42, %v1775_v59  ;;  %vm1796_vm9 = vcmp.eq.s32.totalorder %v4537_v42, %v1776_v17 }
 0x34a   :  { %vm1787_vm11 = vcmp.eq.s32.totalorder %v4537_v42, %v1767_v33  ;;  %vm2990_vm3 = vmpackc.low %vm1792_vm5, %vm1791_vm0 }
 0x34b   :  { %vm2992_vm8 = vmpackc.low %vm1794_vm7, %vm1793_vm2 }
 0x34c   :  { %3510 = vmatpush3.bf16.msra.mxu0 %v1755_v24  ;;  %v4796_v24 = vld [vmem:[%s5021_s0 + $0x78] sm:$0xff] }
 0x34d   :  { %3511 = vmatprep.subr.bf16.mxu0 %v1754_v63  ;;  %v3880_v11 = vpop.eup %3879  ;;  %v2008_v30 = vpack.c.bf16 %v4796_v24, %v4791_v21 }
 0x34e   :  { %v1735_v7 = vmul.f32 %v3880_v11, %v4623_v57  ;;  %v1768_v57 = vadd.s32 56, %v4447_v12 }
 0x350   :  { %3512 = vmatpush3.bf16.msra.mxu0 %v1754_v63  ;;  %v1751_v46 = vpack.c.bf16 %v1736_v40, %v1735_v7  ;;  %vm1788_vm15 = vcmp.eq.s32.totalorder %v4537_v42, %v1768_v57  ;;  %v4704_v42 = vld [vmem:[%s5021_s0] sm:$0xff] }
 0x351   :  { %3513 = vmatprep.subr.bf16.mxu0 %v1753_v38  ;;  %vm2986_vm1 = vmpackc.low %vm1788_vm15, %vm1787_vm11 }
 0x354   :  { %3514 = vmatpush3.bf16.msra.mxu0 %v1753_v38 }
 0x355   :  { %3515 = vmatprep.subr.bf16.mxu0 %v1752_v49 }
 0x358   :  { %3516 = vmatpush3.bf16.msra.mxu0 %v1752_v49 }
 0x359   :  { %3517 = vmatprep.subr.bf16.mxu0 %v1751_v46 }
 0x35c   :  { %3518 = vmatpush3.bf16.msra.mxu0 %v1751_v46 }
 0x35d   :  { %3567 = vmatprep.subr.bf16.mxu0 %v3733_v4 }
 0x35f   :  { %3520 = vmatmul.mubr.msk.bf16.vlgmr.msra.gmra.mxu0 %vm2982_vm13, %v3947_v25  ;;  %vm2994_vm13 = vmpackc.low %vm1796_vm9, %vm1795_vm6 }
 0x360   :  { %3523 = vmatprep.mubr.msk.bf16.mxu0 %vm2984_vm10, %v3947_v25  ;;  %3568 = vmatpush3.bf16.msra.mxu0 %v3733_v4  ;;  %vm3949_vm10 = vmmov 0  }
 0x361   :  { %3569 = vmatprep.subr.bf16.mxu0 %v3734_v47 }
 0x364   :  { %3570 = vmatpush3.bf16.msra.mxu0 %v3734_v47 }
 0x365   :  { %3571 = vmatprep.subr.bf16.mxu0 %v3736_v51 }
 0x367   :  { %3524 = vmatmul.mubr.msk.bf16.gmra.mxu0 %vm2986_vm1, %v3947_v25 }
 0x368   :  { %3527 = vmatprep.mubr.msk.bf16.mxu0 %vm2988_vm14, %v3947_v25  ;;  %3572 = vmatpush3.bf16.msra.mxu0 %v3736_v51  ;;  %v3747_v51 = vld [vmem:[%s5031_s12 + $0x28] sm:$0xff]  }
 0x369   :  { %3573 = vmatprep.subr.bf16.mxu0 %v3737_v19 }
 0x36c   :  { %3574 = vmatpush3.bf16.msra.mxu0 %v3737_v19  ;;  %v3750_v19 = vld [vmem:[%s5031_s12 + $0x10] sm:$0xff]  }
 0x36d   :  { %3575 = vmatprep.subr.bf16.mxu0 %v3739_v58 }
 0x36f   :  { %3528 = vmatmul.mubr.msk.bf16.gmra.mxu0 %vm2990_vm3, %v3947_v25 }
 0x370   :  { %3531 = vmatprep.mubr.msk.bf16.mxu0 %vm2992_vm8, %v3947_v25  ;;  %3576 = vmatpush3.bf16.msra.mxu0 %v3739_v58 }
 0x371   :  { %3577 = vmatprep.subr.bf16.mxu0 %v3740_v61 }
 0x374   :  { %3578 = vmatpush3.bf16.msra.mxu0 %v3740_v61 }
 0x375   :  { %3579 = vmatprep.subr.bf16.mxu0 %v3742_v0 }
 0x377   :  { %3532 = vmatmul.mubr.msk.bf16.gmra.mxu0 %vm2994_vm13, %v3947_v25  ;;  %v2001_v25 = vpack.c.bf16 %v4709_v62, %v4704_v42 }
 0x378   :  { %3580 = vmatpush3.bf16.msra.mxu0 %v3742_v0 }
 0x379   :  { %3581 = vmatprep.subr.bf16.mxu0 %v3743_v1  ;;  %3583 = vmatprep.mubr.bf16.mxu0 %v2001_v25 }
 0x37c   :  { %3582 = vmatpush3.bf16.msra.mxu0 %v3743_v1 }
 0x37f   :  { %3584 = vmatmul.mubr.bf16.vlgmr.msra.gmra.mxu0 %v2002_v5 }
 0x380   :  { %3587 = vmatprep.mubr.bf16.mxu0 %v2003_v45  ;;  %v4828_v45 = vld [vmem:[%s5027_s13] sm:$0xff] }
 0x387   :  { %3588 = vmatmul.mubr.bf16.gmra.mxu0 %v2004_v20  ;;  %v4831_v20 = vrot.slane %v4828_v45, %v2357_v22 }
 0x388   :  { %3591 = vmatprep.mubr.bf16.mxu0 %v2005_v35 }
 0x38f   :  { %3592 = vmatmul.mubr.bf16.gmra.mxu0 %v2006_v3 }
 0x390   :  { %3595 = vmatprep.mubr.bf16.mxu0 %v2007_v54 }
 0x397   :  { %3596 = vmatmul.mubr.bf16.gmra.mxu0 %v2008_v30 }
 0x41f   :  { %v3521_v55 = vpop.f32.mrf.mxu0 }
 0x421   :  { %v1887_v31 = vpop.f32.mrf.mxu0 }
 0x423   :  { %v3522_v32 = vpop.f32.mrf.mxu0 }
 0x424   :  { %v2042_v36 = vpack.c.bf16 %v3522_v32, %v3521_v55 }
 0x425   :  { %v1890_v63 = vpop.f32.mrf.mxu0 }
 0x426   :  { %v2041_v34 = vpack.c.bf16 %v1890_v63, %v1887_v31 }
 0x427   :  { %v3525_v28 = vpop.f32.mrf.mxu0 }
 0x428   :  { %3551 = vmatprep.mubr.bf16.mxu1 %v2041_v34 }
 0x429   :  { %v1903_v37 = vpop.f32.mrf.mxu0  ;;  %3552 = vmatmul.mubr.bf16.vlgmr.msra.gmra.mxu1 %v2042_v36 }
 0x42a   :  { %3600 = vmatpush3.bf16.msra.mxu1 %v3745_v48 }
 0x42b   :  { %v3526_v38 = vpop.f32.mrf.mxu0  ;;  %3601 = vmatprep.subr.bf16.mxu1 %v3746_v50 }
 0x42c   :  { %v2044_v11 = vpack.c.bf16 %v3526_v38, %v3525_v28 }
 0x42d   :  { %v1906_v23 = vpop.f32.mrf.mxu0 }
 0x42e   :  { %v2043_v39 = vpack.c.bf16 %v1906_v23, %v1903_v37  ;;  %3602 = vmatpush3.bf16.msra.mxu1 %v3746_v50 }
 0x42f   :  { %v3529_v40 = vpop.f32.mrf.mxu0  ;;  %3603 = vmatprep.subr.bf16.mxu1 %v3747_v51 }
 0x430   :  { %3555 = vmatprep.mubr.bf16.mxu1 %v2043_v39 }
 0x431   :  { %v1919_v49 = vpop.f32.mrf.mxu0  ;;  %3556 = vmatmul.mubr.bf16.gmra.mxu1 %v2044_v11 }
 0x432   :  { %3604 = vmatpush3.bf16.msra.mxu1 %v3747_v51 }
 0x433   :  { %v3530_v7 = vpop.f32.mrf.mxu0  ;;  %3605 = vmatprep.subr.bf16.mxu1 %v3748_v52 }
 0x434   :  { %v2046_v8 = vpack.c.bf16 %v3530_v7, %v3529_v40 }
 0x435   :  { %v1922_v13 = vpop.f32.mrf.mxu0 }
 0x436   :  { %v2045_v41 = vpack.c.bf16 %v1922_v13, %v1919_v49  ;;  %3606 = vmatpush3.bf16.msra.mxu1 %v3748_v52 }
 0x437   :  { %v3533_v43 = vpop.f32.mrf.mxu0  ;;  %3607 = vmatprep.subr.bf16.mxu1 %v3749_v53 }
 0x438   :  { %3559 = vmatprep.mubr.bf16.mxu1 %v2045_v41 }
 0x439   :  { %v1935_v46 = vpop.f32.mrf.mxu0  ;;  %3560 = vmatmul.mubr.bf16.gmra.mxu1 %v2046_v8 }
 0x43a   :  { %3608 = vmatpush3.bf16.msra.mxu1 %v3749_v53 }
 0x43b   :  { %v3534_v4 = vpop.f32.mrf.mxu0  ;;  %3609 = vmatprep.subr.bf16.mxu1 %v3750_v19 }
 0x43c   :  { %v2048_v47 = vpack.c.bf16 %v3534_v4, %v3533_v43 }
 0x43d   :  { %v1938_v33 = vpop.f32.mrf.mxu0 }
 0x43e   :  { %v2047_v57 = vpack.c.bf16 %v1938_v33, %v1935_v46  ;;  %3610 = vmatpush3.bf16.msra.mxu1 %v3750_v19 }
 0x43f   :  { %3611 = vmatprep.subr.bf16.mxu1 %v3751_v56  ;;  %v3585_v58 = vpop.f32.mrf.mxu0 }
 0x440   :  { %3563 = vmatprep.mubr.bf16.mxu1 %v2047_v57 }
 0x441   :  { %3564 = vmatmul.mubr.bf16.gmra.mxu1 %v2048_v47  ;;  %v2292_v59 = vpop.f32.mrf.mxu0 }
 0x442   :  { %3612 = vmatpush3.bf16.msra.mxu1 %v3751_v56 }
 0x443   :  { %3613 = vmatprep.subr.bf16.mxu1 %v3752_v15  ;;  %v3586_v17 = vpop.f32.mrf.mxu0 }
 0x445   :  { %v2295_v61 = vpop.f32.mrf.mxu0 }
 0x446   :  { %3614 = vmatpush3.bf16.msra.mxu1 %v3752_v15 }
 0x447   :  { %v3589_v0 = vpop.f32.mrf.mxu0 }
 0x449   :  { %v2308_v1 = vpop.f32.mrf.mxu0 }
 0x44b   :  { %v3590_v25 = vpop.f32.mrf.mxu0 }
 0x44d   :  { %v2311_v5 = vpop.f32.mrf.mxu0 }
 0x44f   :  { %v3593_v30 = vpop.f32.mrf.mxu0 }
 0x451   :  { %v2324_v37 = vpop.f32.mrf.mxu0 }
 0x453   :  { %v3594_v41 = vpop.f32.mrf.mxu0 }
 0x455   :  { %v2327_v50 = vpop.f32.mrf.mxu0 }
 0x4e9   :  { %v3553_v35 = vpop.f32.mrf.mxu1 }
 0x4ea   :  { %v2301_v3 = vadd.f32 %v3585_v58, %v3553_v35 }
 0x4eb   :  { %v2147_v54 = vpop.f32.mrf.mxu1 }
 0x4ec   :  { %v4834_v55 = vadd.f32 %v4831_v20, %v2301_v3  ;;  %v2293_v31 = vadd.f32 %v2292_v59, %v2147_v54 }
 0x4ed   :  { %v3554_v32 = vpop.f32.mrf.mxu1 }
 0x4ee   :  { %v3014_v63 = vmul.f32 -1.442695, %v4834_v55  ;;  %v4838_v34 = vadd.f32 %v4831_v20, %v2293_v31  ;;  %v2304_v36 = vadd.f32 %v3586_v17, %v3554_v32  ;;  %v3597_v17 = vpop.f32.mrf.mxu0 }
 0x4ef   :  { %v2150_v28 = vpop.f32.mrf.mxu1 }
 0x4f0   :  { %3881 = vpow2.f32 %v3014_v63  ;;  %v3012_v38 = vmul.f32 -1.442695, %v4838_v34  ;;  %v4842_v23 = vadd.f32 %v4831_v20, %v2304_v36  ;;  %v2296_v39 = vadd.f32 %v2295_v61, %v2150_v28  ;;  %v2340_v31 = vpop.f32.mrf.mxu0 }
 0x4f1   :  { %v3557_v11 = vpop.f32.mrf.mxu1 }
 0x4f2   :  { %3883 = vpow2.f32 %v3012_v38  ;;  %v3015_v40 = vmul.f32 -1.442695, %v4842_v23  ;;  %v4846_v49 = vadd.f32 %v4831_v20, %v2296_v39  ;;  %v2317_v7 = vadd.f32 %v3589_v0, %v3557_v11 }
 0x4f3   :  { %v2163_v13 = vpop.f32.mrf.mxu1 }
 0x4f4   :  { %3885 = vpow2.f32 %v3015_v40  ;;  %v3013_v8 = vmul.f32 -1.442695, %v4846_v49  ;;  %v4850_v43 = vadd.f32 %v4831_v20, %v2317_v7  ;;  %v2309_v46 = vadd.f32 %v2308_v1, %v2163_v13 }
 0x4f5   :  { %v3558_v4 = vpop.f32.mrf.mxu1 }
 0x4f6   :  { %3887 = vpow2.f32 %v3013_v8  ;;  %v3018_v33 = vmul.f32 -1.442695, %v4850_v43  ;;  %v4854_v57 = vadd.f32 %v4831_v20, %v2309_v46  ;;  %v2320_v47 = vadd.f32 %v3590_v25, %v3558_v4  ;;  %v3598_v8 = vpop.f32.mrf.mxu0 }
 0x4f7   :  { %v2166_v48 = vpop.f32.mrf.mxu1 }
 0x4f8   :  { %3889 = vpow2.f32 %v3018_v33  ;;  %v3016_v51 = vmul.f32 -1.442695, %v4854_v57  ;;  %v4858_v52 = vadd.f32 %v4831_v20, %v2320_v47  ;;  %v2312_v53 = vadd.f32 %v2311_v5, %v2166_v48 }
 0x4f9   :  { %v3561_v19 = vpop.f32.mrf.mxu1 }
 0x4fa   :  { %3891 = vpow2.f32 %v3016_v51  ;;  %v3019_v56 = vmul.f32 -1.442695, %v4858_v52  ;;  %v4862_v15 = vadd.f32 %v4831_v20, %v2312_v53  ;;  %v2333_v58 = vadd.f32 %v3593_v30, %v3561_v19 }
 0x4fb   :  { %v2179_v59 = vpop.f32.mrf.mxu1 }
 0x4fc   :  { %3893 = vpow2.f32 %v3019_v56  ;;  %v3017_v61 = vmul.f32 -1.442695, %v4862_v15  ;;  %v4866_v0 = vadd.f32 %v4831_v20, %v2333_v58  ;;  %v2325_v1 = vadd.f32 %v2324_v37, %v2179_v59  ;;  %v2343_v59 = vpop.f32.mrf.mxu0 }
 0x4fd   :  { %v3882_v25 = vpop.eup %3881  ;;  %v3562_v22 = vpop.f32.mrf.mxu1 }
 0x4fe   :  { %v2425_v5 = vadd.f32 1.0, %v3882_v25  ;;  %3895 = vpow2.f32 %v3017_v61  ;;  %v3022_v35 = vmul.f32 -1.442695, %v4866_v0  ;;  %v4870_v3 = vadd.f32 %v4831_v20, %v2325_v1 }
 0x4ff   :  { %v3884_v54 = vpop.eup %3883  ;;  %v2336_v30 = vadd.f32 %v3594_v41, %v3562_v22  ;;  %v2182_v32 = vpop.f32.mrf.mxu1 }
 0x500   :  { %3897 = vrcp.f32 %v2425_v5  ;;  %v2423_v63 = vadd.f32 1.0, %v3884_v54  ;;  %v3020_v36 = vmul.f32 -1.442695, %v4870_v3  ;;  %v2328_v28 = vadd.f32 %v2327_v50, %v2182_v32 }
 0x501   :  { %v3886_v38 = vpop.eup %3885  ;;  %3899 = vpow2.f32 %v3022_v35  ;;  %v4874_v37 = vadd.f32 %v4831_v20, %v2336_v30  ;;  %v3565_v39 = vpop.f32.mrf.mxu1 }
 0x502   :  { %3901 = vrcp.f32 %v2423_v63  ;;  %v2426_v11 = vadd.f32 1.0, %v3886_v38  ;;  %v4877_v40 = vadd.f32 %v4831_v20, %v2328_v28  ;;  %v2349_v7 = vadd.f32 %v3597_v17, %v3565_v39 }
 0x503   :  { %v3888_v13 = vpop.eup %3887  ;;  %3903 = vpow2.f32 %v3020_v36  ;;  %v3023_v41 = vmul.f32 -1.442695, %v4874_v37  ;;  %v2195_v46 = vpop.f32.mrf.mxu1 }
 0x504   :  { %3905 = vrcp.f32 %v2426_v11  ;;  %v2424_v4 = vadd.f32 1.0, %v3888_v13  ;;  %v3021_v33 = vmul.f32 -1.442695, %v4877_v40  ;;  %v4882_v47 = vadd.f32 %v4831_v20, %v2349_v7 }
 0x505   :  { %v3890_v48 = vpop.eup %3889  ;;  %3907 = vpow2.f32 %v3023_v41  ;;  %v2341_v50 = vadd.f32 %v2340_v31, %v2195_v46  ;;  %v3566_v51 = vpop.f32.mrf.mxu1 }
 0x506   :  { %3909 = vrcp.f32 %v2424_v4  ;;  %v2429_v53 = vadd.f32 1.0, %v3890_v48  ;;  %v3026_v19 = vmul.f32 -1.442695, %v4882_v47  ;;  %v2352_v56 = vadd.f32 %v3598_v8, %v3566_v51 }
 0x507   :  { %v3892_v58 = vpop.eup %3891  ;;  %3911 = vpow2.f32 %v3021_v33  ;;  %v4886_v17 = vadd.f32 %v4831_v20, %v2341_v50  ;;  %v2198_v61 = vpop.f32.mrf.mxu1 }
 0x508   :  { %3913 = vrcp.f32 %v2429_v53  ;;  %v2427_v1 = vadd.f32 1.0, %v3892_v58  ;;  %v4889_v25 = vadd.f32 %v4831_v20, %v2352_v56  ;;  %v2344_v22 = vadd.f32 %v2343_v59, %v2198_v61 }
 0x509   :  { %v3894_v5 = vpop.eup %3893  ;;  %3915 = vpow2.f32 %v3026_v19  ;;  %v3024_v35 = vmul.f32 -1.442695, %v4886_v17 }
 0x50a   :  { %3917 = vrcp.f32 %v2427_v1  ;;  %v2430_v54 = vadd.f32 1.0, %v3894_v5  ;;  %v3027_v30 = vmul.f32 -1.442695, %v4889_v25  ;;  %v4894_v31 = vadd.f32 %v4831_v20, %v2344_v22 }
 0x50b   :  { %v3896_v32 = vpop.eup %3895  ;;  %3919 = vpow2.f32 %v3024_v35 }
 0x50c   :  { %3921 = vrcp.f32 %v2430_v54  ;;  %v2428_v63 = vadd.f32 1.0, %v3896_v32  ;;  %v3025_v36 = vmul.f32 -1.442695, %v4894_v31 }
 0x50d   :  { %v3898_v28 = vpop.eup %3897  ;;  %3923 = vpow2.f32 %v3027_v30 }
 0x50e   :  { %v3900_v38 = vpop.eup %3899  ;;  %3925 = vrcp.f32 %v2428_v63  ;;  %v2473_v53 = vmul.f32 %v3898_v28, %v4834_v55 }
 0x50f   :  { %v3902_v39 = vpop.eup %3901  ;;  %3927 = vpow2.f32 %v3025_v36  ;;  %v2433_v8 = vadd.f32 1.0, %v3900_v38 }
 0x510   :  { %v3904_v11 = vpop.eup %3903  ;;  %v2471_v48 = vmul.f32 %v3902_v39, %v4838_v34 }
 0x511   :  { %v3906_v7 = vpop.eup %3905  ;;  %v2431_v13 = vadd.f32 1.0, %v3904_v11 }
 0x512   :  { %v3908_v41 = vpop.eup %3907  ;;  %v2474_v20 = vmul.f32 %v3906_v7, %v4842_v23 }
 0x513   :  { %v3910_v46 = vpop.eup %3909  ;;  %v2434_v4 = vadd.f32 1.0, %v3908_v41  ;;  %3929 = vrcp.f32 %v2431_v13 }
 0x514   :  { %v3912_v33 = vpop.eup %3911  ;;  %v2472_v50 = vmul.f32 %v3910_v46, %v4846_v49  ;;  %v2488_v61 = vpack.c.bf16 %v2474_v20, %v2473_v53  ;;  %v2513_v53 = vsub.s32 3, %v4447_v12 }
 0x515   :  { %v3914_v51 = vpop.eup %3913  ;;  %3931 = vrcp.f32 %v2434_v4  ;;  %v2432_v19 = vadd.f32 1.0, %v3912_v33 }
 0x516   :  { %v3916_v56 = vpop.eup %3915  ;;  %3933 = vrcp.f32 %v2433_v8  ;;  %v2487_v58 = vpack.c.bf16 %v2472_v50, %v2471_v48  ;;  %v2477_v63 = vmul.f32 %v3914_v51, %v4850_v43 }
 0x517   :  { %v3918_v59 = vpop.eup %3917  ;;  %3935 = vrcp.f32 %v2432_v19  ;;  %v2437_v5 = vadd.f32 1.0, %v3916_v56 }
 0x518   :  { %v3920_v1 = vpop.eup %3919  ;;  %3615 = vmatprep.mubr.bf16.mxu1 %v2487_v58  ;;  %v2475_v30 = vmul.f32 %v3918_v59, %v4854_v57 }
 0x519   :  { %v3922_v23 = vpop.eup %3921  ;;  %v2435_v22 = vadd.f32 1.0, %v3920_v1  ;;  %3616 = vmatmul.mubr.bf16.vlgmr.msra.gmra.mxu1 %v2488_v61 }
 0x51a   :  { %v3924_v34 = vpop.eup %3923  ;;  %v2478_v35 = vmul.f32 %v3922_v23, %v4858_v52 }
 0x51b   :  { %v3926_v49 = vpop.eup %3925  ;;  %v2438_v54 = vadd.f32 1.0, %v3924_v34  ;;  %3937 = vrcp.f32 %v2435_v22 }
 0x51c   :  { %v3928_v55 = vpop.eup %3927  ;;  %v2476_v32 = vmul.f32 %v3926_v49, %v4862_v15  ;;  %v2490_v38 = vpack.c.bf16 %v2478_v35, %v2477_v63 }
 0x51d   :  { %3939 = vrcp.f32 %v2438_v54  ;;  %v2436_v36 = vadd.f32 1.0, %v3928_v55 }
 0x51e   :  { %3941 = vrcp.f32 %v2437_v5  ;;  %v2489_v28 = vpack.c.bf16 %v2476_v32, %v2475_v30 }
 0x51f   :  { %3943 = vrcp.f32 %v2436_v36 }
 0x520   :  { %3619 = vmatprep.mubr.bf16.mxu1 %v2489_v28  ;;  %v3930_v39 = vpop.eup %3929 }
 0x521   :  { %3620 = vmatmul.mubr.bf16.gmra.mxu1 %v2490_v38  ;;  %v2479_v57 = vmul.f32 %v3930_v39, %v4870_v3 }
 0x522   :  { %v3932_v11 = vpop.eup %3931 }
 0x523   :  { %v3934_v52 = vpop.eup %3933  ;;  %v2482_v13 = vmul.f32 %v3932_v11, %v4874_v37 }
 0x524   :  { %v3936_v7 = vpop.eup %3935  ;;  %v2481_v43 = vmul.f32 %v3934_v52, %v4866_v0  ;;  %v3948_v0 = vmov 0.0  }
 0x525   :  { %v2480_v15 = vmul.f32 %v3936_v7, %v4877_v40  ;;  %3631 = vmatprep.subr.mxu0 %v3948_v0  ;;  %3663 = vmatprep.mubr.msk.f32.mxu0 %vm3949_vm10, %v3948_v0 }
 0x526   :  { %v2492_v8 = vpack.c.bf16 %v2482_v13, %v2481_v43 }
 0x527   :  { %v2491_v41 = vpack.c.bf16 %v2480_v15, %v2479_v57 }
 0x528   :  { %v3938_v46 = vpop.eup %3937 }
 0x529   :  { %3623 = vmatprep.mubr.bf16.mxu1 %v2491_v41  ;;  %v2483_v50 = vmul.f32 %v3938_v46, %v4886_v17 }
 0x52a   :  { %v3940_v20 = vpop.eup %3939  ;;  %3624 = vmatmul.mubr.bf16.gmra.mxu1 %v2492_v8 }
 0x52b   :  { %v3942_v4 = vpop.eup %3941  ;;  %v2486_v48 = vmul.f32 %v3940_v20, %v4889_v25  ;;  %v2514_v25 = vrot.slane %v4828_v45, %v2513_v53 }
 0x52c   :  { %v3944_v33 = vpop.eup %3943  ;;  %v2485_v3 = vmul.f32 %v3942_v4, %v4882_v47 }
 0x52d   :  { %v2484_v37 = vmul.f32 %v3944_v33, %v4894_v31 }
 0x52e   :  { %v2494_v40 = vpack.c.bf16 %v2486_v48, %v2485_v3 }
 0x52f   :  { %v2493_v51 = vpack.c.bf16 %v2484_v37, %v2483_v50 }
 0x531   :  { %3627 = vmatprep.mubr.bf16.mxu1 %v2493_v51 }
 0x532   :  { %3628 = vmatmul.mubr.bf16.gmra.mxu1 %v2494_v40 }
 0x5d9   :  { %v3617_v19 = vpop.f32.mrf.mxu1 }
 0x5da   :  { %v2606_v17 = vadd.f32 %v3617_v19, %v2514_v25 }
 0x5db   :  { %v2597_v56 = vpop.f32.mrf.mxu1 }
 0x5dc   :  { %v4918_v31 = vadd.f32 %v2606_v17, %v4716_v2  ;;  %v2598_v47 = vadd.f32 %v2597_v56, %v2514_v25 }
 0x5dd   :  { %v3618_v58 = vpop.f32.mrf.mxu1 }
 0x5de   :  { %2678 = vst [vmem:[%s5032_s14 + $0x10] sm:$0xff] %v4918_v31  ;;  %v4925_v59 = vadd.f32 %v2598_v47, %v4704_v42  ;;  %v2609_v61 = vadd.f32 %v3618_v58, %v2514_v25 }
 0x5df   :  { %v2600_v1 = vpop.f32.mrf.mxu1 }
 0x5e0   :  { %2676 = vst [vmem:[%s5032_s14] sm:$0xff] %v4925_v59  ;;  %v4932_v2 = vadd.f32 %v2609_v61, %v4721_v6  ;;  %v2601_v45 = vadd.f32 %v2600_v1, %v2514_v25 }
 0x5e1   :  { %v3621_v23 = vpop.f32.mrf.mxu1 }
 0x5e2   :  { %2679 = vst [vmem:[%s5032_s14 + $0x18] sm:$0xff] %v4932_v2  ;;  %v4939_v42 = vadd.f32 %v2601_v45, %v4709_v62  ;;  %v2622_v22 = vadd.f32 %v3621_v23, %v2514_v25 }
 0x5e3   :  { %v2613_v34 = vpop.f32.mrf.mxu1 }
 0x5e4   :  { %2677 = vst [vmem:[%s5032_s14 + $0x8] sm:$0xff] %v4939_v42  ;;  %v2666_v6 = vadd.f32 %v2622_v22, %v4743_v16  ;;  %v2614_v5 = vadd.f32 %v2613_v34, %v2514_v25 }
 0x5e5   :  { %v3622_v49 = vpop.f32.mrf.mxu1 }
 0x5e6   :  { %2682 = vst [vmem:[%s5032_s14 + $0x30] sm:$0xff] %v2666_v6  ;;  %v2664_v35 = vadd.f32 %v2614_v5, %v4731_v10  ;;  %v2625_v54 = vadd.f32 %v3622_v49, %v2514_v25 }
 0x5e7   :  { %v2616_v62 = vpop.f32.mrf.mxu1 }
 0x5e8   :  { %2680 = vst [vmem:[%s5032_s14 + $0x20] sm:$0xff] %v2664_v35  ;;  %v2667_v55 = vadd.f32 %v2625_v54, %v4748_v18  ;;  %v2617_v30 = vadd.f32 %v2616_v62, %v2514_v25 }
 0x5ea   :  { %2683 = vst [vmem:[%s5032_s14 + $0x38] sm:$0xff] %v2667_v55  ;;  %v2665_v16 = vadd.f32 %v2617_v30, %v4736_v14  ;;  %v3625_v32 = vpop.f32.mrf.mxu1 }
 0x5eb   :  { %v2638_v63 = vadd.f32 %v3625_v32, %v2514_v25 }
 0x5ec   :  { %2681 = vst [vmem:[%s5032_s14 + $0x28] sm:$0xff] %v2665_v16  ;;  %v2629_v10 = vpop.f32.mrf.mxu1 }
 0x5ed   :  { %v2670_v36 = vadd.f32 %v2638_v63, %v4767_v27  ;;  %v2630_v28 = vadd.f32 %v2629_v10, %v2514_v25 }
 0x5ee   :  { %v3626_v38 = vpop.f32.mrf.mxu1 }
 0x5ef   :  { %2686 = vst [vmem:[%s5032_s14 + $0x50] sm:$0xff] %v2670_v36  ;;  %v2668_v18 = vadd.f32 %v2630_v28, %v4755_v26  ;;  %v2641_v39 = vadd.f32 %v3626_v38, %v2514_v25 }
 0x5f0   :  { %v2632_v11 = vpop.f32.mrf.mxu1 }
 0x5f1   :  { %2684 = vst [vmem:[%s5032_s14 + $0x40] sm:$0xff] %v2668_v18  ;;  %v2671_v14 = vadd.f32 %v2641_v39, %v4772_v60  ;;  %v2633_v52 = vadd.f32 %v2632_v11, %v2514_v25 }
 0x5f2   :  { %v3629_v7 = vpop.f32.mrf.mxu1 }
 0x5f3   :  { %2687 = vst [vmem:[%s5032_s14 + $0x58] sm:$0xff] %v2671_v14  ;;  %v2669_v27 = vadd.f32 %v2633_v52, %v4760_v44  ;;  %v2654_v13 = vadd.f32 %v3629_v7, %v2514_v25 }
 0x5f4   :  { %v2645_v57 = vpop.f32.mrf.mxu1 }
 0x5f5   :  { %2685 = vst [vmem:[%s5032_s14 + $0x48] sm:$0xff] %v2669_v27  ;;  %v2674_v26 = vadd.f32 %v2654_v13, %v4791_v21  ;;  %v2646_v15 = vadd.f32 %v2645_v57, %v2514_v25 }
 0x5f6   :  { %v3630_v43 = vpop.f32.mrf.mxu1 }
 0x5f7   :  { %2690 = vst [vmem:[%s5032_s14 + $0x70] sm:$0xff] %v2674_v26  ;;  %v2672_v60 = vadd.f32 %v2646_v15, %v4779_v9  ;;  %v2657_v41 = vadd.f32 %v3630_v43, %v2514_v25  ;;  %v3036_v9 = vld [vmem:[%s5033_s5] ss:$0 sm:$0xff] }
 0x5f8   :  { %v2648_v8 = vpop.f32.mrf.mxu1  ;;  %vm2697_vm11 = vcmp.eq.s32.totalorder %v3036_v9, %v4447_v12 }
 0x5f9   :  { %2688 = vst [vmem:[%s5032_s14 + $0x60] sm:$0xff] %v2672_v60  ;;  %v2675_v44 = vadd.f32 %v2657_v41, %v4796_v24  ;;  %v2649_v46 = vadd.f32 %v2648_v8, %v2514_v25 }
 0x5fb   :  { %2691 = vst [vmem:[%s5032_s14 + $0x78] sm:$0xff] %v2675_v44  ;;  %v2673_v21 = vadd.f32 %v2649_v46, %v4784_v29  ;;  %3632 = vmatpush3.msra.mxu0 %v2675_v44  ;;  %v3950_v29 = vmov 1.0  }
 0x5fc   :  { %3633 = vmatprep.subr.mxu0 %v3948_v0 }
 0x5fd   :  { %2689 = vst [vmem:[%s5032_s14 + $0x68] sm:$0xff] %v2673_v21  ;;  %3634 = vmatpush3.msra.mxu0 %v2674_v26 }
 0x5fe   :  { %3635 = vmatprep.subr.mxu0 %v3948_v0 }
 0x5ff   :  { %3636 = vmatpush3.msra.mxu0 %v2673_v21 }
 0x600   :  { %3637 = vmatprep.subr.mxu0 %v3948_v0 }
 0x601   :  { %3638 = vmatpush3.msra.mxu0 %v2672_v60 }
 0x602   :  { %3639 = vmatprep.subr.mxu0 %v3948_v0 }
 0x603   :  { %3640 = vmatpush3.msra.mxu0 %v2671_v14 }
 0x604   :  { %3641 = vmatprep.subr.mxu0 %v3948_v0 }
 0x605   :  { %3642 = vmatpush3.msra.mxu0 %v2670_v36 }
 0x606   :  { %3643 = vmatprep.subr.mxu0 %v3948_v0 }
 0x607   :  { %3644 = vmatpush3.msra.mxu0 %v2669_v27 }
 0x608   :  { %3645 = vmatprep.subr.mxu0 %v3948_v0 }
 0x609   :  { %3646 = vmatpush3.msra.mxu0 %v2668_v18 }
 0x60a   :  { %3647 = vmatprep.subr.mxu0 %v3948_v0 }
 0x60b   :  { %3648 = vmatpush3.msra.mxu0 %v2667_v55 }
 0x60c   :  { %3649 = vmatprep.subr.mxu0 %v3948_v0 }
 0x60d   :  { %3650 = vmatpush3.msra.mxu0 %v2666_v6 }
 0x60e   :  { %3651 = vmatprep.subr.mxu0 %v3948_v0 }
 0x60f   :  { %3652 = vmatpush3.msra.mxu0 %v2665_v16 }
 0x610   :  { %3653 = vmatprep.subr.mxu0 %v3948_v0 }
 0x611   :  { %3654 = vmatpush3.msra.mxu0 %v2664_v35 }
 0x612   :  { %3655 = vmatprep.subr.mxu0 %v3948_v0 }
 0x613   :  { %3656 = vmatpush3.msra.mxu0 %v4932_v2 }
 0x614   :  { %3657 = vmatprep.subr.mxu0 %v3948_v0 }
 0x615   :  { %3658 = vmatpush3.msra.mxu0 %v4918_v31 }
 0x616   :  { %3659 = vmatprep.subr.mxu0 %v3948_v0 }
 0x617   :  { %3660 = vmatpush3.msra.mxu0 %v4939_v42 }
 0x618   :  { %3661 = vmatprep.subr.mxu0 %v3948_v0 }
 0x619   :  { %3662 = vmatpush3.msra.mxu0 %v4925_v59 }
 0x61a   :  { %3664 = vmatmul.mubr.msk.f32.vlgmr.msra.gmra.mxu0 %vm2697_vm11, %v3950_v29 }
 0x6da   :  { %v2766_v24 = vpop.f32.mrf.mxu0 }
 0x6db   :  { %2770 = vst [vmem:[%s5034_s15] sm:$0xff] %v2766_v24 }
 0x6dc   :  { %v3665_v20 = vpop.f32.mrf.mxu0 }

// kernel: _lambda_.2
= control target key start
LH: loop header
LB: loop body
LE: loop exit
PB: predicated region body
PF: predicated region fallthrough
CT: control target
= control target key end

     0   :  { %v4047_v1 = vmov 0   ;;  %vm980_vm14 = vcmask 130048   ;;  %s5241_s5 = inlined_call_operand.vmem [shape: s32[1,128], index: 5, kind: input, shape index: {}]   ;;  %s5242_s6 = inlined_call_operand.vmem [shape: bf16[128,128], index: 6, kind: input, shape index: {}]   ;;  %s5243_s7 = inlined_call_operand.vmem [shape: bf16[128,128], index: 7, kind: input, shape index: {}]   ;;  %s5244_s0 = inlined_call_operand.vmem [shape: f32[128,128], index: 0, kind: input, shape index: {}]   ;;  %s5245_s2 = inlined_call_operand.vmem [shape: s32[128,1], index: 2, kind: input, shape index: {}]   ;;  %s5246_s1 = inlined_call_operand.vmem [shape: s32[128,1], index: 1, kind: input, shape index: {}]   ;;  %s5247_s8 = inlined_call_operand.vmem [shape: bf16[16,128], index: 8, kind: input, shape index: {}]   ;;  %s5248_s4 = inlined_call_operand.vmem [shape: bf16[128,16], index: 4, kind: input, shape index: {}]   ;;  %s5249_s9 = inlined_call_operand.vmem [shape: bf16[128,128], index: 9, kind: input, shape index: {}]   ;;  %s5250_s13 = inlined_call_operand.vmem [shape: f32[8,128], index: 13, kind: input, shape index: {}]   ;;  %s5251_s3 = inlined_call_operand.vmem [shape: s32[1,128], index: 3, kind: input, shape index: {}]   ;;  %s5252_s11 = inlined_call_operand.vmem [shape: bf16[128,128], index: 11, kind: input, shape index: {}]   ;;  %s5253_s10 = inlined_call_operand.vmem [shape: bf16[128,128], index: 10, kind: input, shape index: {}]   ;;  %s5254_s14 = inlined_call_operand.vmem [shape: bf16[128,128], index: 14, kind: output, shape index: {0}]   ;;  %s5255_s12 = inlined_call_operand.vmem [shape: bf16[128,128], index: 12, kind: input, shape index: {}]   ;;  %s5256_s15 = inlined_call_operand.vmem [shape: f32[128,128], index: 15, kind: output, shape index: {1}]  }
   0x1   :  { %v3781_v0 = vld [vmem:[%s5242_s6 + $0x38] sm:$0xff]   ;;  %3778 = vset.pattern.permute.xlu1 %v4047_v1  ;;  %3777 = vset.pattern.permute.xlu0 %v4047_v1  ;;  %v3783_v3 = vld [vmem:[%s5242_s6 + $0x30] sm:$0xff]   ;;  %v3785_v5 = vld [vmem:[%s5242_s6 + $0x28] sm:$0xff]  }
   0x2   :  { %v3782_v2 = vld [vmem:[%s5243_s7 + $0x38] sm:$0xff]   ;;  %3531 = vmatprep.subr.bf16.mxu0 %v3781_v0  ;;  %v3784_v4 = vld [vmem:[%s5243_s7 + $0x30] sm:$0xff]   ;;  %v3786_v6 = vld [vmem:[%s5243_s7 + $0x28] sm:$0xff]  }
   0x3   :  { %3563 = vmatprep.subr.bf16.mxu1 %v3782_v2  ;;  %3532 = vmatpush3.bf16.msra.mxu0 %v3781_v0  ;;  %v3787_v7 = vld [vmem:[%s5242_s6 + $0x20] sm:$0xff]   ;;  %v3789_v9 = vld [vmem:[%s5242_s6 + $0x18] sm:$0xff]   ;;  %v3791_v11 = vld [vmem:[%s5242_s6 + $0x10] sm:$0xff]  }
   0x4   :  { %3564 = vmatpush3.bf16.msra.mxu1 %v3782_v2  ;;  %3533 = vmatprep.subr.bf16.mxu0 %v3783_v3  ;;  %v3788_v8 = vld [vmem:[%s5243_s7 + $0x20] sm:$0xff]   ;;  %v3790_v10 = vld [vmem:[%s5243_s7 + $0x18] sm:$0xff]   ;;  %v72_v13 = vld [vmem:[%s5244_s0 + $0x8] sm:$0xff] }
   0x5   :  { %3565 = vmatprep.subr.bf16.mxu1 %v3784_v4  ;;  %v71_v12 = vld [vmem:[%s5244_s0] sm:$0xff]  ;;  %v3792_v14 = vld [vmem:[%s5243_s7 + $0x10] sm:$0xff]   ;;  %v3793_v16 = vld [vmem:[%s5242_s6 + $0x8] sm:$0xff]  }
   0x6   :  { %v87_v15 = vpack.c.bf16 %v72_v13, %v71_v12  ;;  %v3794_v17 = vld [vmem:[%s5243_s7 + $0x8] sm:$0xff]   ;;  %v676_v18 = vld [vmem:[%s5245_s2] sm:$0xff]  ;;  %v73_v24 = vld [vmem:[%s5244_s0 + $0x10] sm:$0xff] }
   0x7   :  { %3534 = vmatpush3.bf16.msra.mxu0 %v3783_v3  ;;  %v580_v19 = vld [vmem:[%s5246_s1] sm:$0xff]  ;;  %693 = vperm.xlu1 %3778, %v676_v18   ;;  %v677_v20 = vld [vmem:[%s5245_s2 + $0x8] sm:$0xff]  ;;  %v74_v25 = vld [vmem:[%s5244_s0 + $0x18] sm:$0xff]  ;;  %v4048_v18 = vmov 1.0|1.0  }
   0x8   :  { %3566 = vmatpush3.bf16.msra.mxu1 %v3784_v4  ;;  %3535 = vmatprep.subr.bf16.mxu0 %v3785_v5  ;;  %v581_v21 = vld [vmem:[%s5246_s1 + $0x8] sm:$0xff]  ;;  %v3795_v22 = vld [vmem:[%s5242_s6] sm:$0xff]   ;;  %v583_v26 = vld [vmem:[%s5246_s1 + $0x18] sm:$0xff]  ;;  %v88_v30 = vpack.c.bf16 %v74_v25, %v73_v24 }
   0x9   :  { %3567 = vmatprep.subr.bf16.mxu1 %v3786_v6  ;;  %3547 = vmatprep.mubr.bf16.mxu0 %v87_v15  ;;  %v3796_v23 = vld [vmem:[%s5243_s7] sm:$0xff]   ;;  %v582_v27 = vld [vmem:[%s5246_s1 + $0x10] sm:$0xff]  ;;  %v76_v29 = vld [vmem:[%s5244_s0 + $0x28] sm:$0xff] }
   0xa   :  { %3579 = vmatprep.mubr.bf16.mxu1 %v87_v15  ;;  %597 = vperm.xlu0 %3777, %v580_v19   ;;  %v75_v28 = vld [vmem:[%s5244_s0 + $0x20] sm:$0xff]  ;;  %v679_v32 = vld [vmem:[%s5245_s2 + $0x18] sm:$0xff]  ;;  %v678_v33 = vld [vmem:[%s5245_s2 + $0x10] sm:$0xff] }
   0xb   :  { %3536 = vmatpush3.bf16.msra.mxu0 %v3785_v5  ;;  %696 = vperm.xlu1 %3778, %v677_v20   ;;  %v89_v31 = vpack.c.bf16 %v76_v29, %v75_v28  ;;  %v77_v34 = vld [vmem:[%s5244_s0 + $0x30] sm:$0xff]  ;;  %v78_v35 = vld [vmem:[%s5244_s0 + $0x38] sm:$0xff]  ;;  %v585_v36 = vld [vmem:[%s5246_s1 + $0x28] sm:$0xff] }
   0xc   :  { %3568 = vmatpush3.bf16.msra.mxu1 %v3786_v6  ;;  %3537 = vmatprep.subr.bf16.mxu0 %v3787_v7  ;;  %v79_v37 = vld [vmem:[%s5244_s0 + $0x40] sm:$0xff]  ;;  %v80_v38 = vld [vmem:[%s5244_s0 + $0x48] sm:$0xff]  ;;  %v90_v40 = vpack.c.bf16 %v78_v35, %v77_v34  ;;  %v81_v44 = vld [vmem:[%s5244_s0 + $0x50] sm:$0xff] }
   0xd   :  { %3569 = vmatprep.subr.bf16.mxu1 %v3788_v8  ;;  %v584_v39 = vld [vmem:[%s5246_s1 + $0x20] sm:$0xff]  ;;  %v91_v41 = vpack.c.bf16 %v80_v38, %v79_v37  ;;  %v681_v42 = vld [vmem:[%s5245_s2 + $0x28] sm:$0xff]  ;;  %v82_v45 = vld [vmem:[%s5244_s0 + $0x58] sm:$0xff] }
   0xe   :  { %600 = vperm.xlu0 %3777, %v581_v21   ;;  %v680_v43 = vld [vmem:[%s5245_s2 + $0x20] sm:$0xff]  ;;  %v587_v46 = vld [vmem:[%s5246_s1 + $0x38] sm:$0xff]  ;;  %v84_v48 = vld [vmem:[%s5244_s0 + $0x68] sm:$0xff]  ;;  %v92_v50 = vpack.c.bf16 %v82_v45, %v81_v44 }
   0xf   :  { %3538 = vmatpush3.bf16.msra.mxu0 %v3787_v7  ;;  %606 = vperm.xlu1 %3778, %v583_v26   ;;  %v83_v47 = vld [vmem:[%s5244_s0 + $0x60] sm:$0xff]  ;;  %v586_v49 = vld [vmem:[%s5246_s1 + $0x30] sm:$0xff]  ;;  %v683_v52 = vld [vmem:[%s5245_s2 + $0x38] sm:$0xff] }
  0x10   :  { %3570 = vmatpush3.bf16.msra.mxu1 %v3788_v8  ;;  %3539 = vmatprep.subr.bf16.mxu0 %v3789_v9  ;;  %v93_v51 = vpack.c.bf16 %v84_v48, %v83_v47  ;;  %v682_v53 = vld [vmem:[%s5245_s2 + $0x30] sm:$0xff]  ;;  %v86_v55 = vld [vmem:[%s5244_s0 + $0x78] sm:$0xff]  ;;  %v589_v56 = vld [vmem:[%s5246_s1 + $0x48] sm:$0xff] }
  0x11   :  { %3571 = vmatprep.subr.bf16.mxu1 %v3790_v10  ;;  %v85_v54 = vld [vmem:[%s5244_s0 + $0x70] sm:$0xff]  ;;  %v588_v57 = vld [vmem:[%s5246_s1 + $0x40] sm:$0xff]  ;;  %v685_v59 = vld [vmem:[%s5245_s2 + $0x48] sm:$0xff] }
  0x12   :  { %603 = vperm.xlu0 %3777, %v582_v27   ;;  %v94_v58 = vpack.c.bf16 %v86_v55, %v85_v54  ;;  %v684_v60 = vld [vmem:[%s5245_s2 + $0x40] sm:$0xff]  ;;  %v591_v61 = vld [vmem:[%s5246_s1 + $0x58] sm:$0xff]  ;;  %v590_v62 = vld [vmem:[%s5246_s1 + $0x50] sm:$0xff] }
  0x13   :  { %3540 = vmatpush3.bf16.msra.mxu0 %v3789_v9  ;;  %702 = vperm.xlu1 %3778, %v679_v32   ;;  %v687_v63 = vld [vmem:[%s5245_s2 + $0x58] sm:$0xff]  ;;  %v686_v0 = vld [vmem:[%s5245_s2 + $0x50] sm:$0xff]  ;;  %v593_v1 = vld [vmem:[%s5246_s1 + $0x68] sm:$0xff]  ;;  %v577_v9 = vlaneseq }
  0x14   :  { %3572 = vmatpush3.bf16.msra.mxu1 %v3790_v10  ;;  %3541 = vmatprep.subr.bf16.mxu0 %v3791_v11  ;;  %v592_v2 = vld [vmem:[%s5246_s1 + $0x60] sm:$0xff]  ;;  %v689_v3 = vld [vmem:[%s5245_s2 + $0x68] sm:$0xff]  ;;  %v595_v5 = vld [vmem:[%s5246_s1 + $0x78] sm:$0xff] }
  0x15   :  { %3573 = vmatprep.subr.bf16.mxu1 %v3792_v14  ;;  %v688_v4 = vld [vmem:[%s5245_s2 + $0x60] sm:$0xff]  ;;  %v594_v6 = vld [vmem:[%s5246_s1 + $0x70] sm:$0xff]  ;;  %v691_v7 = vld [vmem:[%s5245_s2 + $0x78] sm:$0xff]  ;;  %v4324_v10 = vand.u32 127, %v577_v9 }
  0x16   :  { %699 = vperm.xlu0 %3777, %v678_v33   ;;  %v690_v8 = vld [vmem:[%s5245_s2 + $0x70] sm:$0xff]  ;;  %v3813_v19 = vld [vmem:[%s5247_s8] sm:$0xff]   ;;  %v4373_v24 = vld [vmem:[%s5248_s4 + $0xc] sm:$0xf] }
  0x17   :  { %3542 = vmatpush3.bf16.msra.mxu0 %v3791_v11  ;;  %612 = vperm.xlu1 %3778, %v585_v36   ;;  %v4356_v20 = vld [vmem:[%s5248_s4] sm:$0xf]  ;;  %v4361_v21 = vld [vmem:[%s5248_s4 + $0x4] sm:$0xf]  ;;  %v4382_v26 = vld [vmem:[%s5248_s4 + $0x10] sm:$0xf] }
  0x18   :  { %3574 = vmatpush3.bf16.msra.mxu1 %v3792_v14  ;;  %3543 = vmatprep.subr.bf16.mxu0 %v3793_v16  ;;  %v4387_v27 = vld [vmem:[%s5248_s4 + $0x14] sm:$0xf]  ;;  %v4394_v29 = vld [vmem:[%s5248_s4 + $0x18] sm:$0xf]  ;;  %v4408_v32 = vld [vmem:[%s5248_s4 + $0x20] sm:$0xf] }
  0x19   :  { %3575 = vmatprep.subr.bf16.mxu1 %v3794_v17  ;;  %v3011_v28 = vcombine.low %v4382_v26, %v4387_v27  ;;  %v4413_v33 = vld [vmem:[%s5248_s4 + $0x24] sm:$0xf]  ;;  %v4420_v35 = vld [vmem:[%s5248_s4 + $0x28] sm:$0xf]  ;;  %v4425_v36 = vld [vmem:[%s5248_s4 + $0x2c] sm:$0xf] }
  0x1a   :  { %609 = vperm.xlu0 %3777, %v584_v39   ;;  %v3013_v34 = vcombine.low %v4408_v32, %v4413_v33  ;;  %v3014_v37 = vcombine.low %v4420_v35, %v4425_v36  ;;  %v4434_v38 = vld [vmem:[%s5248_s4 + $0x30] sm:$0xf]  ;;  %v4439_v39 = vld [vmem:[%s5248_s4 + $0x34] sm:$0xf] }
  0x1b   :  { %3544 = vmatpush3.bf16.msra.mxu0 %v3793_v16  ;;  %708 = vperm.xlu1 %3778, %v681_v42   ;;  %v4451_v42 = vld [vmem:[%s5248_s4 + $0x3c] sm:$0xf] }
  0x1c   :  { %3576 = vmatpush3.bf16.msra.mxu1 %v3794_v17  ;;  %3545 = vmatprep.subr.bf16.mxu0 %v3795_v22  ;;  %v4343_v17 = vadd.s32 128, %v4324_v10 }
  0x1d   :  { %3577 = vmatprep.subr.bf16.mxu1 %v3796_v23 }
  0x1e   :  { %705 = vperm.xlu0 %3777, %v680_v43  }
  0x1f   :  { %3546 = vmatpush3.bf16.msra.mxu0 %v3795_v22  ;;  %618 = vperm.xlu1 %3778, %v587_v46   ;;  %v3009_v22 = vcombine.low %v4356_v20, %v4361_v21 }
  0x20   :  { %3578 = vmatpush3.bf16.msra.mxu1 %v3796_v23  ;;  %3595 = vmatprep.subr.bf16.mxu0 %v3813_v19  ;;  %v4368_v23 = vld [vmem:[%s5248_s4 + $0x8] sm:$0xf] }
  0x21   :  { %v3010_v25 = vcombine.low %v4368_v23, %v4373_v24 }
  0x22   :  { %3548 = vmatmul.mubr.bf16.vlgmr.msra.gmra.mxu0 %v88_v30  ;;  %615 = vperm.xlu0 %3777, %v586_v49  }
  0x23   :  { %3580 = vmatmul.mubr.bf16.vlgmr.msra.gmra.mxu1 %v88_v30  ;;  %3551 = vmatprep.mubr.bf16.mxu0 %v89_v31  ;;  %v4399_v30 = vld [vmem:[%s5248_s4 + $0x1c] sm:$0xf] }
  0x24   :  { %3583 = vmatprep.mubr.bf16.mxu1 %v89_v31  ;;  %714 = vperm.xlu1 %3778, %v683_v52   ;;  %v3012_v31 = vcombine.low %v4394_v29, %v4399_v30 }
  0x25   :  { %3596 = vmatpush3.bf16.msra.mxu0 %v3813_v19 }
  0x26   :  { %711 = vperm.xlu0 %3777, %v682_v53  }
  0x28   :  { %624 = vperm.xlu1 %3778, %v589_v56  }
  0x2a   :  { %3552 = vmatmul.mubr.bf16.gmra.mxu0 %v90_v40  ;;  %621 = vperm.xlu0 %3777, %v588_v57  }
  0x2b   :  { %3584 = vmatmul.mubr.bf16.gmra.mxu1 %v90_v40  ;;  %3555 = vmatprep.mubr.bf16.mxu0 %v91_v41  ;;  %v3015_v40 = vcombine.low %v4434_v38, %v4439_v39 }
  0x2c   :  { %3587 = vmatprep.mubr.bf16.mxu1 %v91_v41  ;;  %720 = vperm.xlu1 %3778, %v685_v59   ;;  %v4446_v41 = vld [vmem:[%s5248_s4 + $0x38] sm:$0xf] }
  0x2d   :  { %v3016_v43 = vcombine.low %v4446_v41, %v4451_v42 }
  0x2e   :  { %717 = vperm.xlu0 %3777, %v684_v60  }
  0x30   :  { %630 = vperm.xlu1 %3778, %v591_v61  }
  0x32   :  { %3556 = vmatmul.mubr.bf16.gmra.mxu0 %v92_v50  ;;  %627 = vperm.xlu0 %3777, %v590_v62  }
  0x33   :  { %3588 = vmatmul.mubr.bf16.gmra.mxu1 %v92_v50  ;;  %3559 = vmatprep.mubr.bf16.mxu0 %v93_v51 }
  0x34   :  { %3591 = vmatprep.mubr.bf16.mxu1 %v93_v51  ;;  %726 = vperm.xlu1 %3778, %v687_v63  }
  0x36   :  { %723 = vperm.xlu0 %3777, %v686_v0  }
  0x38   :  { %636 = vperm.xlu1 %3778, %v593_v1  }
  0x3a   :  { %3560 = vmatmul.mubr.bf16.gmra.mxu0 %v94_v58  ;;  %633 = vperm.xlu0 %3777, %v592_v2  }
  0x3b   :  { %3592 = vmatmul.mubr.bf16.gmra.mxu1 %v94_v58  ;;  %3597 = vmatprep.mubr.msk.bf16.mxu0 %vm980_vm14, %v3009_v22 }
  0x3c   :  { %732 = vperm.xlu1 %3778, %v689_v3  }
  0x3e   :  { %729 = vperm.xlu0 %3777, %v688_v4  }
  0x40   :  { %642 = vperm.xlu1 %3778, %v595_v5  }
  0x42   :  { %639 = vperm.xlu0 %3777, %v594_v6   ;;  %3598 = vmatmul.mubr.msk.bf16.vlgmr.msra.gmra.mxu0 %vm980_vm14, %v3010_v25 }
  0x43   :  { %3601 = vmatprep.mubr.msk.bf16.mxu0 %vm980_vm14, %v3011_v28 }
  0x44   :  { %738 = vperm.xlu1 %3778, %v691_v7  }
  0x46   :  { %735 = vperm.xlu0 %3777, %v690_v8  }
  0x4a   :  { %3602 = vmatmul.mubr.msk.bf16.gmra.mxu0 %vm980_vm14, %v3012_v31 }
  0x4b   :  { %3605 = vmatprep.mubr.msk.bf16.mxu0 %vm980_vm14, %v3013_v34 }
  0x52   :  { %3606 = vmatmul.mubr.msk.bf16.gmra.mxu0 %vm980_vm14, %v3014_v37 }
  0x53   :  { %3609 = vmatprep.mubr.msk.bf16.mxu0 %vm980_vm14, %v3015_v40 }
  0x5a   :  { %3610 = vmatmul.mubr.msk.bf16.gmra.mxu0 %vm980_vm14, %v3016_v43 }
  0x82   :  { %v694_v11 = vpop.permute.xlu1 %693 }
  0x83   :  { %vm740_vm0 = vcmp.eq.s32.totalorder %v4324_v10, %v694_v11  ;;  %vm741_vm7 = vcmp.eq.s32.totalorder %v4343_v17, %v694_v11 }
  0x85   :  { %v598_v12 = vpop.permute.xlu0 %597 }
  0x86   :  { %vm644_vm1 = vcmp.eq.s32.totalorder %v4324_v10, %v598_v12  ;;  %v697_v14 = vpop.permute.xlu1 %696  ;;  %vm645_vm8 = vcmp.eq.s32.totalorder %v4343_v17, %v598_v12 }
  0x87   :  { %vm4328_vm2 = vmor %vm644_vm1, %vm740_vm0  ;;  %vm742_vm3 = vcmp.eq.s32.totalorder %v4324_v10, %v697_v14  ;;  %vm743_vm9 = vcmp.eq.s32.totalorder %v4343_v17, %v697_v14 }
  0x88   :  { %vm773_vm11 = vmor %vm645_vm8, %vm741_vm7 }
  0x89   :  { %v601_v15 = vpop.permute.xlu0 %600 }
  0x8a   :  { %vm646_vm4 = vcmp.eq.s32.totalorder %v4324_v10, %v601_v15  ;;  %vm647_vm10 = vcmp.eq.s32.totalorder %v4343_v17, %v601_v15 }
  0x8b   :  { %vm4334_vm5 = vmor %vm646_vm4, %vm742_vm3 }
  0x8c   :  { %vm3044_vm6 = vmpackc.low %vm4334_vm5, %vm4328_vm2 }
  0x8d   :  { %vm775_vm12 = vmor %vm647_vm10, %vm743_vm9 }
  0x8e   :  { %vm3042_vm13 = vmpackc.low %vm775_vm12, %vm773_vm11 }
  0x8f   :  { %3043 = vmatprep.mubr.msk.bf16.mxu1 %vm3042_vm13, %v4048_v18 }
  0xe2   :  { %v3549_v44 = vpop.f32.mrf.mxu0 }
  0xe3   :  { %v3581_v45 = vpop.f32.mrf.mxu1 }
  0xe4   :  { %v193_v46 = vpop.f32.mrf.mxu0 }
  0xe5   :  { %v434_v47 = vpop.f32.mrf.mxu1 }
  0xe6   :  { %v3550_v48 = vpop.f32.mrf.mxu0 }
  0xe7   :  { %v3259_v49 = vpack.c.bf16 %v3550_v48, %v3549_v44  ;;  %v3582_v50 = vpop.f32.mrf.mxu1 }
  0xe8   :  { %v3299_v51 = vpack.c.bf16 %v3582_v50, %v3581_v45  ;;  %v196_v52 = vpop.f32.mrf.mxu0  ;;  %v4457_v50 = vpop.permute.xlu1 %606 }
  0xe9   :  { %3331 = vst [vmem:[#allocation3 + $0x8] sm:$0xff] %v3259_v49   ;;  %v3254_v53 = vpack.c.bf16 %v196_v52, %v193_v46  ;;  %v437_v54 = vpop.f32.mrf.mxu1  ;;  %vm651_vm15 = vcmp.eq.s32.totalorder %v4343_v17, %v4457_v50  ;;  %vm650_vm8 = vcmp.eq.s32.totalorder %v4324_v10, %v4457_v50  ;;  %v3823_v50 = vld [vmem:[%s5249_s9 + $0x30] sm:$0xff]  }
  0xea   :  { %3339 = vst [vmem:[#allocation3 + $0x48] sm:$0xff] %v3299_v51   ;;  %v3294_v55 = vpack.c.bf16 %v437_v54, %v434_v47  ;;  %v3553_v56 = vpop.f32.mrf.mxu0  ;;  %v4459_v51 = vpop.permute.xlu0 %603 }
  0xeb   :  { %3255 = vst [vmem:[#allocation3] sm:$0xff] %v3254_v53   ;;  %v3585_v57 = vpop.f32.mrf.mxu1  ;;  %vm649_vm1 = vcmp.eq.s32.totalorder %v4343_v17, %v4459_v51  ;;  %vm648_vm10 = vcmp.eq.s32.totalorder %v4324_v10, %v4459_v51  ;;  %v3824_v51 = vld [vmem:[%s5249_s9 + $0x28] sm:$0xff]  }
  0xec   :  { %3338 = vst [vmem:[#allocation3 + $0x40] sm:$0xff] %v3294_v55   ;;  %v209_v58 = vpop.f32.mrf.mxu0  ;;  %v703_v53 = vpop.permute.xlu1 %702 }
  0xed   :  { %v450_v59 = vpop.f32.mrf.mxu1  ;;  %vm747_vm0 = vcmp.eq.s32.totalorder %v4343_v17, %v703_v53  ;;  %vm746_vm9 = vcmp.eq.s32.totalorder %v4324_v10, %v703_v53  ;;  %v3826_v53 = vld [vmem:[%s5249_s9 + $0x18] sm:$0xff]  }
  0xee   :  { %v3554_v60 = vpop.f32.mrf.mxu0  ;;  %v700_v55 = vpop.permute.xlu0 %699  ;;  %vm779_vm4 = vmor %vm651_vm15, %vm747_vm0 }
  0xef   :  { %v3269_v61 = vpack.c.bf16 %v3554_v60, %v3553_v56  ;;  %v3586_v62 = vpop.f32.mrf.mxu1  ;;  %vm745_vm3 = vcmp.eq.s32.totalorder %v4343_v17, %v700_v55  ;;  %vm744_vm11 = vcmp.eq.s32.totalorder %v4324_v10, %v700_v55  ;;  %vm778_vm15 = vmor %vm650_vm8, %vm746_vm9  ;;  %v3828_v55 = vld [vmem:[%s5249_s9 + $0x8] sm:$0xff]  }
  0xf0   :  { %v3309_v63 = vpack.c.bf16 %v3586_v62, %v3585_v57  ;;  %v212_v0 = vpop.f32.mrf.mxu0  ;;  %vm777_vm7 = vmor %vm649_vm1, %vm745_vm3 }
  0xf1   :  { %3333 = vst [vmem:[#allocation3 + $0x18] sm:$0xff] %v3269_v61   ;;  %v3264_v1 = vpack.c.bf16 %v212_v0, %v209_v58  ;;  %v453_v2 = vpop.f32.mrf.mxu1  ;;  %v4461_v58 = vpop.permute.xlu1 %612  ;;  %vm3046_vm12 = vmpackc.low %vm779_vm4, %vm777_vm7 }
  0xf2   :  { %3341 = vst [vmem:[#allocation3 + $0x58] sm:$0xff] %v3309_v63   ;;  %v3304_v3 = vpack.c.bf16 %v453_v2, %v450_v59  ;;  %v3557_v4 = vpop.f32.mrf.mxu0  ;;  %v4463_v60 = vpop.permute.xlu0 %609  ;;  %vm655_vm13 = vcmp.eq.s32.totalorder %v4343_v17, %v4461_v58  ;;  %vm776_vm3 = vmor %vm648_vm10, %vm744_vm11 }
  0xf3   :  { %3332 = vst [vmem:[#allocation3 + $0x10] sm:$0xff] %v3264_v1   ;;  %v3589_v5 = vpop.f32.mrf.mxu1  ;;  %vm653_vm0 = vcmp.eq.s32.totalorder %v4343_v17, %v4463_v60  ;;  %vm3048_vm7 = vmpackc.low %vm778_vm15, %vm776_vm3  ;;  %vm652_vm8 = vcmp.eq.s32.totalorder %v4324_v10, %v4463_v60 }
  0xf4   :  { %3340 = vst [vmem:[#allocation3 + $0x50] sm:$0xff] %v3304_v3   ;;  %v225_v6 = vpop.f32.mrf.mxu0 }
  0xf5   :  { %v466_v7 = vpop.f32.mrf.mxu1  ;;  %v709_v63 = vpop.permute.xlu1 %708 }
  0xf6   :  { %v3558_v8 = vpop.f32.mrf.mxu0  ;;  %v4465_v0 = vpop.permute.xlu0 %705  ;;  %vm751_vm14 = vcmp.eq.s32.totalorder %v4343_v17, %v709_v63  ;;  %vm750_vm4 = vcmp.eq.s32.totalorder %v4324_v10, %v709_v63 }
  0xf7   :  { %v3279_v11 = vpack.c.bf16 %v3558_v8, %v3557_v4  ;;  %v3590_v12 = vpop.f32.mrf.mxu1  ;;  %v3809_v8 = vld [vmem:[#allocation3 + $0x48] sm:$0xff]   ;;  %vm749_vm1 = vcmp.eq.s32.totalorder %v4343_v17, %v4465_v0  ;;  %vm783_vm2 = vmor %vm655_vm13, %vm751_vm14  ;;  %vm748_vm9 = vcmp.eq.s32.totalorder %v4324_v10, %v4465_v0 }
  0xf8   :  { %v3319_v14 = vpack.c.bf16 %v3590_v12, %v3589_v5  ;;  %v228_v15 = vpop.f32.mrf.mxu0  ;;  %v3806_v3 = vld [vmem:[#allocation3 + $0x18] sm:$0xff]   ;;  %vm781_vm5 = vmor %vm653_vm0, %vm749_vm1 }
  0xf9   :  { %3335 = vst [vmem:[#allocation3 + $0x28] sm:$0xff] %v3279_v11   ;;  %v3274_v19 = vpack.c.bf16 %v228_v15, %v225_v6  ;;  %v469_v22 = vpop.f32.mrf.mxu1  ;;  %v3805_v2 = vld [vmem:[#allocation3 + $0x58] sm:$0xff]   ;;  %v4467_v4 = vpop.permute.xlu1 %618  ;;  %v3811_v15 = vld [vmem:[#allocation3 + $0x40] sm:$0xff]   ;;  %vm3050_vm10 = vmpackc.low %vm783_vm2, %vm781_vm5 }
  0xfa   :  { %3343 = vst [vmem:[#allocation3 + $0x68] sm:$0xff] %v3319_v14   ;;  %v3314_v25 = vpack.c.bf16 %v469_v22, %v466_v7  ;;  %v3561_v28 = vpop.f32.mrf.mxu0  ;;  %v4469_v6 = vpop.permute.xlu0 %615  ;;  %v3808_v7 = vld [vmem:[#allocation3 + $0x10] sm:$0xff]   ;;  %v3810_v14 = vld [vmem:[#allocation3 + $0x8] sm:$0xff]   ;;  %vm659_vm11 = vcmp.eq.s32.totalorder %v4343_v17, %v4467_v4  ;;  %vm780_vm0 = vmor %vm652_vm8, %vm748_vm9  ;;  %vm658_vm2 = vcmp.eq.s32.totalorder %v4324_v10, %v4467_v4 }
  0xfb   :  { %3334 = vst [vmem:[#allocation3 + $0x20] sm:$0xff] %v3274_v19   ;;  %v3593_v31 = vpop.f32.mrf.mxu1  ;;  %v3807_v5 = vld [vmem:[#allocation3 + $0x50] sm:$0xff]   ;;  %v3812_v19 = vld [vmem:[#allocation3] sm:$0xff]   ;;  %vm657_vm14 = vcmp.eq.s32.totalorder %v4343_v17, %v4469_v6 }
  0xfc   :  { %3342 = vst [vmem:[#allocation3 + $0x60] sm:$0xff] %v3314_v25   ;;  %v241_v34 = vpop.f32.mrf.mxu0 }
  0xfd   :  { %v482_v37 = vpop.f32.mrf.mxu1  ;;  %v4471_v11 = vpop.permute.xlu1 %714 }
  0xfe   :  { %v3562_v40 = vpop.f32.mrf.mxu0  ;;  %v4473_v12 = vpop.permute.xlu0 %711  ;;  %vm754_vm5 = vcmp.eq.s32.totalorder %v4324_v10, %v4471_v11 }
  0xff   :  { %v3289_v43 = vpack.c.bf16 %v3562_v40, %v3561_v28  ;;  %v3594_v44 = vpop.f32.mrf.mxu1  ;;  %vm753_vm15 = vcmp.eq.s32.totalorder %v4343_v17, %v4473_v12 }
 0x100   :  { %v3329_v45 = vpack.c.bf16 %v3594_v44, %v3593_v31  ;;  %v244_v46 = vpop.f32.mrf.mxu0  ;;  %v3802_v61 = vld [vmem:[#allocation3 + $0x28] sm:$0xff]   ;;  %vm785_vm3 = vmor %vm657_vm14, %vm753_vm15 }
 0x101   :  { %3337 = vst [vmem:[#allocation3 + $0x38] sm:$0xff] %v3289_v43   ;;  %v3284_v47 = vpack.c.bf16 %v244_v46, %v241_v34  ;;  %v485_v48 = vpop.f32.mrf.mxu1  ;;  %v3801_v59 = vld [vmem:[#allocation3 + $0x68] sm:$0xff]   ;;  %v4481_v22 = vpop.permute.xlu1 %624 }
 0x102   :  { %3345 = vst [vmem:[#allocation3 + $0x78] sm:$0xff] %v3329_v45   ;;  %v3324_v49 = vpack.c.bf16 %v485_v48, %v482_v37  ;;  %v3804_v1 = vld [vmem:[#allocation3 + $0x20] sm:$0xff]   ;;  %v4483_v25 = vpop.permute.xlu0 %621  ;;  %vm663_vm9 = vcmp.eq.s32.totalorder %v4343_v17, %v4481_v22 }
 0x103   :  { %3336 = vst [vmem:[#allocation3 + $0x30] sm:$0xff] %v3284_v47   ;;  %v3803_v62 = vld [vmem:[#allocation3 + $0x60] sm:$0xff]  }
 0x104   :  { %3344 = vst [vmem:[#allocation3 + $0x70] sm:$0xff] %v3324_v49  }
 0x105   :  { %v721_v16 = vpop.permute.xlu1 %720 }
 0x106   :  { %v718_v13 = vpop.permute.xlu0 %717 }
 0x108   :  { %v3798_v52 = vld [vmem:[#allocation3 + $0x38] sm:$0xff]  }
 0x109   :  { %v3797_v54 = vld [vmem:[#allocation3 + $0x78] sm:$0xff]   ;;  %v4512_v28 = vpop.permute.xlu1 %630 }
 0x10a   :  { %3387 = vmatprep.subr.bf16.mxu1 %v3797_v54  ;;  %v3800_v57 = vld [vmem:[#allocation3 + $0x30] sm:$0xff]   ;;  %v628_v31 = vpop.permute.xlu0 %627 }
 0x10b   :  { %v3799_v56 = vld [vmem:[#allocation3 + $0x70] sm:$0xff]   ;;  %3388 = vmatpush3.bf16.msra.mxu1 %v3798_v52  ;;  %v3825_v52 = vld [vmem:[%s5249_s9 + $0x20] sm:$0xff]  }
 0x10c   :  { %3389 = vmatprep.subr.bf16.mxu1 %v3799_v56  ;;  %v3827_v54 = vld [vmem:[%s5249_s9 + $0x10] sm:$0xff]   ;;  %v3829_v56 = vld [vmem:[%s5249_s9] sm:$0xff]  }
 0x10d   :  { %v727_v34 = vpop.permute.xlu1 %726 }
 0x10e   :  { %v724_v37 = vpop.permute.xlu0 %723 }
 0x10f   :  { %3390 = vmatpush3.bf16.msra.mxu1 %v3800_v57  ;;  %v4049_v57 = vmov 5  }
 0x110   :  { %3391 = vmatprep.subr.bf16.mxu1 %v3801_v59  ;;  %3780 = vset.pattern.permute.xlu1 %v4049_v57  ;;  %v4614_v59 = vshrl.u32 %v577_v9, 7 }
 0x111   :  { %v637_v40 = vpop.permute.xlu1 %636  ;;  %3779 = vset.pattern.permute.xlu0 %v4049_v57  ;;  %1960 = vperm.xlu1 %3780, %v4361_v21  }
 0x112   :  { %v634_v43 = vpop.permute.xlu0 %633  ;;  %1948 = vperm.xlu0 %3779, %v4356_v20   ;;  %v1297_v21 = vsub.s32 0, %v4614_v59 }
 0x113   :  { %3392 = vmatpush3.bf16.msra.mxu1 %v3802_v61 }
 0x114   :  { %3393 = vmatprep.subr.bf16.mxu1 %v3803_v62 }
 0x115   :  { %v733_v44 = vpop.permute.xlu1 %732  ;;  %1972 = vperm.xlu1 %3780, %v4368_v23  }
 0x116   :  { %v730_v45 = vpop.permute.xlu0 %729  ;;  %1984 = vperm.xlu0 %3779, %v4373_v24   ;;  %v4622_v24 = vld [vmem:[%s5250_s13] sm:$0xff] }
 0x117   :  { %3394 = vmatpush3.bf16.msra.mxu1 %v3804_v1 }
 0x118   :  { %3395 = vmatprep.subr.bf16.mxu1 %v3805_v2 }
 0x119   :  { %v643_v46 = vpop.permute.xlu1 %642  ;;  %1996 = vperm.xlu1 %3780, %v4382_v26  }
 0x11a   :  { %v640_v47 = vpop.permute.xlu0 %639  ;;  %2008 = vperm.xlu0 %3779, %v4387_v27  }
 0x11b   :  { %3396 = vmatpush3.bf16.msra.mxu1 %v3806_v3 }
 0x11c   :  { %3397 = vmatprep.subr.bf16.mxu1 %v3807_v5 }
 0x11d   :  { %v739_v48 = vpop.permute.xlu1 %738  ;;  %2020 = vperm.xlu1 %3780, %v4394_v29   ;;  %v4627_v29 = vrot.slane %v4622_v24, %v1297_v21 }
 0x11e   :  { %v736_v49 = vpop.permute.xlu0 %735  ;;  %2032 = vperm.xlu0 %3779, %v4399_v30  }
 0x11f   :  { %3398 = vmatpush3.bf16.msra.mxu1 %v3808_v7 }
 0x120   :  { %3399 = vmatprep.subr.bf16.mxu1 %v3809_v8 }
 0x121   :  { %2044 = vperm.xlu1 %3780, %v4408_v32  }
 0x122   :  { %2056 = vperm.xlu0 %3779, %v4413_v33  }
 0x123   :  { %3400 = vmatpush3.bf16.msra.mxu1 %v3810_v14 }
 0x124   :  { %3401 = vmatprep.subr.bf16.mxu1 %v3811_v15 }
 0x125   :  { %2068 = vperm.xlu1 %3780, %v4420_v35  }
 0x126   :  { %2080 = vperm.xlu0 %3779, %v4425_v36  }
 0x127   :  { %3402 = vmatpush3.bf16.msra.mxu1 %v3812_v19 }
 0x129   :  { %2092 = vperm.xlu1 %3780, %v4434_v38  }
 0x12a   :  { %3045 = vmatmul.mubr.msk.bf16.vlgmr.msra.gmra.mxu1 %vm3044_vm6, %v4048_v18  ;;  %vm654_vm6 = vcmp.eq.s32.totalorder %v4324_v10, %v4461_v58  ;;  %v3599_v58 = vpop.f32.mrf.mxu0  ;;  %2104 = vperm.xlu0 %3779, %v4439_v39  }
 0x12b   :  { %3047 = vmatprep.mubr.msk.bf16.mxu1 %vm3046_vm12, %v4048_v18  ;;  %vm755_vm12 = vcmp.eq.s32.totalorder %v4343_v17, %v4471_v11  ;;  %vm782_vm13 = vmor %vm654_vm6, %vm750_vm4  ;;  %vm656_vm6 = vcmp.eq.s32.totalorder %v4324_v10, %v4469_v6  ;;  %vm752_vm4 = vcmp.eq.s32.totalorder %v4324_v10, %v4473_v12 }
 0x12c   :  { %vm787_vm1 = vmor %vm659_vm11, %vm755_vm12  ;;  %vm661_vm12 = vcmp.eq.s32.totalorder %v4343_v17, %v4483_v25  ;;  %v1039_v20 = vpop.f32.mrf.mxu0 }
 0x12d   :  { %vm3054_vm8 = vmpackc.low %vm787_vm1, %vm785_vm3  ;;  %vm662_vm1 = vcmp.eq.s32.totalorder %v4324_v10, %v4481_v22  ;;  %vm758_vm3 = vcmp.eq.s32.totalorder %v4324_v10, %v721_v16  ;;  %2116 = vperm.xlu1 %3780, %v4446_v41  }
 0x12e   :  { %vm786_vm11 = vmor %vm658_vm2, %vm754_vm5  ;;  %vm756_vm2 = vcmp.eq.s32.totalorder %v4324_v10, %v718_v13  ;;  %v3600_v9 = vpop.f32.mrf.mxu0  ;;  %2128 = vperm.xlu0 %3779, %v4451_v42  }
 0x12f   :  { %vm784_vm14 = vmor %vm656_vm6, %vm752_vm4  ;;  %vm667_vm6 = vcmp.eq.s32.totalorder %v4343_v17, %v4512_v28  ;;  %vm763_vm4 = vcmp.eq.s32.totalorder %v4343_v17, %v727_v34 }
 0x130   :  { %v1042_v60 = vpop.f32.mrf.mxu0 }
 0x132   :  { %3049 = vmatmul.mubr.msk.bf16.gmra.mxu1 %vm3048_vm7, %v4048_v18  ;;  %vm3052_vm7 = vmpackc.low %vm782_vm13, %vm780_vm0  ;;  %vm757_vm13 = vcmp.eq.s32.totalorder %v4343_v17, %v718_v13  ;;  %v3603_v1 = vpop.f32.mrf.mxu0 }
 0x133   :  { %3051 = vmatprep.mubr.msk.bf16.mxu1 %vm3050_vm10, %v4048_v18  ;;  %vm759_vm10 = vcmp.eq.s32.totalorder %v4343_v17, %v721_v16  ;;  %vm789_vm0 = vmor %vm661_vm12, %vm757_vm13 }
 0x134   :  { %vm791_vm15 = vmor %vm663_vm9, %vm759_vm10  ;;  %vm665_vm10 = vcmp.eq.s32.totalorder %v4343_v17, %v628_v31  ;;  %v1055_v6 = vpop.f32.mrf.mxu0 }
 0x135   :  { %vm3058_vm5 = vmpackc.low %vm791_vm15, %vm789_vm0  ;;  %vm666_vm15 = vcmp.eq.s32.totalorder %v4324_v10, %v4512_v28  ;;  %vm762_vm0 = vcmp.eq.s32.totalorder %v4324_v10, %v727_v34 }
 0x136   :  { %vm790_vm9 = vmor %vm662_vm1, %vm758_vm3  ;;  %vm760_vm1 = vcmp.eq.s32.totalorder %v4324_v10, %v724_v37  ;;  %v3604_v14 = vpop.f32.mrf.mxu0 }
 0x137   :  { %vm795_vm13 = vmor %vm667_vm6, %vm763_vm4  ;;  %vm669_vm4 = vcmp.eq.s32.totalorder %v4343_v17, %v634_v43 }
 0x138   :  { %vm794_vm6 = vmor %vm666_vm15, %vm762_vm0  ;;  %vm764_vm0 = vcmp.eq.s32.totalorder %v4324_v10, %v730_v45  ;;  %v1058_v28 = vpop.f32.mrf.mxu0 }
 0x13a   :  { %3053 = vmatmul.mubr.msk.bf16.gmra.mxu1 %vm3052_vm7, %v4048_v18  ;;  %vm3056_vm7 = vmpackc.low %vm786_vm11, %vm784_vm14  ;;  %vm761_vm11 = vcmp.eq.s32.totalorder %v4343_v17, %v724_v37 }
 0x13b   :  { %3055 = vmatprep.mubr.msk.bf16.mxu1 %vm3054_vm8, %v4048_v18  ;;  %vm660_vm8 = vcmp.eq.s32.totalorder %v4324_v10, %v4483_v25  ;;  %vm793_vm14 = vmor %vm665_vm10, %vm761_vm11 }
 0x13c   :  { %vm788_vm12 = vmor %vm660_vm8, %vm756_vm2  ;;  %vm671_vm2 = vcmp.eq.s32.totalorder %v4343_v17, %v637_v40  ;;  %vm767_vm8 = vcmp.eq.s32.totalorder %v4343_v17, %v733_v44 }
 0x13d   :  { %vm3062_vm3 = vmpackc.low %vm795_vm13, %vm793_vm14  ;;  %vm766_vm13 = vcmp.eq.s32.totalorder %v4324_v10, %v733_v44 }
 0x13e   :  { %vm799_vm11 = vmor %vm671_vm2, %vm767_vm8  ;;  %vm673_vm8 = vcmp.eq.s32.totalorder %v4343_v17, %v640_v47 }
 0x142   :  { %3057 = vmatmul.mubr.msk.bf16.gmra.mxu1 %vm3056_vm7, %v4048_v18  ;;  %vm3060_vm7 = vmpackc.low %vm790_vm9, %vm788_vm12  ;;  %vm765_vm9 = vcmp.eq.s32.totalorder %v4343_v17, %v730_v45 }
 0x143   :  { %3059 = vmatprep.mubr.msk.bf16.mxu1 %vm3058_vm5, %v4048_v18  ;;  %vm664_vm5 = vcmp.eq.s32.totalorder %v4324_v10, %v628_v31  ;;  %vm797_vm12 = vmor %vm669_vm4, %vm765_vm9  ;;  %vm769_vm4 = vcmp.eq.s32.totalorder %v4343_v17, %v736_v49 }
 0x144   :  { %vm792_vm10 = vmor %vm664_vm5, %vm760_vm1  ;;  %vm675_vm1 = vcmp.eq.s32.totalorder %v4343_v17, %v643_v46  ;;  %vm771_vm5 = vcmp.eq.s32.totalorder %v4343_v17, %v739_v48  ;;  %v3822_v17 = vld [vmem:[%s5249_s9 + $0x38] sm:$0xff]  }
 0x145   :  { %vm3064_vm14 = vmpackc.low %vm794_vm6, %vm792_vm10  ;;  %3613 = vmatprep.subr.bf16.mxu0 %v3822_v17 }
 0x146   :  { %vm3066_vm15 = vmpackc.low %vm799_vm11, %vm797_vm12  ;;  %vm674_vm11 = vcmp.eq.s32.totalorder %v4324_v10, %v643_v46  ;;  %vm770_vm12 = vcmp.eq.s32.totalorder %v4324_v10, %v739_v48  ;;  %3614 = vmatpush3.bf16.msra.mxu0 %v3822_v17 }
 0x147   :  { %vm803_vm6 = vmor %vm675_vm1, %vm771_vm5  ;;  %3615 = vmatprep.subr.bf16.mxu0 %v3823_v50 }
 0x148   :  { %vm801_vm10 = vmor %vm673_vm8, %vm769_vm4  ;;  %vm1943_vm4 = vcmp.eq.s32.totalorder %v4324_v10, 64 }
 0x14a   :  { %3061 = vmatmul.mubr.msk.bf16.gmra.mxu1 %vm3060_vm7, %v4048_v18  ;;  %vm670_vm7 = vcmp.eq.s32.totalorder %v4324_v10, %v637_v40  ;;  %3616 = vmatpush3.bf16.msra.mxu0 %v3823_v50 }
 0x14b   :  { %3063 = vmatprep.mubr.msk.bf16.mxu1 %vm3062_vm3, %v4048_v18  ;;  %vm668_vm3 = vcmp.eq.s32.totalorder %v4324_v10, %v634_v43  ;;  %vm798_vm2 = vmor %vm670_vm7, %vm766_vm13  ;;  %vm672_vm7 = vcmp.eq.s32.totalorder %v4324_v10, %v640_v47  ;;  %vm768_vm13 = vcmp.eq.s32.totalorder %v4324_v10, %v736_v49  ;;  %3617 = vmatprep.subr.bf16.mxu0 %v3824_v51  ;;  %v3607_v47 = vpop.f32.mrf.mxu0  ;;  %v3836_v10 = vld [vmem:[%s5252_s11 + $0x18] sm:$0xff]  }
 0x14c   :  { %vm796_vm9 = vmor %vm668_vm3, %vm764_vm0 }
 0x14d   :  { %vm802_vm0 = vmor %vm674_vm11, %vm770_vm12 }
 0x14e   :  { %vm800_vm3 = vmor %vm672_vm7, %vm768_vm13  ;;  %3618 = vmatpush3.bf16.msra.mxu0 %v3824_v51 }
 0x14f   :  { %vm3072_vm1 = vmpackc.low %vm802_vm0, %vm800_vm3  ;;  %3619 = vmatprep.subr.bf16.mxu0 %v3825_v52 }
 0x152   :  { %3065 = vmatmul.mubr.msk.bf16.gmra.mxu1 %vm3064_vm14, %v4048_v18  ;;  %vm3068_vm14 = vmpackc.low %vm798_vm2, %vm796_vm9  ;;  %3620 = vmatpush3.bf16.msra.mxu0 %v3825_v52 }
 0x153   :  { %3067 = vmatprep.mubr.msk.bf16.mxu1 %vm3066_vm15, %v4048_v18  ;;  %vm3070_vm15 = vmpackc.low %vm803_vm6, %vm801_vm10  ;;  %3621 = vmatprep.subr.bf16.mxu0 %v3826_v53 }
 0x154   :  { %vm4784_vm9 = vmpackc.low %vm1943_vm4, %vm1943_vm4 }
 0x156   :  { %3622 = vmatpush3.bf16.msra.mxu0 %v3826_v53 }
 0x157   :  { %3623 = vmatprep.subr.bf16.mxu0 %v3827_v54 }
 0x15a   :  { %3069 = vmatmul.mubr.msk.bf16.gmra.mxu1 %vm3068_vm14, %v4048_v18  ;;  %3624 = vmatpush3.bf16.msra.mxu0 %v3827_v54 }
 0x15b   :  { %3071 = vmatprep.mubr.msk.bf16.mxu1 %vm3070_vm15, %v4048_v18  ;;  %3625 = vmatprep.subr.bf16.mxu0 %v3828_v55 }
 0x15e   :  { %3626 = vmatpush3.bf16.msra.mxu0 %v3828_v55  ;;  %v1071_v55 = vpop.f32.mrf.mxu0 }
 0x15f   :  { %3627 = vmatprep.subr.bf16.mxu0 %v3829_v56 }
 0x162   :  { %3073 = vmatmul.mubr.msk.bf16.gmra.mxu1 %vm3072_vm1, %v4048_v18  ;;  %3628 = vmatpush3.bf16.msra.mxu0 %v3829_v56 }
 0x1ea   :  { %v3403_v23 = vpop.f32.mrf.mxu1 }
 0x1ec   :  { %v3404_v26 = vpop.f32.mrf.mxu1 }
 0x1ed   :  { %v3405_v27 = vadd.f32 %v3404_v26, %v3403_v23 }
 0x1ee   :  { %v3406_v30 = vpop.f32.mrf.mxu1 }
 0x1ef   :  { %v1233_v32 = vadd.f32 %v3405_v27, %v1039_v20  ;;  %v3608_v27 = vpop.f32.mrf.mxu0 }
 0x1f0   :  { %v3407_v33 = vpop.f32.mrf.mxu1 }
 0x1f1   :  { %v4632_v61 = vadd.f32 %v4627_v29, %v1233_v32  ;;  %v3408_v35 = vadd.f32 %v3407_v33, %v3406_v30 }
 0x1f2   :  { %v3409_v62 = vpop.f32.mrf.mxu1 }
 0x1f3   :  { %v3074_v36 = vmul.f32 -1.442695, %v4632_v61  ;;  %v1236_v63 = vadd.f32 %v3408_v35, %v1042_v60 }
 0x1f4   :  { %v3410_v0 = vpop.f32.mrf.mxu1 }
 0x1f5   :  { %3854 = vpow2.f32 %v3074_v36  ;;  %v4638_v38 = vadd.f32 %v4627_v29, %v1236_v63  ;;  %v3411_v39 = vadd.f32 %v3410_v0, %v3409_v62  ;;  %v1074_v0 = vpop.f32.mrf.mxu0 }
 0x1f6   :  { %v3412_v2 = vpop.f32.mrf.mxu1 }
 0x1f7   :  { %v3075_v3 = vmul.f32 -1.442695, %v4638_v38  ;;  %v1241_v4 = vadd.f32 %v3599_v58, %v3411_v39 }
 0x1f8   :  { %v3413_v5 = vpop.f32.mrf.mxu1 }
 0x1f9   :  { %3856 = vpow2.f32 %v3075_v3  ;;  %v4642_v41 = vadd.f32 %v4627_v29, %v1241_v4  ;;  %v3414_v42 = vadd.f32 %v3413_v5, %v3412_v2 }
 0x1fa   :  { %v3415_v7 = vpop.f32.mrf.mxu1 }
 0x1fb   :  { %v3076_v8 = vmul.f32 -1.442695, %v4642_v41  ;;  %v1244_v11 = vadd.f32 %v3600_v9, %v3414_v42 }
 0x1fc   :  { %v3416_v12 = vpop.f32.mrf.mxu1 }
 0x1fd   :  { %3858 = vpow2.f32 %v3076_v8  ;;  %v4646_v15 = vadd.f32 %v4627_v29, %v1244_v11  ;;  %v3417_v19 = vadd.f32 %v3416_v12, %v3415_v7  ;;  %v4669_v8 = vpop.f32.mrf.mxu0 }
 0x1fe   :  { %v3418_v22 = vpop.f32.mrf.mxu1 }
 0x1ff   :  { %v3077_v25 = vmul.f32 -1.442695, %v4646_v15  ;;  %v1249_v16 = vadd.f32 %v3417_v19, %v1055_v6 }
 0x200   :  { %v3419_v13 = vpop.f32.mrf.mxu1 }
 0x201   :  { %3860 = vpow2.f32 %v3077_v25  ;;  %v4650_v31 = vadd.f32 %v4627_v29, %v1249_v16  ;;  %v3420_v34 = vadd.f32 %v3419_v13, %v3418_v22 }
 0x202   :  { %v3855_v37 = vpop.eup %3854  ;;  %v3421_v40 = vpop.f32.mrf.mxu1 }
 0x203   :  { %v1363_v43 = vadd.f32 1.0, %v3855_v37  ;;  %v3078_v44 = vmul.f32 -1.442695, %v4650_v31  ;;  %v1252_v45 = vadd.f32 %v3420_v34, %v1058_v28 }
 0x204   :  { %v3422_v46 = vpop.f32.mrf.mxu1 }
 0x205   :  { %v4654_v48 = vadd.f32 %v4627_v29, %v1252_v45  ;;  %v3423_v49 = vadd.f32 %v3422_v46, %v3421_v40  ;;  %3862 = vpow2.f32 %v3078_v44  ;;  %v1087_v40 = vpop.f32.mrf.mxu0 }
 0x206   :  { %v3857_v17 = vpop.eup %3856  ;;  %v3424_v50 = vpop.f32.mrf.mxu1  ;;  %3864 = vrcp.f32 %v1363_v43 }
 0x207   :  { %v1364_v51 = vadd.f32 1.0, %v3857_v17  ;;  %v3079_v52 = vmul.f32 -1.442695, %v4654_v48  ;;  %v1257_v53 = vadd.f32 %v3603_v1, %v3423_v49 }
 0x208   :  { %v3425_v54 = vpop.f32.mrf.mxu1 }
 0x209   :  { %3866 = vrcp.f32 %v1364_v51  ;;  %v4658_v56 = vadd.f32 %v4627_v29, %v1257_v53  ;;  %v3426_v57 = vadd.f32 %v3425_v54, %v3424_v50  ;;  %v3612_v51 = vpop.f32.mrf.mxu0 }
 0x20a   :  { %v3859_v58 = vpop.eup %3858  ;;  %3868 = vpow2.f32 %v3079_v52  ;;  %v3427_v20 = vpop.f32.mrf.mxu1 }
 0x20b   :  { %v1365_v21 = vadd.f32 1.0, %v3859_v58  ;;  %v3080_v23 = vmul.f32 -1.442695, %v4658_v56  ;;  %v1260_v26 = vadd.f32 %v3604_v14, %v3426_v57 }
 0x20c   :  { %v3428_v9 = vpop.f32.mrf.mxu1 }
 0x20d   :  { %v4662_v30 = vadd.f32 %v4627_v29, %v1260_v26  ;;  %v3429_v32 = vadd.f32 %v3428_v9, %v3427_v20  ;;  %3870 = vpow2.f32 %v3080_v23 }
 0x20e   :  { %v3861_v33 = vpop.eup %3860  ;;  %v3430_v60 = vpop.f32.mrf.mxu1  ;;  %3872 = vrcp.f32 %v1365_v21 }
 0x20f   :  { %v1366_v35 = vadd.f32 1.0, %v3861_v33  ;;  %v3081_v62 = vmul.f32 -1.442695, %v4662_v30  ;;  %v1265_v36 = vadd.f32 %v3429_v32, %v1071_v55 }
 0x210   :  { %v3431_v63 = vpop.f32.mrf.mxu1 }
 0x211   :  { %3874 = vrcp.f32 %v1366_v35  ;;  %v4666_v1 = vadd.f32 %v4627_v29, %v1265_v36  ;;  %v3432_v39 = vadd.f32 %v3431_v63, %v3430_v60 }
 0x212   :  { %3876 = vpow2.f32 %v3081_v62  ;;  %v3433_v2 = vpop.f32.mrf.mxu1  ;;  %v3863_v3 = vpop.eup %3862 }
 0x213   :  { %v3082_v4 = vmul.f32 -1.442695, %v4666_v1  ;;  %v1268_v5 = vadd.f32 %v3432_v39, %v1074_v0  ;;  %v3865_v6 = vpop.eup %3864  ;;  %v1367_v42 = vadd.f32 1.0, %v3863_v3 }
 0x214   :  { %v3434_v7 = vpop.f32.mrf.mxu1  ;;  %v1411_v25 = vmul.f32 %v3865_v6, %v4632_v61 }
 0x215   :  { %3878 = vpow2.f32 %v3082_v4  ;;  %v4672_v11 = vadd.f32 %v4627_v29, %v1268_v5  ;;  %v3435_v12 = vadd.f32 %v3434_v7, %v3433_v2 }
 0x216   :  { %v3867_v14 = vpop.eup %3866  ;;  %v3436_v19 = vpop.f32.mrf.mxu1  ;;  %3880 = vrcp.f32 %v1367_v42 }
 0x217   :  { %v3869_v22 = vpop.eup %3868  ;;  %v1412_v16 = vmul.f32 %v3867_v14, %v4638_v38  ;;  %v3083_v13 = vmul.f32 -1.442695, %v4672_v11  ;;  %v1273_v28 = vadd.f32 %v3607_v47, %v3435_v12 }
 0x218   :  { %v1368_v34 = vadd.f32 1.0, %v3869_v22  ;;  %v3437_v37 = vpop.f32.mrf.mxu1 }
 0x219   :  { %3882 = vpow2.f32 %v3083_v13  ;;  %v4678_v43 = vadd.f32 %v4627_v29, %v1273_v28  ;;  %v3438_v44 = vadd.f32 %v3437_v37, %v3436_v19  ;;  %v1427_v45 = vpack.c.bf16 %v1412_v16, %v1411_v25 }
 0x21a   :  { %3884 = vrcp.f32 %v1368_v34  ;;  %v3439_v46 = vpop.f32.mrf.mxu1  ;;  %v3871_v49 = vpop.eup %3870 }
 0x21b   :  { %v3084_v61 = vmul.f32 -1.442695, %v4678_v43  ;;  %v1276_v17 = vadd.f32 %v3608_v27, %v3438_v44  ;;  %3629 = vmatprep.mubr.bf16.mxu0 %v1427_v45  ;;  %v3873_v38 = vpop.eup %3872  ;;  %v1369_v50 = vadd.f32 1.0, %v3871_v49  ;;  %v1090_v27 = vpop.f32.mrf.mxu0 }
 0x21c   :  { %v3440_v47 = vpop.f32.mrf.mxu1  ;;  %v1413_v58 = vmul.f32 %v3873_v38, %v4642_v41 }
 0x21d   :  { %3886 = vpow2.f32 %v3084_v61  ;;  %v4682_v52 = vadd.f32 %v4627_v29, %v1276_v17  ;;  %v3441_v53 = vadd.f32 %v3440_v47, %v3439_v46 }
 0x21e   :  { %v3875_v54 = vpop.eup %3874  ;;  %v3442_v55 = vpop.f32.mrf.mxu1  ;;  %3888 = vrcp.f32 %v1369_v50 }
 0x21f   :  { %v3877_v57 = vpop.eup %3876  ;;  %v1414_v20 = vmul.f32 %v3875_v54, %v4646_v15  ;;  %v3085_v21 = vmul.f32 -1.442695, %v4682_v52  ;;  %v1281_v23 = vadd.f32 %v3441_v53, %v1087_v40 }
 0x220   :  { %v1370_v26 = vadd.f32 1.0, %v3877_v57  ;;  %v3443_v9 = vpop.f32.mrf.mxu1 }
 0x221   :  { %v1428_v32 = vpack.c.bf16 %v1414_v20, %v1413_v58  ;;  %3890 = vpow2.f32 %v3085_v21  ;;  %v4688_v33 = vadd.f32 %v4627_v29, %v1281_v23  ;;  %v3444_v60 = vadd.f32 %v3443_v9, %v3442_v55 }
 0x222   :  { %v3879_v35 = vpop.eup %3878  ;;  %3892 = vrcp.f32 %v1370_v26  ;;  %v3445_v62 = vpop.f32.mrf.mxu1 }
 0x223   :  { %v1371_v36 = vadd.f32 1.0, %v3879_v35  ;;  %v3086_v41 = vmul.f32 -1.442695, %v4688_v33  ;;  %v1284_v15 = vadd.f32 %v3444_v60, %v1090_v27  ;;  %3630 = vmatmul.mubr.bf16.vlgmr.msra.gmra.mxu0 %v1428_v32  ;;  %v3881_v0 = vpop.eup %3880 }
 0x224   :  { %v3446_v63 = vpop.f32.mrf.mxu1  ;;  %v1415_v12 = vmul.f32 %v3881_v0, %v4650_v31 }
 0x225   :  { %v4692_v39 = vadd.f32 %v4627_v29, %v1284_v15  ;;  %v3447_v2 = vadd.f32 %v3446_v63, %v3445_v62  ;;  %3894 = vpow2.f32 %v3086_v41  ;;  %v1723_v15 = vadd.s32 8, %v4614_v59  ;;  %v4713_v63 = vld [vmem:[%s5251_s3] ss:$0 sm:$0xff] }
 0x226   :  { %v3883_v3 = vpop.eup %3882  ;;  %v3448_v4 = vpop.f32.mrf.mxu1  ;;  %3896 = vrcp.f32 %v1371_v36  ;;  %vm1742_vm5 = vcmp.eq.s32.totalorder %v4713_v63, %v4614_v59 }
 0x227   :  { %v3885_v5 = vpop.eup %3884  ;;  %v1372_v6 = vadd.f32 1.0, %v3883_v3  ;;  %v3087_v42 = vmul.f32 -1.442695, %v4692_v39  ;;  %v1289_v7 = vadd.f32 %v4669_v8, %v3447_v2  ;;  %vm1743_vm2 = vcmp.eq.s32.totalorder %v4713_v63, %v1723_v15 }
 0x228   :  { %v1416_v14 = vmul.f32 %v3885_v5, %v4654_v48  ;;  %v3449_v19 = vpop.f32.mrf.mxu1  ;;  %vm3131_vm8 = vmpackc.low %vm1743_vm2, %vm1742_vm5 }
 0x229   :  { %3898 = vrcp.f32 %v1372_v6  ;;  %v1313_v22 = vadd.f32 %v4627_v29, %v1289_v7  ;;  %v3450_v25 = vadd.f32 %v3449_v19, %v3448_v4 }
 0x22a   :  { %v3887_v16 = vpop.eup %3886  ;;  %3900 = vpow2.f32 %v3087_v42  ;;  %v1429_v13 = vpack.c.bf16 %v1416_v14, %v1415_v12 }
 0x22b   :  { %v1373_v28 = vadd.f32 1.0, %v3887_v16  ;;  %v3088_v34 = vmul.f32 -1.442695, %v1313_v22  ;;  %v1292_v37 = vadd.f32 %v3612_v51, %v3450_v25  ;;  %v3889_v40 = vpop.eup %3888 }
 0x22c   :  { %3633 = vmatprep.mubr.bf16.mxu0 %v1429_v13  ;;  %v1417_v46 = vmul.f32 %v3889_v40, %v4658_v56 }
 0x22d   :  { %v1314_v44 = vadd.f32 %v4627_v29, %v1292_v37  ;;  %3902 = vpow2.f32 %v3088_v34 }
 0x22e   :  { %v3891_v8 = vpop.eup %3890  ;;  %3904 = vrcp.f32 %v1373_v28 }
 0x22f   :  { %v3893_v31 = vpop.eup %3892  ;;  %v1374_v48 = vadd.f32 1.0, %v3891_v8  ;;  %v3089_v45 = vmul.f32 -1.442695, %v1314_v44 }
 0x230   :  { %v1418_v49 = vmul.f32 %v3893_v31, %v4662_v30 }
 0x231   :  { %3906 = vrcp.f32 %v1374_v48 }
 0x232   :  { %3908 = vpow2.f32 %v3089_v45  ;;  %v1430_v61 = vpack.c.bf16 %v1418_v49, %v1417_v46  ;;  %v3895_v17 = vpop.eup %3894  ;;  %v4050_v49 = vmov 839922192  }
 0x233   :  { %v3897_v38 = vpop.eup %3896  ;;  %v1375_v50 = vadd.f32 1.0, %v3895_v17  ;;  %v3830_v17 = vld [vmem:[%s5252_s11 + $0x38] sm:$0xff]  }
 0x234   :  { %3634 = vmatmul.mubr.bf16.gmra.mxu0 %v1430_v61  ;;  %v1419_v29 = vmul.f32 %v3897_v38, %v4666_v1  ;;  %v1952_v61 = vunpack.c.l.s4 %v4050_v49  ;;  %3677 = vmatprep.subr.bf16.mxu1 %v3830_v17 }
 0x235   :  { %3910 = vrcp.f32 %v1375_v50  ;;  %3678 = vmatpush3.bf16.msra.mxu1 %v3830_v17 }
 0x236   :  { %v3899_v47 = vpop.eup %3898 }
 0x237   :  { %v3901_v51 = vpop.eup %3900  ;;  %v1420_v53 = vmul.f32 %v3899_v47, %v4672_v11 }
 0x238   :  { %v1376_v54 = vadd.f32 1.0, %v3901_v51 }
 0x239   :  { %v1431_v55 = vpack.c.bf16 %v1420_v53, %v1419_v29  ;;  %v3831_v29 = vld [vmem:[%s5252_s11 + $0x30] sm:$0xff]  }
 0x23a   :  { %3912 = vrcp.f32 %v1376_v54  ;;  %v3903_v56 = vpop.eup %3902  ;;  %v4760_v54 = vpop.permute.xlu1 %1960  ;;  %3679 = vmatprep.subr.bf16.mxu1 %v3831_v29 }
 0x23b   :  { %3637 = vmatprep.mubr.bf16.mxu0 %v1431_v55  ;;  %v3905_v30 = vpop.eup %3904  ;;  %v1377_v57 = vadd.f32 1.0, %v3903_v56  ;;  %v3832_v55 = vld [vmem:[%s5252_s11 + $0x28] sm:$0xff]   ;;  %v1953_v56 = vunpack.c.0.s8 %v1952_v61  ;;  %3680 = vmatpush3.bf16.msra.mxu1 %v3831_v29 }
 0x23c   :  { %v1421_v21 = vmul.f32 %v3905_v30, %v4678_v43  ;;  %v1949_v30 = vpop.permute.xlu0 %1948  ;;  %3681 = vmatprep.subr.bf16.mxu1 %v3832_v55 }
 0x23d   :  { %3914 = vrcp.f32 %v1377_v57  ;;  %v4766_v57 = vsub.s32 %v1953_v56, %v4614_v59 }
 0x23e   :  { %v3907_v58 = vpop.eup %3906 }
 0x23f   :  { %v3909_v20 = vpop.eup %3908  ;;  %v1422_v23 = vmul.f32 %v3907_v58, %v4682_v52  ;;  %v1453_v52 = vsub.s32 1, %v4614_v59  ;;  %v3833_v58 = vld [vmem:[%s5252_s11 + $0x20] sm:$0xff]   ;;  %3682 = vmatpush3.bf16.msra.mxu1 %v3832_v55 }
 0x240   :  { %v1378_v26 = vadd.f32 1.0, %v3909_v20  ;;  %3683 = vmatprep.subr.bf16.mxu1 %v3833_v58 }
 0x241   :  { %v1432_v9 = vpack.c.bf16 %v1422_v23, %v1421_v21  ;;  %v1973_v21 = vpop.permute.xlu1 %1972 }
 0x242   :  { %3916 = vrcp.f32 %v1378_v26  ;;  %v3911_v1 = vpop.eup %3910  ;;  %v1985_v26 = vpop.permute.xlu0 %1984 }
 0x243   :  { %3638 = vmatmul.mubr.bf16.gmra.mxu0 %v1432_v9  ;;  %v1423_v27 = vmul.f32 %v3911_v1, %v4688_v33  ;;  %v4719_v33 = vrot.slane %v4622_v24, %v1453_v52  ;;  %v1993_v15 = vrot.slane %v1985_v26, %v4766_v57  ;;  %3684 = vmatpush3.bf16.msra.mxu1 %v3833_v58 }
 0x244   :  { %3685 = vmatprep.subr.bf16.mxu1 %v3836_v10 }
 0x247   :  { %v3913_v11 = vpop.eup %3912  ;;  %3686 = vmatpush3.bf16.msra.mxu1 %v3836_v10 }
 0x248   :  { %v1424_v32 = vmul.f32 %v3913_v11, %v4692_v39 }
 0x24a   :  { %v1433_v60 = vpack.c.bf16 %v1424_v32, %v1423_v27  ;;  %v3915_v35 = vpop.eup %3914 }
 0x24b   :  { %v1425_v36 = vmul.f32 %v3915_v35, %v1313_v22  ;;  %v1981_v35 = vrot.slane %v1973_v21, %v4766_v57 }
 0x24c   :  { %3641 = vmatprep.mubr.bf16.mxu0 %v1433_v60 }
 0x24f   :  { %v3917_v62 = vpop.eup %3916 }
 0x250   :  { %v1426_v41 = vmul.f32 %v3917_v62, %v1314_v44 }
 0x252   :  { %v1434_v43 = vpack.c.bf16 %v1426_v41, %v1425_v36 }
 0x254   :  { %3642 = vmatmul.mubr.bf16.gmra.mxu0 %v1434_v43  ;;  %v1957_v43 = vrot.slane %v1949_v30, %v4766_v57 }
 0x255   :  { %3661 = vmatprep.mubr.msk.bf16.mxu0 %vm3131_vm8, %v4048_v18 }
 0x2e3   :  { %v3631_v0 = vpop.f32.mrf.mxu0 }
 0x2e4   :  { %v4723_v39 = vadd.f32 %v3631_v0, %v4719_v33 }
 0x2e5   :  { %v1537_v2 = vpop.f32.mrf.mxu0 }
 0x2e6   :  { %v3100_v3 = vmul.f32 -1.442695, %v4723_v39  ;;  %v4727_v4 = vadd.f32 %v1537_v2, %v4719_v33 }
 0x2e7   :  { %v3632_v5 = vpop.f32.mrf.mxu0 }
 0x2e8   :  { %3918 = vpow2.f32 %v3100_v3  ;;  %v3098_v6 = vmul.f32 -1.442695, %v4727_v4  ;;  %v4731_v42 = vadd.f32 %v3632_v5, %v4719_v33 }
 0x2e9   :  { %v1540_v24 = vpop.f32.mrf.mxu0 }
 0x2ea   :  { %3920 = vpow2.f32 %v3098_v6  ;;  %v3101_v7 = vmul.f32 -1.442695, %v4731_v42  ;;  %v4735_v12 = vadd.f32 %v1540_v24, %v4719_v33  ;;  %v1969_v24 = vrot.slane %v4760_v54, %v4766_v57 }
 0x2ec   :  { %3922 = vpow2.f32 %v3101_v7  ;;  %v3099_v14 = vmul.f32 -1.442695, %v4735_v12 }
 0x2ee   :  { %3924 = vpow2.f32 %v3099_v14 }
 0x2f4   :  { %v3635_v19 = vpop.f32.mrf.mxu0 }
 0x2f5   :  { %v3919_v22 = vpop.eup %3918  ;;  %v4739_v25 = vadd.f32 %v3635_v19, %v4719_v33 }
 0x2f6   :  { %v1650_v16 = vadd.f32 1.0, %v3919_v22  ;;  %v1553_v13 = vpop.f32.mrf.mxu0 }
 0x2f7   :  { %v3921_v28 = vpop.eup %3920  ;;  %v3104_v34 = vmul.f32 -1.442695, %v4739_v25  ;;  %v4743_v37 = vadd.f32 %v1553_v13, %v4719_v33  ;;  %v3839_v13 = vld [vmem:[%s5252_s11 + $0x10] sm:$0xff]  }
 0x2f8   :  { %3926 = vrcp.f32 %v1650_v16  ;;  %v1648_v40 = vadd.f32 1.0, %v3921_v28  ;;  %v3636_v44 = vpop.f32.mrf.mxu0  ;;  %3687 = vmatprep.subr.bf16.mxu1 %v3839_v13 }
 0x2f9   :  { %v3923_v8 = vpop.eup %3922  ;;  %3928 = vpow2.f32 %v3104_v34  ;;  %v3102_v31 = vmul.f32 -1.442695, %v4743_v37  ;;  %v4747_v48 = vadd.f32 %v3636_v44, %v4719_v33  ;;  %3688 = vmatpush3.bf16.msra.mxu1 %v3839_v13 }
 0x2fa   :  { %3930 = vrcp.f32 %v1648_v40  ;;  %v1651_v45 = vadd.f32 1.0, %v3923_v8  ;;  %v1556_v46 = vpop.f32.mrf.mxu0 }
 0x2fb   :  { %v3925_v38 = vpop.eup %3924  ;;  %3932 = vpow2.f32 %v3102_v31  ;;  %v3105_v50 = vmul.f32 -1.442695, %v4747_v48  ;;  %v4754_v47 = vadd.f32 %v1556_v46, %v4719_v33 }
 0x2fc   :  { %3934 = vrcp.f32 %v1651_v45  ;;  %v1649_v51 = vadd.f32 1.0, %v3925_v38 }
 0x2fd   :  { %3936 = vpow2.f32 %v3105_v50  ;;  %v3103_v53 = vmul.f32 -1.442695, %v4754_v47 }
 0x2fe   :  { %3938 = vrcp.f32 %v1649_v51  ;;  %v3842_v51 = vld [vmem:[%s5252_s11 + $0x8] sm:$0xff]  }
 0x2ff   :  { %3940 = vpow2.f32 %v3103_v53  ;;  %v2009_v53 = vpop.permute.xlu0 %2008  ;;  %3689 = vmatprep.subr.bf16.mxu1 %v3842_v51 }
 0x300   :  { %3690 = vmatpush3.bf16.msra.mxu1 %v3842_v51 }
 0x303   :  { %v3639_v20 = vpop.f32.mrf.mxu0 }
 0x304   :  { %v4773_v23 = vadd.f32 %v3639_v20, %v4719_v33 }
 0x305   :  { %v3927_v9 = vpop.eup %3926  ;;  %v1569_v1 = vpop.f32.mrf.mxu0 }
 0x306   :  { %v3929_v11 = vpop.eup %3928  ;;  %v1698_v27 = vmul.f32 %v3927_v9, %v4723_v39  ;;  %v3108_v32 = vmul.f32 -1.442695, %v4773_v23  ;;  %v4778_v60 = vadd.f32 %v1569_v1, %v4719_v33 }
 0x307   :  { %v3931_v62 = vpop.eup %3930  ;;  %v1654_v36 = vadd.f32 1.0, %v3929_v11  ;;  %v3640_v52 = vpop.f32.mrf.mxu0 }
 0x308   :  { %v3933_v0 = vpop.eup %3932  ;;  %v3237_v39 = vpack.c.bf16 %v1698_v27, %v1698_v27  ;;  %v1696_v2 = vmul.f32 %v3931_v62, %v4727_v4  ;;  %3942 = vpow2.f32 %v3108_v32  ;;  %v3106_v3 = vmul.f32 -1.442695, %v4778_v60  ;;  %v2033_v32 = vpop.permute.xlu0 %2032 }
 0x309   :  { %v3935_v5 = vpop.eup %3934  ;;  %3944 = vrcp.f32 %v1654_v36  ;;  %v1652_v6 = vadd.f32 1.0, %v3933_v0  ;;  %v4795_v7 = vadd.f32 %v3640_v52, %v4719_v33  ;;  %v1572_v14 = vpop.f32.mrf.mxu0 }
 0x30a   :  { %v3937_v19 = vpop.eup %3936  ;;  %v3235_v22 = vpack.c.bf16 %v1696_v2, %v1696_v2  ;;  %v1699_v16 = vmul.f32 %v3935_v5, %v4731_v42  ;;  %3946 = vpow2.f32 %v3106_v3  ;;  %v2197_v4 = vsel %vm4784_vm9, %v1981_v35, %v3237_v39 }
 0x30b   :  { %v3939_v28 = vpop.eup %3938  ;;  %3948 = vrcp.f32 %v1652_v6  ;;  %v1655_v34 = vadd.f32 1.0, %v3937_v19  ;;  %2213 = vst [vmem:[%s5254_s14 + $0x8] sm:$0xf] %v2197_v4  ;;  %v3109_v40 = vmul.f32 -1.442695, %v4795_v7  ;;  %v4808_v42 = vadd.f32 %v1572_v14, %v4719_v33 }
 0x30c   :  { %v3941_v44 = vpop.eup %3940  ;;  %v3238_v8 = vpack.c.bf16 %v1699_v16, %v1699_v16  ;;  %v1697_v31 = vmul.f32 %v3939_v28, %v4735_v12  ;;  %v2195_v45 = vsel %vm4784_vm9, %v1957_v43, %v3235_v22  ;;  %v4813_v46 = vpack.c.bf16 %v1699_v16, %v1698_v27  ;;  %v1997_v12 = vpop.permute.xlu1 %1996 }
 0x30d   :  { %3950 = vrcp.f32 %v1655_v34  ;;  %v1653_v49 = vadd.f32 1.0, %v3941_v44  ;;  %2211 = vst [vmem:[%s5254_s14] sm:$0xf] %v2195_v45  ;;  %v3107_v61 = vmul.f32 -1.442695, %v4808_v42  ;;  %v2005_v62 = vrot.slane %v1997_v12, %v4766_v57  ;;  %v2057_v45 = vpop.permute.xlu0 %2056 }
 0x30e   :  { %v3236_v17 = vpack.c.bf16 %v1697_v31, %v1697_v31  ;;  %3952 = vpow2.f32 %v3109_v40  ;;  %v2198_v38 = vsel %vm4784_vm9, %v1993_v15, %v3238_v8  ;;  %v4821_v50 = vpack.c.bf16 %v1697_v31, %v1696_v2 }
 0x30f   :  { %3954 = vrcp.f32 %v1653_v49  ;;  %2214 = vst [vmem:[%s5254_s14 + $0xc] sm:$0xf] %v2198_v38  ;;  %v2041_v2 = vrot.slane %v2033_v32, %v4766_v57  ;;  %v2017_v28 = vrot.slane %v2009_v53, %v4766_v57 }
 0x310   :  { %v2196_v29 = vsel %vm4784_vm9, %v1969_v24, %v3236_v17  ;;  %3956 = vpow2.f32 %v3107_v61  ;;  %v2021_v55 = vpop.permute.xlu1 %2020 }
 0x311   :  { %2212 = vst [vmem:[%s5254_s14 + $0x4] sm:$0xf] %v2196_v29  ;;  %v2029_v27 = vrot.slane %v2021_v55, %v4766_v57 }
 0x314   :  { %v3643_v54 = vpop.f32.mrf.mxu0  ;;  %v2045_v34 = vpop.permute.xlu1 %2044 }
 0x315   :  { %v3943_v56 = vpop.eup %3942  ;;  %v4835_v30 = vadd.f32 %v3643_v54, %v4719_v33  ;;  %v2053_v55 = vrot.slane %v2045_v34, %v4766_v57 }
 0x316   :  { %v3945_v58 = vpop.eup %3944  ;;  %v1658_v20 = vadd.f32 1.0, %v3943_v56  ;;  %v1585_v21 = vpop.f32.mrf.mxu0 }
 0x317   :  { %v3947_v26 = vpop.eup %3946  ;;  %v4838_v9 = vmul.f32 %v3945_v58, %v4739_v25  ;;  %v3112_v1 = vmul.f32 -1.442695, %v4835_v30  ;;  %v4842_v11 = vadd.f32 %v1585_v21, %v4719_v33  ;;  %v2081_v58 = vpop.permute.xlu0 %2080 }
 0x318   :  { %v3949_v35 = vpop.eup %3948  ;;  %3958 = vrcp.f32 %v1658_v20  ;;  %v1656_v10 = vadd.f32 1.0, %v3947_v26  ;;  %v3644_v36 = vpop.f32.mrf.mxu0 }
 0x319   :  { %v3241_v43 = vpack.c.bf16 %v4838_v9, %v4838_v9  ;;  %v4849_v25 = vmul.f32 %v3949_v35, %v4743_v37  ;;  %3960 = vpow2.f32 %v3112_v1  ;;  %v3110_v52 = vmul.f32 -1.442695, %v4842_v11  ;;  %v2069_v31 = vpop.permute.xlu1 %2068 }
 0x31a   :  { %v3951_v15 = vpop.eup %3950  ;;  %3962 = vrcp.f32 %v1656_v10  ;;  %v4853_v0 = vadd.f32 %v3644_v36, %v4719_v33  ;;  %v1588_v39 = vpop.f32.mrf.mxu0  ;;  %v2077_v38 = vrot.slane %v2069_v31, %v4766_v57 }
 0x31b   :  { %v3953_v3 = vpop.eup %3952  ;;  %v3239_v5 = vpack.c.bf16 %v4849_v25, %v4849_v25  ;;  %v4859_v6 = vmul.f32 %v3951_v15, %v4747_v48  ;;  %3964 = vpow2.f32 %v3110_v52  ;;  %v2201_v37 = vsel %vm4784_vm9, %v2029_v27, %v3241_v43 }
 0x31c   :  { %v3955_v24 = vpop.eup %3954  ;;  %v1659_v14 = vadd.f32 1.0, %v3953_v3  ;;  %2217 = vst [vmem:[%s5254_s14 + $0x18] sm:$0xf] %v2201_v37  ;;  %v3113_v19 = vmul.f32 -1.442695, %v4853_v0  ;;  %v4868_v22 = vadd.f32 %v1588_v39, %v4719_v33  ;;  %v2089_v27 = vrot.slane %v2081_v58, %v4766_v57  ;;  %v2105_v3 = vpop.permute.xlu0 %2104  ;;  %v3838_v58 = vld [vmem:[%s5253_s10 + $0x20] sm:$0xff]  }
 0x31d   :  { %v3957_v16 = vpop.eup %3956  ;;  %v3242_v48 = vpack.c.bf16 %v4859_v6, %v4859_v6  ;;  %v4873_v4 = vmul.f32 %v3955_v24, %v4754_v47  ;;  %v2199_v13 = vsel %vm4784_vm9, %v2005_v62, %v3239_v5  ;;  %v2065_v43 = vrot.slane %v2057_v45, %v4766_v57  ;;  %v2093_v52 = vpop.permute.xlu1 %2092 }
 0x31e   :  { %3966 = vrcp.f32 %v1659_v14  ;;  %v1657_v40 = vadd.f32 1.0, %v3957_v16  ;;  %2215 = vst [vmem:[%s5254_s14 + $0x10] sm:$0xf] %v2199_v13  ;;  %v3111_v33 = vmul.f32 -1.442695, %v4868_v22  ;;  %v2113_v31 = vrot.slane %v2105_v3, %v4766_v57  ;;  %v2238_v3 = vld [vmem:[%s5244_s0 + $0x40] sm:$0xff] }
 0x31f   :  { %v3240_v44 = vpack.c.bf16 %v4873_v4, %v4873_v4  ;;  %3968 = vpow2.f32 %v3113_v19  ;;  %v2202_v47 = vsel %vm4784_vm9, %v2041_v2, %v3242_v48  ;;  %v2101_v48 = vrot.slane %v2093_v52, %v4766_v57  ;;  %v2234_v52 = vld [vmem:[%s5244_s0 + $0x20] sm:$0xff] }
 0x320   :  { %3970 = vrcp.f32 %v1657_v40  ;;  %2218 = vst [vmem:[%s5254_s14 + $0x1c] sm:$0xf] %v2202_v47  ;;  %v2129_v13 = vpop.permute.xlu0 %2128  ;;  %v1714_v41 = vpack.c.bf16 %v4873_v4, %v4849_v25  ;;  %v1729_v25 = vadd.s32 56, %v4614_v59  ;;  %v1730_v4 = vadd.s32 64, %v4614_v59 }
 0x321   :  { %v2200_v8 = vsel %vm4784_vm9, %v2017_v28, %v3240_v44  ;;  %3972 = vpow2.f32 %v3111_v33  ;;  %v2137_v44 = vrot.slane %v2129_v13, %v4766_v57 }
 0x322   :  { %2216 = vst [vmem:[%s5254_s14 + $0x14] sm:$0xf] %v2200_v8  ;;  %vm1749_vm13 = vcmp.eq.s32.totalorder %v4713_v63, %v1729_v25  ;;  %vm1750_vm0 = vcmp.eq.s32.totalorder %v4713_v63, %v1730_v4  ;;  %v3846_v4 = vld [vmem:[%s5255_s12 + $0x38] sm:$0xff]  }
 0x325   :  { %v3959_v49 = vpop.eup %3958 }
 0x326   :  { %v3961_v61 = vpop.eup %3960  ;;  %v4895_v17 = vmul.f32 %v3959_v49, %v4773_v23 }
 0x327   :  { %v3963_v12 = vpop.eup %3962  ;;  %v1662_v51 = vadd.f32 1.0, %v3961_v61 }
 0x328   :  { %v3965_v29 = vpop.eup %3964  ;;  %v3245_v53 = vpack.c.bf16 %v4895_v17, %v4895_v17  ;;  %v4901_v54 = vmul.f32 %v3963_v12, %v4778_v60  ;;  %v1715_v12 = vpack.c.bf16 %v4859_v6, %v4838_v9  ;;  %v3834_v9 = vld [vmem:[%s5253_s10 + $0x38] sm:$0xff]   ;;  %v3835_v6 = vld [vmem:[%s5253_s10 + $0x30] sm:$0xff]  }
 0x329   :  { %3974 = vrcp.f32 %v1662_v51  ;;  %v1660_v56 = vadd.f32 1.0, %v3965_v29  ;;  %v1725_v51 = vadd.s32 24, %v4614_v59  ;;  %v1726_v29 = vadd.s32 32, %v4614_v59 }
 0x32a   :  { %v3243_v23 = vpack.c.bf16 %v4901_v54, %v4901_v54  ;;  %v2205_v20 = vsel %vm4784_vm9, %v2077_v38, %v3245_v53  ;;  %v1727_v53 = vadd.s32 40, %v4614_v59 }
 0x32b   :  { %v3967_v21 = vpop.eup %3966  ;;  %3976 = vrcp.f32 %v1660_v56  ;;  %2221 = vst [vmem:[%s5254_s14 + $0x28] sm:$0xf] %v2205_v20  ;;  %vm1745_vm10 = vcmp.eq.s32.totalorder %v4713_v63, %v1725_v51  ;;  %vm1746_vm14 = vcmp.eq.s32.totalorder %v4713_v63, %v1726_v29  ;;  %v1733_v56 = vadd.s32 88, %v4614_v59 }
 0x32c   :  { %v3969_v26 = vpop.eup %3968  ;;  %v1707_v60 = vmul.f32 %v3967_v21, %v4795_v7  ;;  %v2203_v1 = vsel %vm4784_vm9, %v2053_v55, %v3243_v23  ;;  %vm1747_vm11 = vcmp.eq.s32.totalorder %v4713_v63, %v1727_v53  ;;  %v1732_v55 = vadd.s32 80, %v4614_v59  ;;  %v3840_v21 = vld [vmem:[%s5253_s10 + $0x18] sm:$0xff]  }
 0x32d   :  { %v3971_v32 = vpop.eup %3970  ;;  %v1663_v35 = vadd.f32 1.0, %v3969_v26  ;;  %2219 = vst [vmem:[%s5254_s14 + $0x20] sm:$0xf] %v2203_v1  ;;  %vm3135_vm15 = vmpackc.low %vm1747_vm11, %vm1746_vm14  ;;  %v1734_v23 = vadd.s32 96, %v4614_v59  ;;  %v1735_v20 = vadd.s32 104, %v4614_v59  ;;  %vm1753_vm8 = vcmp.eq.s32.totalorder %v4713_v63, %v1733_v56  ;;  %v3841_v1 = vld [vmem:[%s5253_s10 + $0x10] sm:$0xff]  }
 0x32e   :  { %v3973_v10 = vpop.eup %3972  ;;  %v3246_v62 = vpack.c.bf16 %v1707_v60, %v1707_v60  ;;  %v1705_v36 = vmul.f32 %v3971_v32, %v4808_v42  ;;  %v2117_v42 = vpop.permute.xlu1 %2116  ;;  %vm1752_vm2 = vcmp.eq.s32.totalorder %v4713_v63, %v1732_v55  ;;  %v1736_v26 = vadd.s32 112, %v4614_v59  ;;  %v3844_v32 = vld [vmem:[%s5253_s10] sm:$0xff]   ;;  %v3850_v56 = vld [vmem:[%s5255_s12 + $0x18] sm:$0xff]  }
 0x32f   :  { %3978 = vrcp.f32 %v1663_v35  ;;  %v1661_v7 = vadd.f32 1.0, %v3973_v10  ;;  %v2125_v24 = vrot.slane %v2117_v42, %v4766_v57  ;;  %v1717_v57 = vpack.c.bf16 %v1707_v60, %v4895_v17  ;;  %v2231_v35 = vld [vmem:[%s5244_s0 + $0x8] sm:$0xff]  ;;  %v3849_v55 = vld [vmem:[%s5255_s12 + $0x20] sm:$0xff]  }
 0x330   :  { %v3244_v15 = vpack.c.bf16 %v1705_v36, %v1705_v36  ;;  %v2206_v39 = vsel %vm4784_vm9, %v2089_v27, %v3246_v62  ;;  %v1724_v17 = vadd.s32 16, %v4614_v59  ;;  %vm1754_vm4 = vcmp.eq.s32.totalorder %v4713_v63, %v1734_v23  ;;  %v3843_v27 = vld [vmem:[%s5253_s10 + $0x8] sm:$0xff]   ;;  %v2233_v62 = vld [vmem:[%s5244_s0 + $0x18] sm:$0xff] }
 0x331   :  { %3980 = vrcp.f32 %v1661_v7  ;;  %2222 = vst [vmem:[%s5254_s14 + $0x2c] sm:$0xf] %v2206_v39  ;;  %v1737_v60 = vadd.s32 120, %v4614_v59  ;;  %vm1756_vm14 = vcmp.eq.s32.totalorder %v4713_v63, %v1736_v26  ;;  %v2235_v7 = vld [vmem:[%s5244_s0 + $0x28] sm:$0xff]  ;;  %v2236_v39 = vld [vmem:[%s5244_s0 + $0x30] sm:$0xff] }
 0x332   :  { %v2204_v2 = vsel %vm4784_vm9, %v2065_v43, %v3244_v15  ;;  %vm1744_vm6 = vcmp.eq.s32.totalorder %v4713_v63, %v1724_v17  ;;  %v2248_v15 = vpack.c.bf16 %v2235_v7, %v2234_v52  ;;  %v3852_v23 = vld [vmem:[%s5255_s12 + $0x8] sm:$0xff]  }
 0x333   :  { %2220 = vst [vmem:[%s5254_s14 + $0x24] sm:$0xf] %v2204_v2  ;;  %vm3133_vm12 = vmpackc.low %vm1745_vm10, %vm1744_vm6  ;;  %vm1757_vm11 = vcmp.eq.s32.totalorder %v4713_v63, %v1737_v60  ;;  %v2237_v2 = vld [vmem:[%s5244_s0 + $0x38] sm:$0xff] }
 0x334   :  { %vm3141_vm6 = vmpackc.low %vm1753_vm8, %vm1752_vm2  ;;  %v2249_v42 = vpack.c.bf16 %v2237_v2, %v2236_v39 }
 0x336   :  { %v3975_v5 = vpop.eup %3974 }
 0x337   :  { %v1710_v37 = vmul.f32 %v3975_v5, %v4835_v30  ;;  %v2239_v5 = vld [vmem:[%s5244_s0 + $0x48] sm:$0xff] }
 0x338   :  { %v3977_v14 = vpop.eup %3976 }
 0x339   :  { %v3249_v19 = vpack.c.bf16 %v1710_v37, %v1710_v37  ;;  %v1708_v16 = vmul.f32 %v3977_v14, %v4842_v11  ;;  %v2241_v14 = vld [vmem:[%s5244_s0 + $0x58] sm:$0xff] }
 0x33b   :  { %v3247_v28 = vpack.c.bf16 %v1708_v16, %v1708_v16  ;;  %v2209_v34 = vsel %vm4784_vm9, %v2125_v24, %v3249_v19  ;;  %v2240_v24 = vld [vmem:[%s5244_s0 + $0x50] sm:$0xff] }
 0x33c   :  { %v3979_v40 = vpop.eup %3978  ;;  %2225 = vst [vmem:[%s5254_s14 + $0x38] sm:$0xf] %v2209_v34  ;;  %v2251_v19 = vpack.c.bf16 %v2241_v14, %v2240_v24  ;;  %v2245_v34 = vld [vmem:[%s5244_s0 + $0x78] sm:$0xff] }
 0x33d   :  { %v1711_v30 = vmul.f32 %v3979_v40, %v4853_v0  ;;  %v2207_v33 = vsel %vm4784_vm9, %v2101_v48, %v3247_v28  ;;  %v2243_v48 = vld [vmem:[%s5244_s0 + $0x68] sm:$0xff]  ;;  %v2244_v28 = vld [vmem:[%s5244_s0 + $0x70] sm:$0xff] }
 0x33e   :  { %v3981_v11 = vpop.eup %3980  ;;  %2223 = vst [vmem:[%s5254_s14 + $0x30] sm:$0xf] %v2207_v33  ;;  %v2253_v40 = vpack.c.bf16 %v2245_v34, %v2244_v28 }
 0x33f   :  { %v3250_v47 = vpack.c.bf16 %v1711_v30, %v1711_v30  ;;  %v1709_v8 = vmul.f32 %v3981_v11, %v4868_v22  ;;  %v1719_v45 = vpack.c.bf16 %v1711_v30, %v1710_v37  ;;  %v1716_v22 = vpack.c.bf16 %v1705_v36, %v4901_v54  ;;  %v3845_v36 = vld [vmem:[%s5252_s11] sm:$0xff]  }
 0x340   :  { %v1731_v54 = vadd.s32 72, %v4614_v59  ;;  %3691 = vmatprep.subr.bf16.mxu1 %v3845_v36  ;;  %v2250_v37 = vpack.c.bf16 %v2239_v5, %v2238_v3 }
 0x341   :  { %v3248_v49 = vpack.c.bf16 %v1709_v8, %v1709_v8  ;;  %v2210_v0 = vsel %vm4784_vm9, %v2137_v44, %v3250_v47  ;;  %3645 = vmatprep.subr.bf16.mxu0 %v1719_v45  ;;  %v1718_v61 = vpack.c.bf16 %v1709_v8, %v1708_v16  ;;  %3692 = vmatpush3.bf16.msra.mxu1 %v3845_v36  ;;  %v2242_v16 = vld [vmem:[%s5244_s0 + $0x60] sm:$0xff] }
 0x342   :  { %2226 = vst [vmem:[%s5254_s14 + $0x3c] sm:$0xf] %v2210_v0  ;;  %3646 = vmatpush3.bf16.msra.mxu0 %v1719_v45  ;;  %vm1751_vm3 = vcmp.eq.s32.totalorder %v4713_v63, %v1731_v54  ;;  %v2252_v13 = vpack.c.bf16 %v2243_v48, %v2242_v16  ;;  %3741 = vmatprep.subr.bf16.mxu1 %v3846_v4  ;;  %v3847_v54 = vld [vmem:[%s5255_s12 + $0x30] sm:$0xff]  }
 0x343   :  { %v2208_v38 = vsel %vm4784_vm9, %v2113_v31, %v3248_v49  ;;  %3647 = vmatprep.subr.bf16.mxu0 %v1718_v61  ;;  %vm3139_vm5 = vmpackc.low %vm1751_vm3, %vm1750_vm0  ;;  %vm1755_vm9 = vcmp.eq.s32.totalorder %v4713_v63, %v1735_v20  ;;  %v3853_v20 = vld [vmem:[%s5255_s12] sm:$0xff]  }
 0x344   :  { %2224 = vst [vmem:[%s5254_s14 + $0x34] sm:$0xf] %v2208_v38  ;;  %vm3143_vm10 = vmpackc.low %vm1755_vm9, %vm1754_vm4 }
 0x346   :  { %3648 = vmatpush3.bf16.msra.mxu0 %v1718_v61 }
 0x347   :  { %3649 = vmatprep.subr.bf16.mxu0 %v1717_v57 }
 0x34a   :  { %3650 = vmatpush3.bf16.msra.mxu0 %v1717_v57 }
 0x34b   :  { %3651 = vmatprep.subr.bf16.mxu0 %v1716_v22 }
 0x34e   :  { %3652 = vmatpush3.bf16.msra.mxu0 %v1716_v22 }
 0x34f   :  { %3653 = vmatprep.subr.bf16.mxu0 %v1715_v12 }
 0x352   :  { %3654 = vmatpush3.bf16.msra.mxu0 %v1715_v12 }
 0x353   :  { %3655 = vmatprep.subr.bf16.mxu0 %v1714_v41 }
 0x356   :  { %3656 = vmatpush3.bf16.msra.mxu0 %v1714_v41 }
 0x357   :  { %3657 = vmatprep.subr.bf16.mxu0 %v4813_v46 }
 0x35a   :  { %3658 = vmatpush3.bf16.msra.mxu0 %v4813_v46  ;;  %v1728_v46 = vadd.s32 48, %v4614_v59 }
 0x35b   :  { %3659 = vmatprep.subr.bf16.mxu0 %v4821_v50 }
 0x35c   :  { %vm1748_vm7 = vcmp.eq.s32.totalorder %v4713_v63, %v1728_v46  ;;  %v2230_v63 = vld [vmem:[%s5244_s0] sm:$0xff] }
 0x35d   :  { %vm3137_vm1 = vmpackc.low %vm1749_vm13, %vm1748_vm7  ;;  %v2246_v10 = vpack.c.bf16 %v2231_v35, %v2230_v63  ;;  %v2602_v35 = vsub.s32 2, %v4614_v59 }
 0x35e   :  { %3660 = vmatpush3.bf16.msra.mxu0 %v4821_v50  ;;  %v3837_v50 = vld [vmem:[%s5253_s10 + $0x28] sm:$0xff]  }
 0x35f   :  { %3709 = vmatprep.subr.bf16.mxu0 %v3834_v9 }
 0x361   :  { %3662 = vmatmul.mubr.msk.bf16.vlgmr.msra.gmra.mxu0 %vm3133_vm12, %v4048_v18  ;;  %vm3145_vm12 = vmpackc.low %vm1757_vm11, %vm1756_vm14 }
 0x362   :  { %3665 = vmatprep.mubr.msk.bf16.mxu0 %vm3135_vm15, %v4048_v18  ;;  %3710 = vmatpush3.bf16.msra.mxu0 %v3834_v9 }
 0x363   :  { %3711 = vmatprep.subr.bf16.mxu0 %v3835_v6 }
 0x366   :  { %3712 = vmatpush3.bf16.msra.mxu0 %v3835_v6 }
 0x367   :  { %3713 = vmatprep.subr.bf16.mxu0 %v3837_v50 }
 0x369   :  { %3666 = vmatmul.mubr.msk.bf16.gmra.mxu0 %vm3137_vm1, %v4048_v18 }
 0x36a   :  { %3669 = vmatprep.mubr.msk.bf16.mxu0 %vm3139_vm5, %v4048_v18  ;;  %3714 = vmatpush3.bf16.msra.mxu0 %v3837_v50  ;;  %v3848_v50 = vld [vmem:[%s5255_s12 + $0x28] sm:$0xff]  }
 0x36b   :  { %3715 = vmatprep.subr.bf16.mxu0 %v3838_v58 }
 0x36e   :  { %3716 = vmatpush3.bf16.msra.mxu0 %v3838_v58  ;;  %v3851_v58 = vld [vmem:[%s5255_s12 + $0x10] sm:$0xff]  }
 0x36f   :  { %3717 = vmatprep.subr.bf16.mxu0 %v3840_v21 }
 0x371   :  { %3670 = vmatmul.mubr.msk.bf16.gmra.mxu0 %vm3141_vm6, %v4048_v18 }
 0x372   :  { %3673 = vmatprep.mubr.msk.bf16.mxu0 %vm3143_vm10, %v4048_v18  ;;  %3718 = vmatpush3.bf16.msra.mxu0 %v3840_v21 }
 0x373   :  { %3719 = vmatprep.subr.bf16.mxu0 %v3841_v1 }
 0x376   :  { %3720 = vmatpush3.bf16.msra.mxu0 %v3841_v1 }
 0x377   :  { %3721 = vmatprep.subr.bf16.mxu0 %v3843_v27 }
 0x379   :  { %3674 = vmatmul.mubr.msk.bf16.gmra.mxu0 %vm3145_vm12, %v4048_v18  ;;  %v2232_v18 = vld [vmem:[%s5244_s0 + $0x10] sm:$0xff] }
 0x37a   :  { %3722 = vmatpush3.bf16.msra.mxu0 %v3843_v27  ;;  %v2247_v43 = vpack.c.bf16 %v2233_v62, %v2232_v18  ;;  %3725 = vmatprep.mubr.bf16.mxu0 %v2246_v10  ;;  %v5106_v18 = vld [vmem:[%s5250_s13] sm:$0xff] }
 0x37b   :  { %3723 = vmatprep.subr.bf16.mxu0 %v3844_v32  ;;  %v5109_v62 = vrot.slane %v5106_v18, %v2602_v35 }
 0x37e   :  { %3724 = vmatpush3.bf16.msra.mxu0 %v3844_v32 }
 0x381   :  { %3726 = vmatmul.mubr.bf16.vlgmr.msra.gmra.mxu0 %v2247_v43 }
 0x382   :  { %3729 = vmatprep.mubr.bf16.mxu0 %v2248_v15 }
 0x389   :  { %3730 = vmatmul.mubr.bf16.gmra.mxu0 %v2249_v42 }
 0x38a   :  { %3733 = vmatprep.mubr.bf16.mxu0 %v2250_v37 }
 0x391   :  { %3734 = vmatmul.mubr.bf16.gmra.mxu0 %v2251_v19 }
 0x392   :  { %3737 = vmatprep.mubr.bf16.mxu0 %v2252_v13 }
 0x399   :  { %3738 = vmatmul.mubr.bf16.gmra.mxu0 %v2253_v40 }
 0x421   :  { %v3663_v30 = vpop.f32.mrf.mxu0 }
 0x423   :  { %v1848_v33 = vpop.f32.mrf.mxu0 }
 0x425   :  { %v3664_v44 = vpop.f32.mrf.mxu0 }
 0x426   :  { %v2287_v8 = vpack.c.bf16 %v3664_v44, %v3663_v30 }
 0x427   :  { %v1851_v11 = vpop.f32.mrf.mxu0 }
 0x428   :  { %v2286_v47 = vpack.c.bf16 %v1851_v11, %v1848_v33 }
 0x429   :  { %v3667_v31 = vpop.f32.mrf.mxu0 }
 0x42a   :  { %3693 = vmatprep.mubr.bf16.mxu1 %v2286_v47 }
 0x42b   :  { %v1864_v45 = vpop.f32.mrf.mxu0  ;;  %3694 = vmatmul.mubr.bf16.vlgmr.msra.gmra.mxu1 %v2287_v8 }
 0x42c   :  { %3742 = vmatpush3.bf16.msra.mxu1 %v3846_v4 }
 0x42d   :  { %v3668_v49 = vpop.f32.mrf.mxu0  ;;  %3743 = vmatprep.subr.bf16.mxu1 %v3847_v54 }
 0x42e   :  { %v2289_v38 = vpack.c.bf16 %v3668_v49, %v3667_v31 }
 0x42f   :  { %v1867_v0 = vpop.f32.mrf.mxu0 }
 0x430   :  { %v2288_v61 = vpack.c.bf16 %v1867_v0, %v1864_v45  ;;  %3744 = vmatpush3.bf16.msra.mxu1 %v3847_v54 }
 0x431   :  { %v3671_v57 = vpop.f32.mrf.mxu0  ;;  %3745 = vmatprep.subr.bf16.mxu1 %v3848_v50 }
 0x432   :  { %3697 = vmatprep.mubr.bf16.mxu1 %v2288_v61 }
 0x433   :  { %v1880_v22 = vpop.f32.mrf.mxu0  ;;  %3698 = vmatmul.mubr.bf16.gmra.mxu1 %v2289_v38 }
 0x434   :  { %3746 = vmatpush3.bf16.msra.mxu1 %v3848_v50 }
 0x435   :  { %v3672_v12 = vpop.f32.mrf.mxu0  ;;  %3747 = vmatprep.subr.bf16.mxu1 %v3849_v55 }
 0x436   :  { %v2291_v51 = vpack.c.bf16 %v3672_v12, %v3671_v57 }
 0x437   :  { %v1883_v41 = vpop.f32.mrf.mxu0 }
 0x438   :  { %v2290_v17 = vpack.c.bf16 %v1883_v41, %v1880_v22  ;;  %3748 = vmatpush3.bf16.msra.mxu1 %v3849_v55 }
 0x439   :  { %v3675_v29 = vpop.f32.mrf.mxu0  ;;  %3749 = vmatprep.subr.bf16.mxu1 %v3850_v56 }
 0x43a   :  { %3701 = vmatprep.mubr.bf16.mxu1 %v2290_v17 }
 0x43b   :  { %v1896_v53 = vpop.f32.mrf.mxu0  ;;  %3702 = vmatmul.mubr.bf16.gmra.mxu1 %v2291_v51 }
 0x43c   :  { %3750 = vmatpush3.bf16.msra.mxu1 %v3850_v56 }
 0x43d   :  { %v3676_v9 = vpop.f32.mrf.mxu0  ;;  %3751 = vmatprep.subr.bf16.mxu1 %v3851_v58 }
 0x43e   :  { %v2293_v6 = vpack.c.bf16 %v3676_v9, %v3675_v29 }
 0x43f   :  { %v1899_v46 = vpop.f32.mrf.mxu0 }
 0x440   :  { %v2292_v25 = vpack.c.bf16 %v1899_v46, %v1896_v53  ;;  %3752 = vmatpush3.bf16.msra.mxu1 %v3851_v58 }
 0x441   :  { %3753 = vmatprep.subr.bf16.mxu1 %v3852_v23  ;;  %v3727_v21 = vpop.f32.mrf.mxu0 }
 0x442   :  { %3705 = vmatprep.mubr.bf16.mxu1 %v2292_v25 }
 0x443   :  { %3706 = vmatmul.mubr.bf16.gmra.mxu1 %v2293_v6  ;;  %v2537_v26 = vpop.f32.mrf.mxu0 }
 0x444   :  { %3754 = vmatpush3.bf16.msra.mxu1 %v3852_v23 }
 0x445   :  { %3755 = vmatprep.subr.bf16.mxu1 %v3853_v20  ;;  %v3728_v60 = vpop.f32.mrf.mxu0 }
 0x447   :  { %v2540_v1 = vpop.f32.mrf.mxu0 }
 0x448   :  { %3756 = vmatpush3.bf16.msra.mxu1 %v3853_v20 }
 0x449   :  { %v3731_v27 = vpop.f32.mrf.mxu0 }
 0x44b   :  { %v2553_v32 = vpop.f32.mrf.mxu0 }
 0x44d   :  { %v3732_v63 = vpop.f32.mrf.mxu0 }
 0x44f   :  { %v2556_v10 = vpop.f32.mrf.mxu0 }
 0x451   :  { %v3735_v7 = vpop.f32.mrf.mxu0 }
 0x453   :  { %v2569_v24 = vpop.f32.mrf.mxu0 }
 0x455   :  { %v3736_v30 = vpop.f32.mrf.mxu0 }
 0x457   :  { %v2572_v0 = vpop.f32.mrf.mxu0 }
 0x459   :  { %v3739_v29 = vpop.f32.mrf.mxu0 }
 0x45b   :  { %v2585_v58 = vpop.f32.mrf.mxu0 }
 0x4eb   :  { %v3695_v36 = vpop.f32.mrf.mxu1 }
 0x4ec   :  { %v2546_v43 = vadd.f32 %v3727_v21, %v3695_v36 }
 0x4ed   :  { %v2392_v52 = vpop.f32.mrf.mxu1 }
 0x4ee   :  { %v5112_v15 = vadd.f32 %v5109_v62, %v2546_v43  ;;  %v2538_v39 = vadd.f32 %v2537_v26, %v2392_v52  ;;  %v3740_v43 = vpop.f32.mrf.mxu0 }
 0x4ef   :  { %v3696_v2 = vpop.f32.mrf.mxu1 }
 0x4f0   :  { %v3181_v42 = vmul.f32 -1.442695, %v5112_v15  ;;  %v5116_v3 = vadd.f32 %v5109_v62, %v2538_v39  ;;  %v2549_v5 = vadd.f32 %v3728_v60, %v3696_v2 }
 0x4f1   :  { %v2395_v37 = vpop.f32.mrf.mxu1 }
 0x4f2   :  { %3982 = vpow2.f32 %v3181_v42  ;;  %v3179_v14 = vmul.f32 -1.442695, %v5116_v3  ;;  %v5120_v19 = vadd.f32 %v5109_v62, %v2549_v5  ;;  %v2541_v16 = vadd.f32 %v2540_v1, %v2395_v37 }
 0x4f3   :  { %v3699_v48 = vpop.f32.mrf.mxu1 }
 0x4f4   :  { %3984 = vpow2.f32 %v3179_v14  ;;  %v3182_v13 = vmul.f32 -1.442695, %v5120_v19  ;;  %v5124_v28 = vadd.f32 %v5109_v62, %v2541_v16  ;;  %v2562_v34 = vadd.f32 %v3731_v27, %v3699_v48 }
 0x4f5   :  { %v2408_v40 = vpop.f32.mrf.mxu1 }
 0x4f6   :  { %3986 = vpow2.f32 %v3182_v13  ;;  %v3180_v33 = vmul.f32 -1.442695, %v5124_v28  ;;  %v5128_v44 = vadd.f32 %v5109_v62, %v2562_v34  ;;  %v2554_v11 = vadd.f32 %v2553_v32, %v2408_v40  ;;  %v2588_v13 = vpop.f32.mrf.mxu0 }
 0x4f7   :  { %v3700_v47 = vpop.f32.mrf.mxu1 }
 0x4f8   :  { %3988 = vpow2.f32 %v3180_v33  ;;  %v3185_v8 = vmul.f32 -1.442695, %v5128_v44  ;;  %v5132_v31 = vadd.f32 %v5109_v62, %v2554_v11  ;;  %v2565_v45 = vadd.f32 %v3732_v63, %v3700_v47 }
 0x4f9   :  { %v2411_v49 = vpop.f32.mrf.mxu1 }
 0x4fa   :  { %3990 = vpow2.f32 %v3185_v8  ;;  %v3183_v61 = vmul.f32 -1.442695, %v5132_v31  ;;  %v5136_v38 = vadd.f32 %v5109_v62, %v2565_v45  ;;  %v2557_v57 = vadd.f32 %v2556_v10, %v2411_v49 }
 0x4fb   :  { %v3703_v22 = vpop.f32.mrf.mxu1 }
 0x4fc   :  { %3992 = vpow2.f32 %v3183_v61  ;;  %v3186_v12 = vmul.f32 -1.442695, %v5136_v38  ;;  %v5140_v41 = vadd.f32 %v5109_v62, %v2557_v57  ;;  %v2578_v17 = vadd.f32 %v3735_v7, %v3703_v22 }
 0x4fd   :  { %v2424_v51 = vpop.f32.mrf.mxu1 }
 0x4fe   :  { %3994 = vpow2.f32 %v3186_v12  ;;  %v3184_v53 = vmul.f32 -1.442695, %v5140_v41  ;;  %v5144_v9 = vadd.f32 %v5109_v62, %v2578_v17  ;;  %v2570_v46 = vadd.f32 %v2569_v24, %v2424_v51 }
 0x4ff   :  { %v3983_v25 = vpop.eup %3982  ;;  %v3704_v6 = vpop.f32.mrf.mxu1 }
 0x500   :  { %v2670_v4 = vadd.f32 1.0, %v3983_v25  ;;  %3996 = vpow2.f32 %v3184_v53  ;;  %v3189_v54 = vmul.f32 -1.442695, %v5144_v9  ;;  %v5148_v50 = vadd.f32 %v5109_v62, %v2570_v46 }
 0x501   :  { %v3985_v55 = vpop.eup %3984  ;;  %v2581_v56 = vadd.f32 %v3736_v30, %v3704_v6  ;;  %v2427_v23 = vpop.f32.mrf.mxu1 }
 0x502   :  { %3998 = vrcp.f32 %v2670_v4  ;;  %v2668_v20 = vadd.f32 1.0, %v3985_v55  ;;  %v3187_v21 = vmul.f32 -1.442695, %v5148_v50  ;;  %v2573_v26 = vadd.f32 %v2572_v0, %v2427_v23 }
 0x503   :  { %v3987_v60 = vpop.eup %3986  ;;  %4000 = vpow2.f32 %v3189_v54  ;;  %v5152_v1 = vadd.f32 %v5109_v62, %v2581_v56  ;;  %v3707_v27 = vpop.f32.mrf.mxu1 }
 0x504   :  { %4002 = vrcp.f32 %v2668_v20  ;;  %v2671_v32 = vadd.f32 1.0, %v3987_v60  ;;  %v5155_v63 = vadd.f32 %v5109_v62, %v2573_v26  ;;  %v2594_v35 = vadd.f32 %v3739_v29, %v3707_v27 }
 0x505   :  { %v3989_v10 = vpop.eup %3988  ;;  %4004 = vpow2.f32 %v3187_v21  ;;  %v3190_v36 = vmul.f32 -1.442695, %v5152_v1  ;;  %v2440_v52 = vpop.f32.mrf.mxu1 }
 0x506   :  { %4006 = vrcp.f32 %v2671_v32  ;;  %v2669_v7 = vadd.f32 1.0, %v3989_v10  ;;  %v3188_v39 = vmul.f32 -1.442695, %v5155_v63  ;;  %v5160_v2 = vadd.f32 %v5109_v62, %v2594_v35 }
 0x507   :  { %v3991_v42 = vpop.eup %3990  ;;  %4008 = vpow2.f32 %v3190_v36  ;;  %v2586_v5 = vadd.f32 %v2585_v58, %v2440_v52  ;;  %v3708_v37 = vpop.f32.mrf.mxu1 }
 0x508   :  { %4010 = vrcp.f32 %v2669_v7  ;;  %v2674_v24 = vadd.f32 1.0, %v3991_v42  ;;  %v3193_v14 = vmul.f32 -1.442695, %v5160_v2  ;;  %v2597_v16 = vadd.f32 %v3740_v43, %v3708_v37 }
 0x509   :  { %v3993_v48 = vpop.eup %3992  ;;  %4012 = vpow2.f32 %v3188_v39  ;;  %v5164_v34 = vadd.f32 %v5109_v62, %v2586_v5  ;;  %v2443_v40 = vpop.f32.mrf.mxu1 }
 0x50a   :  { %4014 = vrcp.f32 %v2674_v24  ;;  %v2672_v30 = vadd.f32 1.0, %v3993_v48  ;;  %v5167_v33 = vadd.f32 %v5109_v62, %v2597_v16  ;;  %v2589_v11 = vadd.f32 %v2588_v13, %v2443_v40 }
 0x50b   :  { %v3995_v47 = vpop.eup %3994  ;;  %4016 = vpow2.f32 %v3193_v14  ;;  %v3191_v8 = vmul.f32 -1.442695, %v5164_v34 }
 0x50c   :  { %4018 = vrcp.f32 %v2672_v30  ;;  %v2675_v45 = vadd.f32 1.0, %v3995_v47  ;;  %v3194_v49 = vmul.f32 -1.442695, %v5167_v33  ;;  %v5172_v0 = vadd.f32 %v5109_v62, %v2589_v11 }
 0x50d   :  { %v3997_v61 = vpop.eup %3996  ;;  %4020 = vpow2.f32 %v3191_v8 }
 0x50e   :  { %4022 = vrcp.f32 %v2675_v45  ;;  %v2673_v57 = vadd.f32 1.0, %v3997_v61  ;;  %v3192_v22 = vmul.f32 -1.442695, %v5172_v0 }
 0x50f   :  { %v3999_v12 = vpop.eup %3998  ;;  %4024 = vpow2.f32 %v3194_v49 }
 0x510   :  { %v4001_v17 = vpop.eup %4000  ;;  %4026 = vrcp.f32 %v2673_v57  ;;  %v2718_v20 = vmul.f32 %v3999_v12, %v5112_v15 }
 0x511   :  { %v4003_v51 = vpop.eup %4002  ;;  %4028 = vpow2.f32 %v3192_v22  ;;  %v2678_v6 = vadd.f32 1.0, %v4001_v17 }
 0x512   :  { %v4005_v29 = vpop.eup %4004  ;;  %v2716_v56 = vmul.f32 %v4003_v51, %v5116_v3 }
 0x513   :  { %v4007_v53 = vpop.eup %4006  ;;  %v2676_v46 = vadd.f32 1.0, %v4005_v29 }
 0x514   :  { %v4009_v25 = vpop.eup %4008  ;;  %v2719_v62 = vmul.f32 %v4007_v53, %v5120_v19 }
 0x515   :  { %v4011_v4 = vpop.eup %4010  ;;  %v2679_v54 = vadd.f32 1.0, %v4009_v25  ;;  %4030 = vrcp.f32 %v2676_v46 }
 0x516   :  { %v4013_v55 = vpop.eup %4012  ;;  %v2717_v58 = vmul.f32 %v4011_v4, %v5124_v28  ;;  %v2733_v32 = vpack.c.bf16 %v2719_v62, %v2718_v20 }
 0x517   :  { %v4015_v23 = vpop.eup %4014  ;;  %4032 = vrcp.f32 %v2679_v54  ;;  %v2677_v21 = vadd.f32 1.0, %v4013_v55 }
 0x518   :  { %v4017_v26 = vpop.eup %4016  ;;  %4034 = vrcp.f32 %v2678_v6  ;;  %v2732_v60 = vpack.c.bf16 %v2717_v58, %v2716_v56  ;;  %v2722_v42 = vmul.f32 %v4015_v23, %v5128_v44 }
 0x519   :  { %v4019_v27 = vpop.eup %4018  ;;  %4036 = vrcp.f32 %v2677_v21  ;;  %v2682_v36 = vadd.f32 1.0, %v4017_v26 }
 0x51a   :  { %v4021_v35 = vpop.eup %4020  ;;  %3757 = vmatprep.mubr.bf16.mxu1 %v2732_v60  ;;  %v2720_v7 = vmul.f32 %v4019_v27, %v5132_v31 }
 0x51b   :  { %v4023_v19 = vpop.eup %4022  ;;  %v2680_v10 = vadd.f32 1.0, %v4021_v35  ;;  %3758 = vmatmul.mubr.bf16.vlgmr.msra.gmra.mxu1 %v2733_v32 }
 0x51c   :  { %v4025_v3 = vpop.eup %4024  ;;  %v2723_v43 = vmul.f32 %v4023_v19, %v5136_v38 }
 0x51d   :  { %v4027_v28 = vpop.eup %4026  ;;  %v2683_v52 = vadd.f32 1.0, %v4025_v3  ;;  %4038 = vrcp.f32 %v2680_v10 }
 0x51e   :  { %v4029_v15 = vpop.eup %4028  ;;  %v2721_v39 = vmul.f32 %v4027_v28, %v5140_v41  ;;  %v2735_v24 = vpack.c.bf16 %v2723_v43, %v2722_v42 }
 0x51f   :  { %4040 = vrcp.f32 %v2683_v52  ;;  %v2681_v5 = vadd.f32 1.0, %v4029_v15 }
 0x520   :  { %4042 = vrcp.f32 %v2682_v36  ;;  %v2734_v37 = vpack.c.bf16 %v2721_v39, %v2720_v7 }
 0x521   :  { %4044 = vrcp.f32 %v2681_v5 }
 0x522   :  { %3761 = vmatprep.mubr.bf16.mxu1 %v2734_v37  ;;  %v4031_v14 = vpop.eup %4030 }
 0x523   :  { %3762 = vmatmul.mubr.bf16.gmra.mxu1 %v2735_v24  ;;  %v2724_v31 = vmul.f32 %v4031_v14, %v5148_v50 }
 0x524   :  { %v4033_v16 = vpop.eup %4032 }
 0x525   :  { %v4035_v38 = vpop.eup %4034  ;;  %v2727_v13 = vmul.f32 %v4033_v16, %v5152_v1 }
 0x526   :  { %v4037_v48 = vpop.eup %4036  ;;  %v2726_v44 = vmul.f32 %v4035_v38, %v5144_v9  ;;  %v2758_v9 = vsub.s32 3, %v4614_v59 }
 0x527   :  { %v2725_v41 = vmul.f32 %v4037_v48, %v5155_v63 }
 0x528   :  { %v2737_v30 = vpack.c.bf16 %v2727_v13, %v2726_v44  ;;  %v2759_v22 = vrot.slane %v5106_v18, %v2758_v9 }
 0x529   :  { %v2736_v40 = vpack.c.bf16 %v2725_v41, %v2724_v31 }
 0x52a   :  { %v4039_v11 = vpop.eup %4038 }
 0x52b   :  { %3765 = vmatprep.mubr.bf16.mxu1 %v2736_v40  ;;  %v2728_v61 = vmul.f32 %v4039_v11, %v5164_v34 }
 0x52c   :  { %v4041_v47 = vpop.eup %4040  ;;  %3766 = vmatmul.mubr.bf16.gmra.mxu1 %v2737_v30 }
 0x52d   :  { %v4043_v8 = vpop.eup %4042  ;;  %v2731_v49 = vmul.f32 %v4041_v47, %v5167_v33 }
 0x52e   :  { %v4045_v45 = vpop.eup %4044  ;;  %v2730_v50 = vmul.f32 %v4043_v8, %v5160_v2 }
 0x52f   :  { %v2729_v1 = vmul.f32 %v4045_v45, %v5172_v0 }
 0x530   :  { %v2739_v63 = vpack.c.bf16 %v2731_v49, %v2730_v50 }
 0x531   :  { %v2738_v57 = vpack.c.bf16 %v2729_v1, %v2728_v61 }
 0x533   :  { %3769 = vmatprep.mubr.bf16.mxu1 %v2738_v57 }
 0x534   :  { %3770 = vmatmul.mubr.bf16.gmra.mxu1 %v2739_v63 }
 0x5db   :  { %v3759_v12 = vpop.f32.mrf.mxu1 }
 0x5dc   :  { %v2851_v17 = vadd.f32 %v3759_v12, %v2759_v22 }
 0x5dd   :  { %v2842_v51 = vpop.f32.mrf.mxu1 }
 0x5de   :  { %2907 = vst [vmem:[%s5256_s15 + $0x10] sm:$0xff] %v2851_v17  ;;  %v2843_v34 = vadd.f32 %v2842_v51, %v2759_v22 }
 0x5df   :  { %v3760_v33 = vpop.f32.mrf.mxu1 }
 0x5e0   :  { %2905 = vst [vmem:[%s5256_s15] sm:$0xff] %v2843_v34  ;;  %v2854_v2 = vadd.f32 %v3760_v33, %v2759_v22 }
 0x5e1   :  { %v2845_v0 = vpop.f32.mrf.mxu1 }
 0x5e2   :  { %2908 = vst [vmem:[%s5256_s15 + $0x18] sm:$0xff] %v2854_v2  ;;  %v2846_v59 = vadd.f32 %v2845_v0, %v2759_v22 }
 0x5e3   :  { %v3763_v18 = vpop.f32.mrf.mxu1 }
 0x5e4   :  { %2906 = vst [vmem:[%s5256_s15 + $0x8] sm:$0xff] %v2846_v59  ;;  %v2867_v29 = vadd.f32 %v3763_v18, %v2759_v22 }
 0x5e5   :  { %v2858_v53 = vpop.f32.mrf.mxu1 }
 0x5e6   :  { %2911 = vst [vmem:[%s5256_s15 + $0x30] sm:$0xff] %v2867_v29  ;;  %v2859_v46 = vadd.f32 %v2858_v53, %v2759_v22 }
 0x5e7   :  { %v3764_v25 = vpop.f32.mrf.mxu1 }
 0x5e8   :  { %2909 = vst [vmem:[%s5256_s15 + $0x20] sm:$0xff] %v2859_v46  ;;  %v2870_v6 = vadd.f32 %v3764_v25, %v2759_v22 }
 0x5e9   :  { %v2861_v4 = vpop.f32.mrf.mxu1 }
 0x5ea   :  { %2912 = vst [vmem:[%s5256_s15 + $0x38] sm:$0xff] %v2870_v6  ;;  %v2862_v62 = vadd.f32 %v2861_v4, %v2759_v22 }
 0x5ec   :  { %2910 = vst [vmem:[%s5256_s15 + $0x28] sm:$0xff] %v2862_v62  ;;  %v3767_v54 = vpop.f32.mrf.mxu1 }
 0x5ed   :  { %v2883_v55 = vadd.f32 %v3767_v54, %v2759_v22 }
 0x5ee   :  { %v2874_v56 = vpop.f32.mrf.mxu1 }
 0x5ef   :  { %2915 = vst [vmem:[%s5256_s15 + $0x50] sm:$0xff] %v2883_v55  ;;  %v2875_v58 = vadd.f32 %v2874_v56, %v2759_v22 }
 0x5f0   :  { %v3768_v23 = vpop.f32.mrf.mxu1 }
 0x5f1   :  { %2913 = vst [vmem:[%s5256_s15 + $0x40] sm:$0xff] %v2875_v58  ;;  %v2886_v20 = vadd.f32 %v3768_v23, %v2759_v22 }
 0x5f2   :  { %v2877_v21 = vpop.f32.mrf.mxu1 }
 0x5f3   :  { %2916 = vst [vmem:[%s5256_s15 + $0x58] sm:$0xff] %v2886_v20  ;;  %v2878_v26 = vadd.f32 %v2877_v21, %v2759_v22 }
 0x5f4   :  { %v3771_v60 = vpop.f32.mrf.mxu1 }
 0x5f5   :  { %2914 = vst [vmem:[%s5256_s15 + $0x48] sm:$0xff] %v2878_v26  ;;  %v2899_v27 = vadd.f32 %v3771_v60, %v2759_v22 }
 0x5f6   :  { %v2890_v32 = vpop.f32.mrf.mxu1 }
 0x5f7   :  { %2919 = vst [vmem:[%s5256_s15 + $0x70] sm:$0xff] %v2899_v27  ;;  %v2891_v35 = vadd.f32 %v2890_v32, %v2759_v22 }
 0x5f8   :  { %v3772_v19 = vpop.f32.mrf.mxu1 }
 0x5f9   :  { %2917 = vst [vmem:[%s5256_s15 + $0x60] sm:$0xff] %v2891_v35  ;;  %v2902_v10 = vadd.f32 %v3772_v19, %v2759_v22 }
 0x5fa   :  { %v2893_v3 = vpop.f32.mrf.mxu1 }
 0x5fb   :  { %2920 = vst [vmem:[%s5256_s15 + $0x78] sm:$0xff] %v2902_v10  ;;  %v2894_v36 = vadd.f32 %v2893_v3, %v2759_v22 }
 0x5fd   :  { %2918 = vst [vmem:[%s5256_s15 + $0x68] sm:$0xff] %v2894_v36 }

</bundles_post_ra>
